<compile_context>
chip_gen: v7x
topology: tpu7x:2x2x1
jax: 0.10.0
libtpu: 0.0.40
codegen_flags: <defaults>
</compile_context>

<pallas_src>
import functools
import math

import numpy as np
import jax
import jax.numpy as jnp
from jax.experimental import pallas as pl
from jax.experimental.pallas import tpu as pltpu

NUM_TOKENS = 6
INV_SQRT2 = 0.7071067811865476


# ----------------------------------------------------------------------------
# Host-side (numpy) construction of the Haar DWT/IDWT basis matrices.
# Slab layout per (n, c) along lanes: [ cA | cD(3 orient) | cV(3) | cH(3) ].
# ----------------------------------------------------------------------------
def _np_haar_dwt1(x):
    lo = (x[..., 0::2] + x[..., 1::2]) * INV_SQRT2
    hi = (x[..., 0::2] - x[..., 1::2]) * INV_SQRT2
    ll = (lo[..., 0::2, :] + lo[..., 1::2, :]) * INV_SQRT2
    lh = (hi[..., 0::2, :] + hi[..., 1::2, :]) * INV_SQRT2
    hl = (lo[..., 0::2, :] - lo[..., 1::2, :]) * INV_SQRT2
    hh = (hi[..., 0::2, :] - hi[..., 1::2, :]) * INV_SQRT2
    return ll, np.stack([lh, hl, hh], axis=-3)


def _np_haar_idwt1(ll, bands):
    lh, hl, hh = bands[..., 0, :, :], bands[..., 1, :, :], bands[..., 2, :, :]
    lead, (Hh, Wh) = ll.shape[:-2], ll.shape[-2:]
    lo = np.stack([(ll + hl) * INV_SQRT2, (ll - hl) * INV_SQRT2],
                  axis=-2).reshape(*lead, 2 * Hh, Wh)
    hi = np.stack([(lh + hh) * INV_SQRT2, (lh - hh) * INV_SQRT2],
                  axis=-2).reshape(*lead, 2 * Hh, Wh)
    return np.stack([(lo + hi) * INV_SQRT2, (lo - hi) * INV_SQRT2],
                    axis=-1).reshape(*lead, 2 * Hh, 2 * Wh)


@functools.lru_cache(maxsize=None)
def _haar_slab_matrices(H, W):
    """(H*W, H*W) matrices mapping a flattened image to/from the coeff slab."""
    K = H * W
    # Forward: row k = J=3 Haar DWT of the k-th one-hot pixel image.
    yl, bands = np.eye(K, dtype=np.float64).reshape(K, H, W), []
    for _ in range(3):                              # J=3, mode='zero', wave='haar'
        yl, b = _np_haar_dwt1(yl)
        bands.append(b)                             # finest first: cH, cV, cD
    bH, bV, bD = bands
    la = yl.shape[-2] * yl.shape[-1]
    ld = bD.shape[-2] * bD.shape[-1]
    lv = bV.shape[-2] * bV.shape[-1]
    lh = bH.shape[-2] * bH.shape[-1]
    afwd = np.concatenate([yl.reshape(K, -1), bD.reshape(K, -1),
                           bV.reshape(K, -1), bH.reshape(K, -1)], axis=-1)
    # Inverse: row j = IDWT of the j-th one-hot slab vector.
    eye = np.eye(K, dtype=np.float64)
    o = 0
    cA = eye[:, o:o + la].reshape(K, *yl.shape[-2:]); o += la
    cD = eye[:, o:o + 3 * ld].reshape(K, 3, *bD.shape[-2:]); o += 3 * ld
    cV = eye[:, o:o + 3 * lv].reshape(K, 3, *bV.shape[-2:]); o += 3 * lv
    cH = eye[:, o:o + 3 * lh].reshape(K, 3, *bH.shape[-2:])
    rec = cA
    for b in (cD, cV, cH):                          # coarsest -> finest
        rec = _np_haar_idwt1(rec, b)
    ainv = rec.reshape(K, K)
    assert np.allclose(afwd @ ainv, np.eye(K), atol=1e-10)   # exact reconstruction
    return afwd.astype(np.float32), ainv.astype(np.float32), la, ld, lv, lh


# ----------------------------------------------------------------------------
# Fused kernel: DWT (MXU) + attention + masking + dice + IDWT (MXU), one call.
# ----------------------------------------------------------------------------
def _fused_kernel(token_ref, x_ref, afwd_ref, ainv_ref, out_ref, loss_ref,
                  slab_scr, w_scr, *, n_b, n_c, n_t, la, ld, lv, lh):
    eps = jnp.float32(1e-12)

    # ---- 3-level Haar DWT: one (C, HW) x (HW, HW) MXU matmul per sample ----
    afwd = afwd_ref[...]
    for n in range(n_b):
        slab_scr[n] = jnp.dot(x_ref[n].astype(jnp.float32), afwd,
                              preferred_element_type=jnp.float32)
    slab = slab_scr[...]                            # (N, C, HW) f32
    token = token_ref[...].astype(jnp.float32)      # (4, T, C)

    def attention(tok, k):
        # tok: (T, C), k: (N, C, L) -> sigmoid(tok @ k): (N, T, L)
        # C is tiny -> unrolled VPU broadcast-MAC (no MXU push/pop latency).
        s = jnp.zeros((n_b, n_t, k.shape[-1]), jnp.float32)
        for c in range(n_c):
            s = s + tok[:, c:c + 1][None, :, :] * k[:, c:c + 1, :]
        return jax.nn.sigmoid(s)

    def dice(attn):
        # Pairwise dice over tokens, mean over the N*T*(T-1) off-diag pairs.
        ss = jnp.sum(attn * attn, axis=-1, keepdims=True)          # (N, T, 1)
        total = jnp.float32(0.0)
        for j in range(n_t):
            aj = attn[:, j:j + 1, :]                                # (N, 1, L)
            inter = jnp.sum(attn * aj, axis=-1, keepdims=True)      # (N, T, 1)
            dj = 2.0 * inter / (ss + ss[:, j:j + 1, :] + 2.0 * eps)
            total = total + jnp.sum(dj) - jnp.sum(dj[:, j:j + 1, :])  # drop i==j
        return total / jnp.float32(n_b * n_t * (n_t - 1))

    # ---- approximation band (cA): lanes [0, la) ----
    attn_a = attention(token[0], slab[:, :, 0:la])
    w_scr[:, :, 0:la] = jnp.sum(attn_a, axis=1, keepdims=True)

    # ---- detail bands: 3 orientations of width w, attention on their sum ----
    def detail(tok, off, w):
        c0 = slab[:, :, off:off + w]
        c1 = slab[:, :, off + w:off + 2 * w]
        c2 = slab[:, :, off + 2 * w:off + 3 * w]
        attn = attention(tok, c0 + c1 + c2)
        msum = jnp.sum(attn, axis=1, keepdims=True)                 # (N, 1, w)
        w_scr[:, :, off:off + w] = msum
        w_scr[:, :, off + w:off + 2 * w] = msum
        w_scr[:, :, off + 2 * w:off + 3 * w] = msum
        return attn

    off_d = la
    off_v = la + 3 * ld
    off_h = la + 3 * ld + 3 * lv
    attn_d = detail(token[3], off_d, ld)   # level-3 details (cD) -> mask_token[3]
    attn_v = detail(token[2], off_v, lv)   # level-2 details (cV) -> mask_token[2]
    attn_h = detail(token[1], off_h, lh)   # level-1 details (cH) -> mask_token[1]

    # ---- apply masks and inverse DWT (one MXU matmul per sample) ----
    masked = slab * w_scr[...]                      # (N, C, HW)
    ainv = ainv_ref[...]
    for n in range(n_b):
        out_ref[n] = jnp.dot(masked[n], ainv,
                             preferred_element_type=jnp.float32).astype(out_ref.dtype)

    # mask_loss = dice(cA) + dice(cD) + dice(cV) + dice(cH)  (same order as torch)
    loss_ref[0, 0] = dice(attn_a) + dice(attn_d) + dice(attn_v) + dice(attn_h)


# ----------------------------------------------------------------------------
# MaskModule.forward_train
# ----------------------------------------------------------------------------
def mask_module_forward(x, mask_token):
    N, C, H, W = x.shape
    assert H % 8 == 0 and W % 8 == 0, "J=3 Haar DWT needs H, W divisible by 8"
    afwd_np, ainv_np, la, ld, lv, lh = _haar_slab_matrices(H, W)
    HW = H * W
    T = mask_token.shape[1]

    kernel = functools.partial(_fused_kernel, n_b=N, n_c=C, n_t=T,
                               la=la, ld=ld, lv=lv, lh=lh)
    out3, loss = pl.pallas_call(
        kernel,
        out_shape=(jax.ShapeDtypeStruct((N, C, HW), x.dtype),
                   jax.ShapeDtypeStruct((1, 1), jnp.float32)),
        in_specs=[pl.BlockSpec(memory_space=pltpu.MemorySpace.VMEM),   # mask_token
                  pl.BlockSpec(memory_space=pltpu.MemorySpace.VMEM),   # x (N,C,HW)
                  pl.BlockSpec(memory_space=pltpu.MemorySpace.VMEM),   # Afwd
                  pl.BlockSpec(memory_space=pltpu.MemorySpace.VMEM)],  # Ainv
        out_specs=(pl.BlockSpec(memory_space=pltpu.MemorySpace.VMEM),  # out (N,C,HW)
                   pl.BlockSpec(memory_space=pltpu.MemorySpace.SMEM)), # mask_loss
        scratch_shapes=[pltpu.VMEM((N, C, HW), jnp.float32),   # coefficient slab
                        pltpu.VMEM((N, 1, HW), jnp.float32)],  # per-band mask sums
    )(mask_token, x.reshape(N, C, HW), jnp.asarray(afwd_np), jnp.asarray(ainv_np))
    return out3.reshape(N, C, H, W), loss[0, 0]


# ----------------------------------------------------------------------------
if __name__ == "__main__":
    key = jax.random.PRNGKey(0)
    k_x, k_tok, k_w1, k_w2 = jax.random.split(key, 4)

    N, C, H, W = 2, 4, 16, 16
    x = jax.random.normal(k_x, (N, C, H, W), dtype=jnp.float32)

    # nn.Parameter(torch.randn(4, num_tokens, channels).normal_(0, 0.01))
    mask_token = 0.01 * jax.random.normal(k_tok, (4, NUM_TOKENS, C),
                                          dtype=jnp.float32)

    # self.prob conv weights exist in __init__ but are unused by forward_train;
    # initialized here for parameter-shape fidelity only.
    prob_w1 = math.sqrt(2.0 / (3 * 3 * C)) * jax.random.normal(
        k_w1, (C, C, 3, 3), jnp.float32)
    prob_b1 = jnp.zeros((C,), jnp.float32)
    prob_w2 = math.sqrt(2.0 / (1 * 1 * NUM_TOKENS)) * jax.random.normal(
        k_w2, (NUM_TOKENS, C, 1, 1), jnp.float32)
    prob_b2 = jnp.zeros((NUM_TOKENS,), jnp.float32)

    out, mask_loss = jax.jit(mask_module_forward)(x, mask_token)
    jax.block_until_ready((out, mask_loss))
    assert out.shape == (N, C, H, W)
    assert mask_loss.shape == ()
    print("KERNEL_OK")
</pallas_src>

<mosaic_0001>
module attributes {stable_mosaic.version = 11 : i64} {
  func.func @_fused_kernel(%arg0: memref<4x6x4xf32, #tpu.memory_space<vmem>>, %arg1: memref<2x4x256xf32, #tpu.memory_space<vmem>>, %arg2: memref<256x256xf32, #tpu.memory_space<vmem>>, %arg3: memref<256x256xf32, #tpu.memory_space<vmem>>, %arg4: memref<2x4x256xf32, #tpu.memory_space<vmem>>, %arg5: memref<1x1xf32, #tpu.memory_space<smem>>, %arg6: memref<2x4x256xf32, #tpu.memory_space<vmem>>, %arg7: memref<2x1x256xf32, #tpu.memory_space<vmem>>) attributes {dimension_semantics = [], scalar_prefetch = 0 : i64, scratch_operands = 2 : i64, tpu.core_type = #tpu.core_type<tc>} {
    %c0 = arith.constant 0 : index
    %c0_0 = arith.constant 0 : index
    %0 = vector.load %arg2[%c0, %c0_0] : memref<256x256xf32, #tpu.memory_space<vmem>>, vector<256x256xf32>
    %c0_1 = arith.constant 0 : index
    %c0_2 = arith.constant 0 : index
    %c0_3 = arith.constant 0 : index
    %1 = vector.load %arg1[%c0_1, %c0_2, %c0_3] : memref<2x4x256xf32, #tpu.memory_space<vmem>>, vector<1x4x256xf32>
    %2 = vector.shape_cast %1 : vector<1x4x256xf32> to vector<4x256xf32>
    %cst = arith.constant dense<0.000000e+00> : vector<4x256xf32>
    %3 = tpu.matmul %2, %0, %cst {dimension_numbers = #tpu.dot_dimension_numbers<[1], [0], [0], [1], [0, 0, 1, 1], [], []>} : vector<4x256xf32>, vector<256x256xf32>, vector<4x256xf32> -> vector<4x256xf32>
    %c0_4 = arith.constant 0 : index
    %c0_5 = arith.constant 0 : index
    %c0_6 = arith.constant 0 : index
    %4 = vector.load %arg6[%c0_4, %c0_5, %c0_6] : memref<2x4x256xf32, #tpu.memory_space<vmem>>, vector<1x4x256xf32>
    %5 = vector.shape_cast %4 : vector<1x4x256xf32> to vector<4x256xf32>
    %6 = vector.shape_cast %3 : vector<4x256xf32> to vector<1x4x256xf32>
    tpu.vector_store %arg6[%c0_4, %c0_5, %c0_6], %6 {strides = array<i32>} : memref<2x4x256xf32, #tpu.memory_space<vmem>>, vector<1x4x256xf32>,
    %c1 = arith.constant 1 : index
    %c0_7 = arith.constant 0 : index
    %c0_8 = arith.constant 0 : index
    %7 = vector.load %arg1[%c1, %c0_7, %c0_8] : memref<2x4x256xf32, #tpu.memory_space<vmem>>, vector<1x4x256xf32>
    %8 = vector.shape_cast %7 : vector<1x4x256xf32> to vector<4x256xf32>
    %cst_9 = arith.constant dense<0.000000e+00> : vector<4x256xf32>
    %9 = tpu.matmul %8, %0, %cst_9 {dimension_numbers = #tpu.dot_dimension_numbers<[1], [0], [0], [1], [0, 0, 1, 1], [], []>} : vector<4x256xf32>, vector<256x256xf32>, vector<4x256xf32> -> vector<4x256xf32>
    %c1_10 = arith.constant 1 : index
    %c0_11 = arith.constant 0 : index
    %c0_12 = arith.constant 0 : index
    %10 = vector.load %arg6[%c1_10, %c0_11, %c0_12] : memref<2x4x256xf32, #tpu.memory_space<vmem>>, vector<1x4x256xf32>
    %11 = vector.shape_cast %10 : vector<1x4x256xf32> to vector<4x256xf32>
    %12 = vector.shape_cast %9 : vector<4x256xf32> to vector<1x4x256xf32>
    tpu.vector_store %arg6[%c1_10, %c0_11, %c0_12], %12 {strides = array<i32>} : memref<2x4x256xf32, #tpu.memory_space<vmem>>, vector<1x4x256xf32>,
    %c0_13 = arith.constant 0 : index
    %c0_14 = arith.constant 0 : index
    %c0_15 = arith.constant 0 : index
    %13 = vector.load %arg6[%c0_13, %c0_14, %c0_15] : memref<2x4x256xf32, #tpu.memory_space<vmem>>, vector<2x4x256xf32>
    %c0_16 = arith.constant 0 : index
    %c0_17 = arith.constant 0 : index
    %c0_18 = arith.constant 0 : index
    %14 = vector.load %arg0[%c0_16, %c0_17, %c0_18] : memref<4x6x4xf32, #tpu.memory_space<vmem>>, vector<4x6x4xf32>
    %15 = vector.extract_strided_slice %14 {offsets = [0, 0, 0], sizes = [1, 6, 4], strides = [1, 1, 1]} : vector<4x6x4xf32> to vector<1x6x4xf32>
    %16 = vector.shape_cast %15 : vector<1x6x4xf32> to vector<6x4xf32>
    %17 = vector.extract_strided_slice %13 {offsets = [0, 0, 0], sizes = [2, 4, 4], strides = [1, 1, 1]} : vector<2x4x256xf32> to vector<2x4x4xf32>
    %cst_19 = arith.constant 0.000000e+00 : f32
    %18 = vector.broadcast %cst_19 : f32 to vector<2x6x4xf32>
    %19 = vector.extract_strided_slice %16 {offsets = [0, 0], sizes = [6, 1], strides = [1, 1]} : vector<6x4xf32> to vector<6x1xf32>
    %20 = vector.shape_cast %19 : vector<6x1xf32> to vector<1x6x1xf32>
    %21 = vector.extract_strided_slice %17 {offsets = [0, 0, 0], sizes = [2, 1, 4], strides = [1, 1, 1]} : vector<2x4x4xf32> to vector<2x1x4xf32>
    %22 = vector.broadcast %20 : vector<1x6x1xf32> to vector<2x6x4xf32>
    %23 = vector.broadcast %21 : vector<2x1x4xf32> to vector<2x6x4xf32>
    %24 = arith.mulf %22, %23 : vector<2x6x4xf32>
    %25 = arith.addf %18, %24 : vector<2x6x4xf32>
    %26 = vector.extract_strided_slice %16 {offsets = [0, 1], sizes = [6, 1], strides = [1, 1]} : vector<6x4xf32> to vector<6x1xf32>
    %27 = vector.shape_cast %26 : vector<6x1xf32> to vector<1x6x1xf32>
    %28 = vector.extract_strided_slice %17 {offsets = [0, 1, 0], sizes = [2, 1, 4], strides = [1, 1, 1]} : vector<2x4x4xf32> to vector<2x1x4xf32>
    %29 = vector.broadcast %27 : vector<1x6x1xf32> to vector<2x6x4xf32>
    %30 = vector.broadcast %28 : vector<2x1x4xf32> to vector<2x6x4xf32>
    %31 = arith.mulf %29, %30 : vector<2x6x4xf32>
    %32 = arith.addf %25, %31 : vector<2x6x4xf32>
    %33 = vector.extract_strided_slice %16 {offsets = [0, 2], sizes = [6, 1], strides = [1, 1]} : vector<6x4xf32> to vector<6x1xf32>
    %34 = vector.shape_cast %33 : vector<6x1xf32> to vector<1x6x1xf32>
    %35 = vector.extract_strided_slice %17 {offsets = [0, 2, 0], sizes = [2, 1, 4], strides = [1, 1, 1]} : vector<2x4x4xf32> to vector<2x1x4xf32>
    %36 = vector.broadcast %34 : vector<1x6x1xf32> to vector<2x6x4xf32>
    %37 = vector.broadcast %35 : vector<2x1x4xf32> to vector<2x6x4xf32>
    %38 = arith.mulf %36, %37 : vector<2x6x4xf32>
    %39 = arith.addf %32, %38 : vector<2x6x4xf32>
    %40 = vector.extract_strided_slice %16 {offsets = [0, 3], sizes = [6, 1], strides = [1, 1]} : vector<6x4xf32> to vector<6x1xf32>
    %41 = vector.shape_cast %40 : vector<6x1xf32> to vector<1x6x1xf32>
    %42 = vector.extract_strided_slice %17 {offsets = [0, 3, 0], sizes = [2, 1, 4], strides = [1, 1, 1]} : vector<2x4x4xf32> to vector<2x1x4xf32>
    %43 = vector.broadcast %41 : vector<1x6x1xf32> to vector<2x6x4xf32>
    %44 = vector.broadcast %42 : vector<2x1x4xf32> to vector<2x6x4xf32>
    %45 = arith.mulf %43, %44 : vector<2x6x4xf32>
    %46 = arith.addf %39, %45 : vector<2x6x4xf32>
    %47 = arith.negf %46 : vector<2x6x4xf32>
    %48 = math.exp %47 : vector<2x6x4xf32>
    %cst_20 = arith.constant 1.000000e+00 : f32
    %49 = vector.broadcast %cst_20 : f32 to vector<2x6x4xf32>
    %50 = arith.addf %49, %48 : vector<2x6x4xf32>
    %51 = arith.divf %49, %50 : vector<2x6x4xf32>
    %cst_21 = arith.constant dense<0.000000e+00> : vector<2x4xf32>
    %52 = vector.multi_reduction <add>, %51, %cst_21 [1] : vector<2x6x4xf32> to vector<2x4xf32>
    %53 = vector.shape_cast %52 : vector<2x4xf32> to vector<2x1x4xf32>
    %c0_22 = arith.constant 0 : index
    %c0_23 = arith.constant 0 : index
    %c0_24 = arith.constant 0 : index
    %54 = vector.load %arg7[%c0_22, %c0_23, %c0_24] : memref<2x1x256xf32, #tpu.memory_space<vmem>>, vector<2x1x4xf32>
    tpu.vector_store %arg7[%c0_22, %c0_23, %c0_24], %53 {strides = array<i32>} : memref<2x1x256xf32, #tpu.memory_space<vmem>>, vector<2x1x4xf32>,
    %55 = vector.extract_strided_slice %14 {offsets = [3, 0, 0], sizes = [1, 6, 4], strides = [1, 1, 1]} : vector<4x6x4xf32> to vector<1x6x4xf32>
    %56 = vector.shape_cast %55 : vector<1x6x4xf32> to vector<6x4xf32>
    %57 = vector.extract_strided_slice %13 {offsets = [0, 0, 4], sizes = [2, 4, 4], strides = [1, 1, 1]} : vector<2x4x256xf32> to vector<2x4x4xf32>
    %58 = vector.extract_strided_slice %13 {offsets = [0, 0, 8], sizes = [2, 4, 4], strides = [1, 1, 1]} : vector<2x4x256xf32> to vector<2x4x4xf32>
    %59 = vector.extract_strided_slice %13 {offsets = [0, 0, 12], sizes = [2, 4, 4], strides = [1, 1, 1]} : vector<2x4x256xf32> to vector<2x4x4xf32>
    %60 = arith.addf %57, %58 : vector<2x4x4xf32>
    %61 = arith.addf %60, %59 : vector<2x4x4xf32>
    %cst_25 = arith.constant 0.000000e+00 : f32
    %62 = vector.broadcast %cst_25 : f32 to vector<2x6x4xf32>
    %63 = vector.extract_strided_slice %56 {offsets = [0, 0], sizes = [6, 1], strides = [1, 1]} : vector<6x4xf32> to vector<6x1xf32>
    %64 = vector.shape_cast %63 : vector<6x1xf32> to vector<1x6x1xf32>
    %65 = vector.extract_strided_slice %61 {offsets = [0, 0, 0], sizes = [2, 1, 4], strides = [1, 1, 1]} : vector<2x4x4xf32> to vector<2x1x4xf32>
    %66 = vector.broadcast %64 : vector<1x6x1xf32> to vector<2x6x4xf32>
    %67 = vector.broadcast %65 : vector<2x1x4xf32> to vector<2x6x4xf32>
    %68 = arith.mulf %66, %67 : vector<2x6x4xf32>
    %69 = arith.addf %62, %68 : vector<2x6x4xf32>
    %70 = vector.extract_strided_slice %56 {offsets = [0, 1], sizes = [6, 1], strides = [1, 1]} : vector<6x4xf32> to vector<6x1xf32>
    %71 = vector.shape_cast %70 : vector<6x1xf32> to vector<1x6x1xf32>
    %72 = vector.extract_strided_slice %61 {offsets = [0, 1, 0], sizes = [2, 1, 4], strides = [1, 1, 1]} : vector<2x4x4xf32> to vector<2x1x4xf32>
    %73 = vector.broadcast %71 : vector<1x6x1xf32> to vector<2x6x4xf32>
    %74 = vector.broadcast %72 : vector<2x1x4xf32> to vector<2x6x4xf32>
    %75 = arith.mulf %73, %74 : vector<2x6x4xf32>
    %76 = arith.addf %69, %75 : vector<2x6x4xf32>
    %77 = vector.extract_strided_slice %56 {offsets = [0, 2], sizes = [6, 1], strides = [1, 1]} : vector<6x4xf32> to vector<6x1xf32>
    %78 = vector.shape_cast %77 : vector<6x1xf32> to vector<1x6x1xf32>
    %79 = vector.extract_strided_slice %61 {offsets = [0, 2, 0], sizes = [2, 1, 4], strides = [1, 1, 1]} : vector<2x4x4xf32> to vector<2x1x4xf32>
    %80 = vector.broadcast %78 : vector<1x6x1xf32> to vector<2x6x4xf32>
    %81 = vector.broadcast %79 : vector<2x1x4xf32> to vector<2x6x4xf32>
    %82 = arith.mulf %80, %81 : vector<2x6x4xf32>
    %83 = arith.addf %76, %82 : vector<2x6x4xf32>
    %84 = vector.extract_strided_slice %56 {offsets = [0, 3], sizes = [6, 1], strides = [1, 1]} : vector<6x4xf32> to vector<6x1xf32>
    %85 = vector.shape_cast %84 : vector<6x1xf32> to vector<1x6x1xf32>
    %86 = vector.extract_strided_slice %61 {offsets = [0, 3, 0], sizes = [2, 1, 4], strides = [1, 1, 1]} : vector<2x4x4xf32> to vector<2x1x4xf32>
    %87 = vector.broadcast %85 : vector<1x6x1xf32> to vector<2x6x4xf32>
    %88 = vector.broadcast %86 : vector<2x1x4xf32> to vector<2x6x4xf32>
    %89 = arith.mulf %87, %88 : vector<2x6x4xf32>
    %90 = arith.addf %83, %89 : vector<2x6x4xf32>
    %91 = arith.negf %90 : vector<2x6x4xf32>
    %92 = math.exp %91 : vector<2x6x4xf32>
    %cst_26 = arith.constant 1.000000e+00 : f32
    %93 = vector.broadcast %cst_26 : f32 to vector<2x6x4xf32>
    %94 = arith.addf %93, %92 : vector<2x6x4xf32>
    %95 = arith.divf %93, %94 : vector<2x6x4xf32>
    %cst_27 = arith.constant dense<0.000000e+00> : vector<2x4xf32>
    %96 = vector.multi_reduction <add>, %95, %cst_27 [1] : vector<2x6x4xf32> to vector<2x4xf32>
    %97 = vector.shape_cast %96 : vector<2x4xf32> to vector<2x1x4xf32>
    %c0_28 = arith.constant 0 : index
    %c0_29 = arith.constant 0 : index
    %c4 = arith.constant 4 : index
    %98 = vector.load %arg7[%c0_28, %c0_29, %c4] : memref<2x1x256xf32, #tpu.memory_space<vmem>>, vector<2x1x4xf32>
    tpu.vector_store %arg7[%c0_28, %c0_29, %c4], %97 {strides = array<i32>} : memref<2x1x256xf32, #tpu.memory_space<vmem>>, vector<2x1x4xf32>,
    %c0_30 = arith.constant 0 : index
    %c0_31 = arith.constant 0 : index
    %c8 = arith.constant 8 : index
    %99 = vector.load %arg7[%c0_30, %c0_31, %c8] : memref<2x1x256xf32, #tpu.memory_space<vmem>>, vector<2x1x4xf32>
    tpu.vector_store %arg7[%c0_30, %c0_31, %c8], %97 {strides = array<i32>} : memref<2x1x256xf32, #tpu.memory_space<vmem>>, vector<2x1x4xf32>,
    %c0_32 = arith.constant 0 : index
    %c0_33 = arith.constant 0 : index
    %c12 = arith.constant 12 : index
    %100 = vector.load %arg7[%c0_32, %c0_33, %c12] : memref<2x1x256xf32, #tpu.memory_space<vmem>>, vector<2x1x4xf32>
    tpu.vector_store %arg7[%c0_32, %c0_33, %c12], %97 {strides = array<i32>} : memref<2x1x256xf32, #tpu.memory_space<vmem>>, vector<2x1x4xf32>,
    %101 = vector.extract_strided_slice %14 {offsets = [2, 0, 0], sizes = [1, 6, 4], strides = [1, 1, 1]} : vector<4x6x4xf32> to vector<1x6x4xf32>
    %102 = vector.shape_cast %101 : vector<1x6x4xf32> to vector<6x4xf32>
    %103 = vector.extract_strided_slice %13 {offsets = [0, 0, 16], sizes = [2, 4, 16], strides = [1, 1, 1]} : vector<2x4x256xf32> to vector<2x4x16xf32>
    %104 = vector.extract_strided_slice %13 {offsets = [0, 0, 32], sizes = [2, 4, 16], strides = [1, 1, 1]} : vector<2x4x256xf32> to vector<2x4x16xf32>
    %105 = vector.extract_strided_slice %13 {offsets = [0, 0, 48], sizes = [2, 4, 16], strides = [1, 1, 1]} : vector<2x4x256xf32> to vector<2x4x16xf32>
    %106 = arith.addf %103, %104 : vector<2x4x16xf32>
    %107 = arith.addf %106, %105 : vector<2x4x16xf32>
    %cst_34 = arith.constant 0.000000e+00 : f32
    %108 = vector.broadcast %cst_34 : f32 to vector<2x6x16xf32>
    %109 = vector.extract_strided_slice %102 {offsets = [0, 0], sizes = [6, 1], strides = [1, 1]} : vector<6x4xf32> to vector<6x1xf32>
    %110 = vector.shape_cast %109 : vector<6x1xf32> to vector<1x6x1xf32>
    %111 = vector.extract_strided_slice %107 {offsets = [0, 0, 0], sizes = [2, 1, 16], strides = [1, 1, 1]} : vector<2x4x16xf32> to vector<2x1x16xf32>
    %112 = vector.broadcast %110 : vector<1x6x1xf32> to vector<2x6x16xf32>
    %113 = vector.broadcast %111 : vector<2x1x16xf32> to vector<2x6x16xf32>
    %114 = arith.mulf %112, %113 : vector<2x6x16xf32>
    %115 = arith.addf %108, %114 : vector<2x6x16xf32>
    %116 = vector.extract_strided_slice %102 {offsets = [0, 1], sizes = [6, 1], strides = [1, 1]} : vector<6x4xf32> to vector<6x1xf32>
    %117 = vector.shape_cast %116 : vector<6x1xf32> to vector<1x6x1xf32>
    %118 = vector.extract_strided_slice %107 {offsets = [0, 1, 0], sizes = [2, 1, 16], strides = [1, 1, 1]} : vector<2x4x16xf32> to vector<2x1x16xf32>
    %119 = vector.broadcast %117 : vector<1x6x1xf32> to vector<2x6x16xf32>
    %120 = vector.broadcast %118 : vector<2x1x16xf32> to vector<2x6x16xf32>
    %121 = arith.mulf %119, %120 : vector<2x6x16xf32>
    %122 = arith.addf %115, %121 : vector<2x6x16xf32>
    %123 = vector.extract_strided_slice %102 {offsets = [0, 2], sizes = [6, 1], strides = [1, 1]} : vector<6x4xf32> to vector<6x1xf32>
    %124 = vector.shape_cast %123 : vector<6x1xf32> to vector<1x6x1xf32>
    %125 = vector.extract_strided_slice %107 {offsets = [0, 2, 0], sizes = [2, 1, 16], strides = [1, 1, 1]} : vector<2x4x16xf32> to vector<2x1x16xf32>
    %126 = vector.broadcast %124 : vector<1x6x1xf32> to vector<2x6x16xf32>
    %127 = vector.broadcast %125 : vector<2x1x16xf32> to vector<2x6x16xf32>
    %128 = arith.mulf %126, %127 : vector<2x6x16xf32>
    %129 = arith.addf %122, %128 : vector<2x6x16xf32>
    %130 = vector.extract_strided_slice %102 {offsets = [0, 3], sizes = [6, 1], strides = [1, 1]} : vector<6x4xf32> to vector<6x1xf32>
    %131 = vector.shape_cast %130 : vector<6x1xf32> to vector<1x6x1xf32>
    %132 = vector.extract_strided_slice %107 {offsets = [0, 3, 0], sizes = [2, 1, 16], strides = [1, 1, 1]} : vector<2x4x16xf32> to vector<2x1x16xf32>
    %133 = vector.broadcast %131 : vector<1x6x1xf32> to vector<2x6x16xf32>
    %134 = vector.broadcast %132 : vector<2x1x16xf32> to vector<2x6x16xf32>
    %135 = arith.mulf %133, %134 : vector<2x6x16xf32>
    %136 = arith.addf %129, %135 : vector<2x6x16xf32>
    %137 = arith.negf %136 : vector<2x6x16xf32>
    %138 = math.exp %137 : vector<2x6x16xf32>
    %cst_35 = arith.constant 1.000000e+00 : f32
    %139 = vector.broadcast %cst_35 : f32 to vector<2x6x16xf32>
    %140 = arith.addf %139, %138 : vector<2x6x16xf32>
    %141 = arith.divf %139, %140 : vector<2x6x16xf32>
    %cst_36 = arith.constant dense<0.000000e+00> : vector<2x16xf32>
    %142 = vector.multi_reduction <add>, %141, %cst_36 [1] : vector<2x6x16xf32> to vector<2x16xf32>
    %143 = vector.shape_cast %142 : vector<2x16xf32> to vector<2x1x16xf32>
    %c0_37 = arith.constant 0 : index
    %c0_38 = arith.constant 0 : index
    %c16 = arith.constant 16 : index
    %144 = vector.load %arg7[%c0_37, %c0_38, %c16] : memref<2x1x256xf32, #tpu.memory_space<vmem>>, vector<2x1x16xf32>
    tpu.vector_store %arg7[%c0_37, %c0_38, %c16], %143 {strides = array<i32>} : memref<2x1x256xf32, #tpu.memory_space<vmem>>, vector<2x1x16xf32>,
    %c0_39 = arith.constant 0 : index
    %c0_40 = arith.constant 0 : index
    %c32 = arith.constant 32 : index
    %145 = vector.load %arg7[%c0_39, %c0_40, %c32] : memref<2x1x256xf32, #tpu.memory_space<vmem>>, vector<2x1x16xf32>
    tpu.vector_store %arg7[%c0_39, %c0_40, %c32], %143 {strides = array<i32>} : memref<2x1x256xf32, #tpu.memory_space<vmem>>, vector<2x1x16xf32>,
    %c0_41 = arith.constant 0 : index
    %c0_42 = arith.constant 0 : index
    %c48 = arith.constant 48 : index
    %146 = vector.load %arg7[%c0_41, %c0_42, %c48] : memref<2x1x256xf32, #tpu.memory_space<vmem>>, vector<2x1x16xf32>
    tpu.vector_store %arg7[%c0_41, %c0_42, %c48], %143 {strides = array<i32>} : memref<2x1x256xf32, #tpu.memory_space<vmem>>, vector<2x1x16xf32>,
    %147 = vector.extract_strided_slice %14 {offsets = [1, 0, 0], sizes = [1, 6, 4], strides = [1, 1, 1]} : vector<4x6x4xf32> to vector<1x6x4xf32>
    %148 = vector.shape_cast %147 : vector<1x6x4xf32> to vector<6x4xf32>
    %149 = vector.extract_strided_slice %13 {offsets = [0, 0, 64], sizes = [2, 4, 64], strides = [1, 1, 1]} : vector<2x4x256xf32> to vector<2x4x64xf32>
    %150 = vector.extract_strided_slice %13 {offsets = [0, 0, 128], sizes = [2, 4, 64], strides = [1, 1, 1]} : vector<2x4x256xf32> to vector<2x4x64xf32>
    %151 = vector.extract_strided_slice %13 {offsets = [0, 0, 192], sizes = [2, 4, 64], strides = [1, 1, 1]} : vector<2x4x256xf32> to vector<2x4x64xf32>
    %152 = arith.addf %149, %150 : vector<2x4x64xf32>
    %153 = arith.addf %152, %151 : vector<2x4x64xf32>
    %cst_43 = arith.constant 0.000000e+00 : f32
    %154 = vector.broadcast %cst_43 : f32 to vector<2x6x64xf32>
    %155 = vector.extract_strided_slice %148 {offsets = [0, 0], sizes = [6, 1], strides = [1, 1]} : vector<6x4xf32> to vector<6x1xf32>
    %156 = vector.shape_cast %155 : vector<6x1xf32> to vector<1x6x1xf32>
    %157 = vector.extract_strided_slice %153 {offsets = [0, 0, 0], sizes = [2, 1, 64], strides = [1, 1, 1]} : vector<2x4x64xf32> to vector<2x1x64xf32>
    %158 = vector.broadcast %156 : vector<1x6x1xf32> to vector<2x6x64xf32>
    %159 = vector.broadcast %157 : vector<2x1x64xf32> to vector<2x6x64xf32>
    %160 = arith.mulf %158, %159 : vector<2x6x64xf32>
    %161 = arith.addf %154, %160 : vector<2x6x64xf32>
    %162 = vector.extract_strided_slice %148 {offsets = [0, 1], sizes = [6, 1], strides = [1, 1]} : vector<6x4xf32> to vector<6x1xf32>
    %163 = vector.shape_cast %162 : vector<6x1xf32> to vector<1x6x1xf32>
    %164 = vector.extract_strided_slice %153 {offsets = [0, 1, 0], sizes = [2, 1, 64], strides = [1, 1, 1]} : vector<2x4x64xf32> to vector<2x1x64xf32>
    %165 = vector.broadcast %163 : vector<1x6x1xf32> to vector<2x6x64xf32>
    %166 = vector.broadcast %164 : vector<2x1x64xf32> to vector<2x6x64xf32>
    %167 = arith.mulf %165, %166 : vector<2x6x64xf32>
    %168 = arith.addf %161, %167 : vector<2x6x64xf32>
    %169 = vector.extract_strided_slice %148 {offsets = [0, 2], sizes = [6, 1], strides = [1, 1]} : vector<6x4xf32> to vector<6x1xf32>
    %170 = vector.shape_cast %169 : vector<6x1xf32> to vector<1x6x1xf32>
    %171 = vector.extract_strided_slice %153 {offsets = [0, 2, 0], sizes = [2, 1, 64], strides = [1, 1, 1]} : vector<2x4x64xf32> to vector<2x1x64xf32>
    %172 = vector.broadcast %170 : vector<1x6x1xf32> to vector<2x6x64xf32>
    %173 = vector.broadcast %171 : vector<2x1x64xf32> to vector<2x6x64xf32>
    %174 = arith.mulf %172, %173 : vector<2x6x64xf32>
    %175 = arith.addf %168, %174 : vector<2x6x64xf32>
    %176 = vector.extract_strided_slice %148 {offsets = [0, 3], sizes = [6, 1], strides = [1, 1]} : vector<6x4xf32> to vector<6x1xf32>
    %177 = vector.shape_cast %176 : vector<6x1xf32> to vector<1x6x1xf32>
    %178 = vector.extract_strided_slice %153 {offsets = [0, 3, 0], sizes = [2, 1, 64], strides = [1, 1, 1]} : vector<2x4x64xf32> to vector<2x1x64xf32>
    %179 = vector.broadcast %177 : vector<1x6x1xf32> to vector<2x6x64xf32>
    %180 = vector.broadcast %178 : vector<2x1x64xf32> to vector<2x6x64xf32>
    %181 = arith.mulf %179, %180 : vector<2x6x64xf32>
    %182 = arith.addf %175, %181 : vector<2x6x64xf32>
    %183 = arith.negf %182 : vector<2x6x64xf32>
    %184 = math.exp %183 : vector<2x6x64xf32>
    %cst_44 = arith.constant 1.000000e+00 : f32
    %185 = vector.broadcast %cst_44 : f32 to vector<2x6x64xf32>
    %186 = arith.addf %185, %184 : vector<2x6x64xf32>
    %187 = arith.divf %185, %186 : vector<2x6x64xf32>
    %cst_45 = arith.constant dense<0.000000e+00> : vector<2x64xf32>
    %188 = vector.multi_reduction <add>, %187, %cst_45 [1] : vector<2x6x64xf32> to vector<2x64xf32>
    %189 = vector.shape_cast %188 : vector<2x64xf32> to vector<2x1x64xf32>
    %c0_46 = arith.constant 0 : index
    %c0_47 = arith.constant 0 : index
    %c64 = arith.constant 64 : index
    %190 = vector.load %arg7[%c0_46, %c0_47, %c64] : memref<2x1x256xf32, #tpu.memory_space<vmem>>, vector<2x1x64xf32>
    tpu.vector_store %arg7[%c0_46, %c0_47, %c64], %189 {strides = array<i32>} : memref<2x1x256xf32, #tpu.memory_space<vmem>>, vector<2x1x64xf32>,
    %c0_48 = arith.constant 0 : index
    %c0_49 = arith.constant 0 : index
    %c128 = arith.constant 128 : index
    %191 = vector.load %arg7[%c0_48, %c0_49, %c128] : memref<2x1x256xf32, #tpu.memory_space<vmem>>, vector<2x1x64xf32>
    tpu.vector_store %arg7[%c0_48, %c0_49, %c128], %189 {strides = array<i32>} : memref<2x1x256xf32, #tpu.memory_space<vmem>>, vector<2x1x64xf32>,
    %c0_50 = arith.constant 0 : index
    %c0_51 = arith.constant 0 : index
    %c192 = arith.constant 192 : index
    %192 = vector.load %arg7[%c0_50, %c0_51, %c192] : memref<2x1x256xf32, #tpu.memory_space<vmem>>, vector<2x1x64xf32>
    tpu.vector_store %arg7[%c0_50, %c0_51, %c192], %189 {strides = array<i32>} : memref<2x1x256xf32, #tpu.memory_space<vmem>>, vector<2x1x64xf32>,
    %c0_52 = arith.constant 0 : index
    %c0_53 = arith.constant 0 : index
    %c0_54 = arith.constant 0 : index
    %193 = vector.load %arg7[%c0_52, %c0_53, %c0_54] : memref<2x1x256xf32, #tpu.memory_space<vmem>>, vector<2x1x256xf32>
    %194 = vector.broadcast %193 : vector<2x1x256xf32> to vector<2x4x256xf32>
    %195 = arith.mulf %13, %194 : vector<2x4x256xf32>
    %c0_55 = arith.constant 0 : index
    %c0_56 = arith.constant 0 : index
    %196 = vector.load %arg3[%c0_55, %c0_56] : memref<256x256xf32, #tpu.memory_space<vmem>>, vector<256x256xf32>
    %197 = vector.extract_strided_slice %195 {offsets = [0, 0, 0], sizes = [1, 4, 256], strides = [1, 1, 1]} : vector<2x4x256xf32> to vector<1x4x256xf32>
    %198 = vector.shape_cast %197 : vector<1x4x256xf32> to vector<4x256xf32>
    %cst_57 = arith.constant dense<0.000000e+00> : vector<4x256xf32>
    %199 = tpu.matmul %198, %196, %cst_57 {dimension_numbers = #tpu.dot_dimension_numbers<[1], [0], [0], [1], [0, 0, 1, 1], [], []>} : vector<4x256xf32>, vector<256x256xf32>, vector<4x256xf32> -> vector<4x256xf32>
    %c0_58 = arith.constant 0 : index
    %c0_59 = arith.constant 0 : index
    %c0_60 = arith.constant 0 : index
    %200 = vector.load %arg4[%c0_58, %c0_59, %c0_60] : memref<2x4x256xf32, #tpu.memory_space<vmem>>, vector<1x4x256xf32>
    %201 = vector.shape_cast %200 : vector<1x4x256xf32> to vector<4x256xf32>
    %202 = vector.shape_cast %199 : vector<4x256xf32> to vector<1x4x256xf32>
    tpu.vector_store %arg4[%c0_58, %c0_59, %c0_60], %202 {strides = array<i32>} : memref<2x4x256xf32, #tpu.memory_space<vmem>>, vector<1x4x256xf32>,
    %203 = vector.extract_strided_slice %195 {offsets = [1, 0, 0], sizes = [1, 4, 256], strides = [1, 1, 1]} : vector<2x4x256xf32> to vector<1x4x256xf32>
    %204 = vector.shape_cast %203 : vector<1x4x256xf32> to vector<4x256xf32>
    %cst_61 = arith.constant dense<0.000000e+00> : vector<4x256xf32>
    %205 = tpu.matmul %204, %196, %cst_61 {dimension_numbers = #tpu.dot_dimension_numbers<[1], [0], [0], [1], [0, 0, 1, 1], [], []>} : vector<4x256xf32>, vector<256x256xf32>, vector<4x256xf32> -> vector<4x256xf32>
    %c1_62 = arith.constant 1 : index
    %c0_63 = arith.constant 0 : index
    %c0_64 = arith.constant 0 : index
    %206 = vector.load %arg4[%c1_62, %c0_63, %c0_64] : memref<2x4x256xf32, #tpu.memory_space<vmem>>, vector<1x4x256xf32>
    %207 = vector.shape_cast %206 : vector<1x4x256xf32> to vector<4x256xf32>
    %208 = vector.shape_cast %205 : vector<4x256xf32> to vector<1x4x256xf32>
    tpu.vector_store %arg4[%c1_62, %c0_63, %c0_64], %208 {strides = array<i32>} : memref<2x4x256xf32, #tpu.memory_space<vmem>>, vector<1x4x256xf32>,
    %209 = arith.mulf %51, %51 : vector<2x6x4xf32>
    %cst_65 = arith.constant dense<0.000000e+00> : vector<2x6xf32>
    %210 = vector.multi_reduction <add>, %209, %cst_65 [2] : vector<2x6x4xf32> to vector<2x6xf32>
    %211 = vector.shape_cast %210 : vector<2x6xf32> to vector<2x6x1xf32>
    %212 = vector.extract_strided_slice %51 {offsets = [0, 0, 0], sizes = [2, 1, 4], strides = [1, 1, 1]} : vector<2x6x4xf32> to vector<2x1x4xf32>
    %213 = vector.broadcast %212 : vector<2x1x4xf32> to vector<2x6x4xf32>
    %214 = arith.mulf %51, %213 : vector<2x6x4xf32>
    %cst_66 = arith.constant dense<0.000000e+00> : vector<2x6xf32>
    %215 = vector.multi_reduction <add>, %214, %cst_66 [2] : vector<2x6x4xf32> to vector<2x6xf32>
    %216 = vector.shape_cast %215 : vector<2x6xf32> to vector<2x6x1xf32>
    %cst_67 = arith.constant 2.000000e+00 : f32
    %217 = vector.broadcast %cst_67 : f32 to vector<2x6x1xf32>
    %218 = arith.mulf %217, %216 : vector<2x6x1xf32>
    %219 = vector.extract_strided_slice %211 {offsets = [0, 0, 0], sizes = [2, 1, 1], strides = [1, 1, 1]} : vector<2x6x1xf32> to vector<2x1x1xf32>
    %220 = vector.broadcast %219 : vector<2x1x1xf32> to vector<2x6x1xf32>
    %221 = arith.addf %211, %220 : vector<2x6x1xf32>
    %cst_68 = arith.constant 2.000000e+00 : f32
    %cst_69 = arith.constant 9.99999996E-13 : f32
    %222 = arith.mulf %cst_68, %cst_69 : f32
    %223 = vector.broadcast %222 : f32 to vector<2x6x1xf32>
    %224 = arith.addf %221, %223 : vector<2x6x1xf32>
    %225 = arith.divf %218, %224 : vector<2x6x1xf32>
    %226 = vector.shape_cast %225 : vector<2x6x1xf32> to vector<1x2x6x1xf32>
    %cst_70 = arith.constant dense<0.000000e+00> : vector<1xf32>
    %227 = vector.multi_reduction <add>, %226, %cst_70 [1, 2, 3] : vector<1x2x6x1xf32> to vector<1xf32>
    %228 = vector.shape_cast %227 : vector<1xf32> to vector<1x1x1x1xf32>
    %229 = vector.extract %228[0, 0, 0, 0] : f32 from vector<1x1x1x1xf32>
    %cst_71 = arith.constant 0.000000e+00 : f32
    %230 = arith.addf %cst_71, %229 : f32
    %231 = vector.extract_strided_slice %225 {offsets = [0, 0, 0], sizes = [2, 1, 1], strides = [1, 1, 1]} : vector<2x6x1xf32> to vector<2x1x1xf32>
    %232 = vector.shape_cast %231 : vector<2x1x1xf32> to vector<1x2x1x1xf32>
    %cst_72 = arith.constant dense<0.000000e+00> : vector<1xf32>
    %233 = vector.multi_reduction <add>, %232, %cst_72 [1, 2, 3] : vector<1x2x1x1xf32> to vector<1xf32>
    %234 = vector.shape_cast %233 : vector<1xf32> to vector<1x1x1x1xf32>
    %235 = vector.extract %234[0, 0, 0, 0] : f32 from vector<1x1x1x1xf32>
    %236 = arith.subf %230, %235 : f32
    %237 = vector.extract_strided_slice %51 {offsets = [0, 1, 0], sizes = [2, 1, 4], strides = [1, 1, 1]} : vector<2x6x4xf32> to vector<2x1x4xf32>
    %238 = vector.broadcast %237 : vector<2x1x4xf32> to vector<2x6x4xf32>
    %239 = arith.mulf %51, %238 : vector<2x6x4xf32>
    %cst_73 = arith.constant dense<0.000000e+00> : vector<2x6xf32>
    %240 = vector.multi_reduction <add>, %239, %cst_73 [2] : vector<2x6x4xf32> to vector<2x6xf32>
    %241 = vector.shape_cast %240 : vector<2x6xf32> to vector<2x6x1xf32>
    %cst_74 = arith.constant 2.000000e+00 : f32
    %242 = vector.broadcast %cst_74 : f32 to vector<2x6x1xf32>
    %243 = arith.mulf %242, %241 : vector<2x6x1xf32>
    %244 = vector.extract_strided_slice %211 {offsets = [0, 1, 0], sizes = [2, 1, 1], strides = [1, 1, 1]} : vector<2x6x1xf32> to vector<2x1x1xf32>
    %245 = vector.broadcast %244 : vector<2x1x1xf32> to vector<2x6x1xf32>
    %246 = arith.addf %211, %245 : vector<2x6x1xf32>
    %cst_75 = arith.constant 2.000000e+00 : f32
    %cst_76 = arith.constant 9.99999996E-13 : f32
    %247 = arith.mulf %cst_75, %cst_76 : f32
    %248 = vector.broadcast %247 : f32 to vector<2x6x1xf32>
    %249 = arith.addf %246, %248 : vector<2x6x1xf32>
    %250 = arith.divf %243, %249 : vector<2x6x1xf32>
    %251 = vector.shape_cast %250 : vector<2x6x1xf32> to vector<1x2x6x1xf32>
    %cst_77 = arith.constant dense<0.000000e+00> : vector<1xf32>
    %252 = vector.multi_reduction <add>, %251, %cst_77 [1, 2, 3] : vector<1x2x6x1xf32> to vector<1xf32>
    %253 = vector.shape_cast %252 : vector<1xf32> to vector<1x1x1x1xf32>
    %254 = vector.extract %253[0, 0, 0, 0] : f32 from vector<1x1x1x1xf32>
    %255 = arith.addf %236, %254 : f32
    %256 = vector.extract_strided_slice %250 {offsets = [0, 1, 0], sizes = [2, 1, 1], strides = [1, 1, 1]} : vector<2x6x1xf32> to vector<2x1x1xf32>
    %257 = vector.shape_cast %256 : vector<2x1x1xf32> to vector<1x2x1x1xf32>
    %cst_78 = arith.constant dense<0.000000e+00> : vector<1xf32>
    %258 = vector.multi_reduction <add>, %257, %cst_78 [1, 2, 3] : vector<1x2x1x1xf32> to vector<1xf32>
    %259 = vector.shape_cast %258 : vector<1xf32> to vector<1x1x1x1xf32>
    %260 = vector.extract %259[0, 0, 0, 0] : f32 from vector<1x1x1x1xf32>
    %261 = arith.subf %255, %260 : f32
    %262 = vector.extract_strided_slice %51 {offsets = [0, 2, 0], sizes = [2, 1, 4], strides = [1, 1, 1]} : vector<2x6x4xf32> to vector<2x1x4xf32>
    %263 = vector.broadcast %262 : vector<2x1x4xf32> to vector<2x6x4xf32>
    %264 = arith.mulf %51, %263 : vector<2x6x4xf32>
    %cst_79 = arith.constant dense<0.000000e+00> : vector<2x6xf32>
    %265 = vector.multi_reduction <add>, %264, %cst_79 [2] : vector<2x6x4xf32> to vector<2x6xf32>
    %266 = vector.shape_cast %265 : vector<2x6xf32> to vector<2x6x1xf32>
    %cst_80 = arith.constant 2.000000e+00 : f32
    %267 = vector.broadcast %cst_80 : f32 to vector<2x6x1xf32>
    %268 = arith.mulf %267, %266 : vector<2x6x1xf32>
    %269 = vector.extract_strided_slice %211 {offsets = [0, 2, 0], sizes = [2, 1, 1], strides = [1, 1, 1]} : vector<2x6x1xf32> to vector<2x1x1xf32>
    %270 = vector.broadcast %269 : vector<2x1x1xf32> to vector<2x6x1xf32>
    %271 = arith.addf %211, %270 : vector<2x6x1xf32>
    %cst_81 = arith.constant 2.000000e+00 : f32
    %cst_82 = arith.constant 9.99999996E-13 : f32
    %272 = arith.mulf %cst_81, %cst_82 : f32
    %273 = vector.broadcast %272 : f32 to vector<2x6x1xf32>
    %274 = arith.addf %271, %273 : vector<2x6x1xf32>
    %275 = arith.divf %268, %274 : vector<2x6x1xf32>
    %276 = vector.shape_cast %275 : vector<2x6x1xf32> to vector<1x2x6x1xf32>
    %cst_83 = arith.constant dense<0.000000e+00> : vector<1xf32>
    %277 = vector.multi_reduction <add>, %276, %cst_83 [1, 2, 3] : vector<1x2x6x1xf32> to vector<1xf32>
    %278 = vector.shape_cast %277 : vector<1xf32> to vector<1x1x1x1xf32>
    %279 = vector.extract %278[0, 0, 0, 0] : f32 from vector<1x1x1x1xf32>
    %280 = arith.addf %261, %279 : f32
    %281 = vector.extract_strided_slice %275 {offsets = [0, 2, 0], sizes = [2, 1, 1], strides = [1, 1, 1]} : vector<2x6x1xf32> to vector<2x1x1xf32>
    %282 = vector.shape_cast %281 : vector<2x1x1xf32> to vector<1x2x1x1xf32>
    %cst_84 = arith.constant dense<0.000000e+00> : vector<1xf32>
    %283 = vector.multi_reduction <add>, %282, %cst_84 [1, 2, 3] : vector<1x2x1x1xf32> to vector<1xf32>
    %284 = vector.shape_cast %283 : vector<1xf32> to vector<1x1x1x1xf32>
    %285 = vector.extract %284[0, 0, 0, 0] : f32 from vector<1x1x1x1xf32>
    %286 = arith.subf %280, %285 : f32
    %287 = vector.extract_strided_slice %51 {offsets = [0, 3, 0], sizes = [2, 1, 4], strides = [1, 1, 1]} : vector<2x6x4xf32> to vector<2x1x4xf32>
    %288 = vector.broadcast %287 : vector<2x1x4xf32> to vector<2x6x4xf32>
    %289 = arith.mulf %51, %288 : vector<2x6x4xf32>
    %cst_85 = arith.constant dense<0.000000e+00> : vector<2x6xf32>
    %290 = vector.multi_reduction <add>, %289, %cst_85 [2] : vector<2x6x4xf32> to vector<2x6xf32>
    %291 = vector.shape_cast %290 : vector<2x6xf32> to vector<2x6x1xf32>
    %cst_86 = arith.constant 2.000000e+00 : f32
    %292 = vector.broadcast %cst_86 : f32 to vector<2x6x1xf32>
    %293 = arith.mulf %292, %291 : vector<2x6x1xf32>
    %294 = vector.extract_strided_slice %211 {offsets = [0, 3, 0], sizes = [2, 1, 1], strides = [1, 1, 1]} : vector<2x6x1xf32> to vector<2x1x1xf32>
    %295 = vector.broadcast %294 : vector<2x1x1xf32> to vector<2x6x1xf32>
    %296 = arith.addf %211, %295 : vector<2x6x1xf32>
    %cst_87 = arith.constant 2.000000e+00 : f32
    %cst_88 = arith.constant 9.99999996E-13 : f32
    %297 = arith.mulf %cst_87, %cst_88 : f32
    %298 = vector.broadcast %297 : f32 to vector<2x6x1xf32>
    %299 = arith.addf %296, %298 : vector<2x6x1xf32>
    %300 = arith.divf %293, %299 : vector<2x6x1xf32>
    %301 = vector.shape_cast %300 : vector<2x6x1xf32> to vector<1x2x6x1xf32>
    %cst_89 = arith.constant dense<0.000000e+00> : vector<1xf32>
    %302 = vector.multi_reduction <add>, %301, %cst_89 [1, 2, 3] : vector<1x2x6x1xf32> to vector<1xf32>
    %303 = vector.shape_cast %302 : vector<1xf32> to vector<1x1x1x1xf32>
    %304 = vector.extract %303[0, 0, 0, 0] : f32 from vector<1x1x1x1xf32>
    %305 = arith.addf %286, %304 : f32
    %306 = vector.extract_strided_slice %300 {offsets = [0, 3, 0], sizes = [2, 1, 1], strides = [1, 1, 1]} : vector<2x6x1xf32> to vector<2x1x1xf32>
    %307 = vector.shape_cast %306 : vector<2x1x1xf32> to vector<1x2x1x1xf32>
    %cst_90 = arith.constant dense<0.000000e+00> : vector<1xf32>
    %308 = vector.multi_reduction <add>, %307, %cst_90 [1, 2, 3] : vector<1x2x1x1xf32> to vector<1xf32>
    %309 = vector.shape_cast %308 : vector<1xf32> to vector<1x1x1x1xf32>
    %310 = vector.extract %309[0, 0, 0, 0] : f32 from vector<1x1x1x1xf32>
    %311 = arith.subf %305, %310 : f32
    %312 = vector.extract_strided_slice %51 {offsets = [0, 4, 0], sizes = [2, 1, 4], strides = [1, 1, 1]} : vector<2x6x4xf32> to vector<2x1x4xf32>
    %313 = vector.broadcast %312 : vector<2x1x4xf32> to vector<2x6x4xf32>
    %314 = arith.mulf %51, %313 : vector<2x6x4xf32>
    %cst_91 = arith.constant dense<0.000000e+00> : vector<2x6xf32>
    %315 = vector.multi_reduction <add>, %314, %cst_91 [2] : vector<2x6x4xf32> to vector<2x6xf32>
    %316 = vector.shape_cast %315 : vector<2x6xf32> to vector<2x6x1xf32>
    %cst_92 = arith.constant 2.000000e+00 : f32
    %317 = vector.broadcast %cst_92 : f32 to vector<2x6x1xf32>
    %318 = arith.mulf %317, %316 : vector<2x6x1xf32>
    %319 = vector.extract_strided_slice %211 {offsets = [0, 4, 0], sizes = [2, 1, 1], strides = [1, 1, 1]} : vector<2x6x1xf32> to vector<2x1x1xf32>
    %320 = vector.broadcast %319 : vector<2x1x1xf32> to vector<2x6x1xf32>
    %321 = arith.addf %211, %320 : vector<2x6x1xf32>
    %cst_93 = arith.constant 2.000000e+00 : f32
    %cst_94 = arith.constant 9.99999996E-13 : f32
    %322 = arith.mulf %cst_93, %cst_94 : f32
    %323 = vector.broadcast %322 : f32 to vector<2x6x1xf32>
    %324 = arith.addf %321, %323 : vector<2x6x1xf32>
    %325 = arith.divf %318, %324 : vector<2x6x1xf32>
    %326 = vector.shape_cast %325 : vector<2x6x1xf32> to vector<1x2x6x1xf32>
    %cst_95 = arith.constant dense<0.000000e+00> : vector<1xf32>
    %327 = vector.multi_reduction <add>, %326, %cst_95 [1, 2, 3] : vector<1x2x6x1xf32> to vector<1xf32>
    %328 = vector.shape_cast %327 : vector<1xf32> to vector<1x1x1x1xf32>
    %329 = vector.extract %328[0, 0, 0, 0] : f32 from vector<1x1x1x1xf32>
    %330 = arith.addf %311, %329 : f32
    %331 = vector.extract_strided_slice %325 {offsets = [0, 4, 0], sizes = [2, 1, 1], strides = [1, 1, 1]} : vector<2x6x1xf32> to vector<2x1x1xf32>
    %332 = vector.shape_cast %331 : vector<2x1x1xf32> to vector<1x2x1x1xf32>
    %cst_96 = arith.constant dense<0.000000e+00> : vector<1xf32>
    %333 = vector.multi_reduction <add>, %332, %cst_96 [1, 2, 3] : vector<1x2x1x1xf32> to vector<1xf32>
    %334 = vector.shape_cast %333 : vector<1xf32> to vector<1x1x1x1xf32>
    %335 = vector.extract %334[0, 0, 0, 0] : f32 from vector<1x1x1x1xf32>
    %336 = arith.subf %330, %335 : f32
    %337 = vector.extract_strided_slice %51 {offsets = [0, 5, 0], sizes = [2, 1, 4], strides = [1, 1, 1]} : vector<2x6x4xf32> to vector<2x1x4xf32>
    %338 = vector.broadcast %337 : vector<2x1x4xf32> to vector<2x6x4xf32>
    %339 = arith.mulf %51, %338 : vector<2x6x4xf32>
    %cst_97 = arith.constant dense<0.000000e+00> : vector<2x6xf32>
    %340 = vector.multi_reduction <add>, %339, %cst_97 [2] : vector<2x6x4xf32> to vector<2x6xf32>
    %341 = vector.shape_cast %340 : vector<2x6xf32> to vector<2x6x1xf32>
    %cst_98 = arith.constant 2.000000e+00 : f32
    %342 = vector.broadcast %cst_98 : f32 to vector<2x6x1xf32>
    %343 = arith.mulf %342, %341 : vector<2x6x1xf32>
    %344 = vector.extract_strided_slice %211 {offsets = [0, 5, 0], sizes = [2, 1, 1], strides = [1, 1, 1]} : vector<2x6x1xf32> to vector<2x1x1xf32>
    %345 = vector.broadcast %344 : vector<2x1x1xf32> to vector<2x6x1xf32>
    %346 = arith.addf %211, %345 : vector<2x6x1xf32>
    %cst_99 = arith.constant 2.000000e+00 : f32
    %cst_100 = arith.constant 9.99999996E-13 : f32
    %347 = arith.mulf %cst_99, %cst_100 : f32
    %348 = vector.broadcast %347 : f32 to vector<2x6x1xf32>
    %349 = arith.addf %346, %348 : vector<2x6x1xf32>
    %350 = arith.divf %343, %349 : vector<2x6x1xf32>
    %351 = vector.shape_cast %350 : vector<2x6x1xf32> to vector<1x2x6x1xf32>
    %cst_101 = arith.constant dense<0.000000e+00> : vector<1xf32>
    %352 = vector.multi_reduction <add>, %351, %cst_101 [1, 2, 3] : vector<1x2x6x1xf32> to vector<1xf32>
    %353 = vector.shape_cast %352 : vector<1xf32> to vector<1x1x1x1xf32>
    %354 = vector.extract %353[0, 0, 0, 0] : f32 from vector<1x1x1x1xf32>
    %355 = arith.addf %336, %354 : f32
    %356 = vector.extract_strided_slice %350 {offsets = [0, 5, 0], sizes = [2, 1, 1], strides = [1, 1, 1]} : vector<2x6x1xf32> to vector<2x1x1xf32>
    %357 = vector.shape_cast %356 : vector<2x1x1xf32> to vector<1x2x1x1xf32>
    %cst_102 = arith.constant dense<0.000000e+00> : vector<1xf32>
    %358 = vector.multi_reduction <add>, %357, %cst_102 [1, 2, 3] : vector<1x2x1x1xf32> to vector<1xf32>
    %359 = vector.shape_cast %358 : vector<1xf32> to vector<1x1x1x1xf32>
    %360 = vector.extract %359[0, 0, 0, 0] : f32 from vector<1x1x1x1xf32>
    %361 = arith.subf %355, %360 : f32
    %cst_103 = arith.constant 6.000000e+01 : f32
    %362 = arith.divf %361, %cst_103 : f32
    %363 = arith.mulf %95, %95 : vector<2x6x4xf32>
    %cst_104 = arith.constant dense<0.000000e+00> : vector<2x6xf32>
    %364 = vector.multi_reduction <add>, %363, %cst_104 [2] : vector<2x6x4xf32> to vector<2x6xf32>
    %365 = vector.shape_cast %364 : vector<2x6xf32> to vector<2x6x1xf32>
    %366 = vector.extract_strided_slice %95 {offsets = [0, 0, 0], sizes = [2, 1, 4], strides = [1, 1, 1]} : vector<2x6x4xf32> to vector<2x1x4xf32>
    %367 = vector.broadcast %366 : vector<2x1x4xf32> to vector<2x6x4xf32>
    %368 = arith.mulf %95, %367 : vector<2x6x4xf32>
    %cst_105 = arith.constant dense<0.000000e+00> : vector<2x6xf32>
    %369 = vector.multi_reduction <add>, %368, %cst_105 [2] : vector<2x6x4xf32> to vector<2x6xf32>
    %370 = vector.shape_cast %369 : vector<2x6xf32> to vector<2x6x1xf32>
    %cst_106 = arith.constant 2.000000e+00 : f32
    %371 = vector.broadcast %cst_106 : f32 to vector<2x6x1xf32>
    %372 = arith.mulf %371, %370 : vector<2x6x1xf32>
    %373 = vector.extract_strided_slice %365 {offsets = [0, 0, 0], sizes = [2, 1, 1], strides = [1, 1, 1]} : vector<2x6x1xf32> to vector<2x1x1xf32>
    %374 = vector.broadcast %373 : vector<2x1x1xf32> to vector<2x6x1xf32>
    %375 = arith.addf %365, %374 : vector<2x6x1xf32>
    %cst_107 = arith.constant 2.000000e+00 : f32
    %cst_108 = arith.constant 9.99999996E-13 : f32
    %376 = arith.mulf %cst_107, %cst_108 : f32
    %377 = vector.broadcast %376 : f32 to vector<2x6x1xf32>
    %378 = arith.addf %375, %377 : vector<2x6x1xf32>
    %379 = arith.divf %372, %378 : vector<2x6x1xf32>
    %380 = vector.shape_cast %379 : vector<2x6x1xf32> to vector<1x2x6x1xf32>
    %cst_109 = arith.constant dense<0.000000e+00> : vector<1xf32>
    %381 = vector.multi_reduction <add>, %380, %cst_109 [1, 2, 3] : vector<1x2x6x1xf32> to vector<1xf32>
    %382 = vector.shape_cast %381 : vector<1xf32> to vector<1x1x1x1xf32>
    %383 = vector.extract %382[0, 0, 0, 0] : f32 from vector<1x1x1x1xf32>
    %cst_110 = arith.constant 0.000000e+00 : f32
    %384 = arith.addf %cst_110, %383 : f32
    %385 = vector.extract_strided_slice %379 {offsets = [0, 0, 0], sizes = [2, 1, 1], strides = [1, 1, 1]} : vector<2x6x1xf32> to vector<2x1x1xf32>
    %386 = vector.shape_cast %385 : vector<2x1x1xf32> to vector<1x2x1x1xf32>
    %cst_111 = arith.constant dense<0.000000e+00> : vector<1xf32>
    %387 = vector.multi_reduction <add>, %386, %cst_111 [1, 2, 3] : vector<1x2x1x1xf32> to vector<1xf32>
    %388 = vector.shape_cast %387 : vector<1xf32> to vector<1x1x1x1xf32>
    %389 = vector.extract %388[0, 0, 0, 0] : f32 from vector<1x1x1x1xf32>
    %390 = arith.subf %384, %389 : f32
    %391 = vector.extract_strided_slice %95 {offsets = [0, 1, 0], sizes = [2, 1, 4], strides = [1, 1, 1]} : vector<2x6x4xf32> to vector<2x1x4xf32>
    %392 = vector.broadcast %391 : vector<2x1x4xf32> to vector<2x6x4xf32>
    %393 = arith.mulf %95, %392 : vector<2x6x4xf32>
    %cst_112 = arith.constant dense<0.000000e+00> : vector<2x6xf32>
    %394 = vector.multi_reduction <add>, %393, %cst_112 [2] : vector<2x6x4xf32> to vector<2x6xf32>
    %395 = vector.shape_cast %394 : vector<2x6xf32> to vector<2x6x1xf32>
    %cst_113 = arith.constant 2.000000e+00 : f32
    %396 = vector.broadcast %cst_113 : f32 to vector<2x6x1xf32>
    %397 = arith.mulf %396, %395 : vector<2x6x1xf32>
    %398 = vector.extract_strided_slice %365 {offsets = [0, 1, 0], sizes = [2, 1, 1], strides = [1, 1, 1]} : vector<2x6x1xf32> to vector<2x1x1xf32>
    %399 = vector.broadcast %398 : vector<2x1x1xf32> to vector<2x6x1xf32>
    %400 = arith.addf %365, %399 : vector<2x6x1xf32>
    %cst_114 = arith.constant 2.000000e+00 : f32
    %cst_115 = arith.constant 9.99999996E-13 : f32
    %401 = arith.mulf %cst_114, %cst_115 : f32
    %402 = vector.broadcast %401 : f32 to vector<2x6x1xf32>
    %403 = arith.addf %400, %402 : vector<2x6x1xf32>
    %404 = arith.divf %397, %403 : vector<2x6x1xf32>
    %405 = vector.shape_cast %404 : vector<2x6x1xf32> to vector<1x2x6x1xf32>
    %cst_116 = arith.constant dense<0.000000e+00> : vector<1xf32>
    %406 = vector.multi_reduction <add>, %405, %cst_116 [1, 2, 3] : vector<1x2x6x1xf32> to vector<1xf32>
    %407 = vector.shape_cast %406 : vector<1xf32> to vector<1x1x1x1xf32>
    %408 = vector.extract %407[0, 0, 0, 0] : f32 from vector<1x1x1x1xf32>
    %409 = arith.addf %390, %408 : f32
    %410 = vector.extract_strided_slice %404 {offsets = [0, 1, 0], sizes = [2, 1, 1], strides = [1, 1, 1]} : vector<2x6x1xf32> to vector<2x1x1xf32>
    %411 = vector.shape_cast %410 : vector<2x1x1xf32> to vector<1x2x1x1xf32>
    %cst_117 = arith.constant dense<0.000000e+00> : vector<1xf32>
    %412 = vector.multi_reduction <add>, %411, %cst_117 [1, 2, 3] : vector<1x2x1x1xf32> to vector<1xf32>
    %413 = vector.shape_cast %412 : vector<1xf32> to vector<1x1x1x1xf32>
    %414 = vector.extract %413[0, 0, 0, 0] : f32 from vector<1x1x1x1xf32>
    %415 = arith.subf %409, %414 : f32
    %416 = vector.extract_strided_slice %95 {offsets = [0, 2, 0], sizes = [2, 1, 4], strides = [1, 1, 1]} : vector<2x6x4xf32> to vector<2x1x4xf32>
    %417 = vector.broadcast %416 : vector<2x1x4xf32> to vector<2x6x4xf32>
    %418 = arith.mulf %95, %417 : vector<2x6x4xf32>
    %cst_118 = arith.constant dense<0.000000e+00> : vector<2x6xf32>
    %419 = vector.multi_reduction <add>, %418, %cst_118 [2] : vector<2x6x4xf32> to vector<2x6xf32>
    %420 = vector.shape_cast %419 : vector<2x6xf32> to vector<2x6x1xf32>
    %cst_119 = arith.constant 2.000000e+00 : f32
    %421 = vector.broadcast %cst_119 : f32 to vector<2x6x1xf32>
    %422 = arith.mulf %421, %420 : vector<2x6x1xf32>
    %423 = vector.extract_strided_slice %365 {offsets = [0, 2, 0], sizes = [2, 1, 1], strides = [1, 1, 1]} : vector<2x6x1xf32> to vector<2x1x1xf32>
    %424 = vector.broadcast %423 : vector<2x1x1xf32> to vector<2x6x1xf32>
    %425 = arith.addf %365, %424 : vector<2x6x1xf32>
    %cst_120 = arith.constant 2.000000e+00 : f32
    %cst_121 = arith.constant 9.99999996E-13 : f32
    %426 = arith.mulf %cst_120, %cst_121 : f32
    %427 = vector.broadcast %426 : f32 to vector<2x6x1xf32>
    %428 = arith.addf %425, %427 : vector<2x6x1xf32>
    %429 = arith.divf %422, %428 : vector<2x6x1xf32>
    %430 = vector.shape_cast %429 : vector<2x6x1xf32> to vector<1x2x6x1xf32>
    %cst_122 = arith.constant dense<0.000000e+00> : vector<1xf32>
    %431 = vector.multi_reduction <add>, %430, %cst_122 [1, 2, 3] : vector<1x2x6x1xf32> to vector<1xf32>
    %432 = vector.shape_cast %431 : vector<1xf32> to vector<1x1x1x1xf32>
    %433 = vector.extract %432[0, 0, 0, 0] : f32 from vector<1x1x1x1xf32>
    %434 = arith.addf %415, %433 : f32
    %435 = vector.extract_strided_slice %429 {offsets = [0, 2, 0], sizes = [2, 1, 1], strides = [1, 1, 1]} : vector<2x6x1xf32> to vector<2x1x1xf32>
    %436 = vector.shape_cast %435 : vector<2x1x1xf32> to vector<1x2x1x1xf32>
    %cst_123 = arith.constant dense<0.000000e+00> : vector<1xf32>
    %437 = vector.multi_reduction <add>, %436, %cst_123 [1, 2, 3] : vector<1x2x1x1xf32> to vector<1xf32>
    %438 = vector.shape_cast %437 : vector<1xf32> to vector<1x1x1x1xf32>
    %439 = vector.extract %438[0, 0, 0, 0] : f32 from vector<1x1x1x1xf32>
    %440 = arith.subf %434, %439 : f32
    %441 = vector.extract_strided_slice %95 {offsets = [0, 3, 0], sizes = [2, 1, 4], strides = [1, 1, 1]} : vector<2x6x4xf32> to vector<2x1x4xf32>
    %442 = vector.broadcast %441 : vector<2x1x4xf32> to vector<2x6x4xf32>
    %443 = arith.mulf %95, %442 : vector<2x6x4xf32>
    %cst_124 = arith.constant dense<0.000000e+00> : vector<2x6xf32>
    %444 = vector.multi_reduction <add>, %443, %cst_124 [2] : vector<2x6x4xf32> to vector<2x6xf32>
    %445 = vector.shape_cast %444 : vector<2x6xf32> to vector<2x6x1xf32>
    %cst_125 = arith.constant 2.000000e+00 : f32
    %446 = vector.broadcast %cst_125 : f32 to vector<2x6x1xf32>
    %447 = arith.mulf %446, %445 : vector<2x6x1xf32>
    %448 = vector.extract_strided_slice %365 {offsets = [0, 3, 0], sizes = [2, 1, 1], strides = [1, 1, 1]} : vector<2x6x1xf32> to vector<2x1x1xf32>
    %449 = vector.broadcast %448 : vector<2x1x1xf32> to vector<2x6x1xf32>
    %450 = arith.addf %365, %449 : vector<2x6x1xf32>
    %cst_126 = arith.constant 2.000000e+00 : f32
    %cst_127 = arith.constant 9.99999996E-13 : f32
    %451 = arith.mulf %cst_126, %cst_127 : f32
    %452 = vector.broadcast %451 : f32 to vector<2x6x1xf32>
    %453 = arith.addf %450, %452 : vector<2x6x1xf32>
    %454 = arith.divf %447, %453 : vector<2x6x1xf32>
    %455 = vector.shape_cast %454 : vector<2x6x1xf32> to vector<1x2x6x1xf32>
    %cst_128 = arith.constant dense<0.000000e+00> : vector<1xf32>
    %456 = vector.multi_reduction <add>, %455, %cst_128 [1, 2, 3] : vector<1x2x6x1xf32> to vector<1xf32>
    %457 = vector.shape_cast %456 : vector<1xf32> to vector<1x1x1x1xf32>
    %458 = vector.extract %457[0, 0, 0, 0] : f32 from vector<1x1x1x1xf32>
    %459 = arith.addf %440, %458 : f32
    %460 = vector.extract_strided_slice %454 {offsets = [0, 3, 0], sizes = [2, 1, 1], strides = [1, 1, 1]} : vector<2x6x1xf32> to vector<2x1x1xf32>
    %461 = vector.shape_cast %460 : vector<2x1x1xf32> to vector<1x2x1x1xf32>
    %cst_129 = arith.constant dense<0.000000e+00> : vector<1xf32>
    %462 = vector.multi_reduction <add>, %461, %cst_129 [1, 2, 3] : vector<1x2x1x1xf32> to vector<1xf32>
    %463 = vector.shape_cast %462 : vector<1xf32> to vector<1x1x1x1xf32>
    %464 = vector.extract %463[0, 0, 0, 0] : f32 from vector<1x1x1x1xf32>
    %465 = arith.subf %459, %464 : f32
    %466 = vector.extract_strided_slice %95 {offsets = [0, 4, 0], sizes = [2, 1, 4], strides = [1, 1, 1]} : vector<2x6x4xf32> to vector<2x1x4xf32>
    %467 = vector.broadcast %466 : vector<2x1x4xf32> to vector<2x6x4xf32>
    %468 = arith.mulf %95, %467 : vector<2x6x4xf32>
    %cst_130 = arith.constant dense<0.000000e+00> : vector<2x6xf32>
    %469 = vector.multi_reduction <add>, %468, %cst_130 [2] : vector<2x6x4xf32> to vector<2x6xf32>
    %470 = vector.shape_cast %469 : vector<2x6xf32> to vector<2x6x1xf32>
    %cst_131 = arith.constant 2.000000e+00 : f32
    %471 = vector.broadcast %cst_131 : f32 to vector<2x6x1xf32>
    %472 = arith.mulf %471, %470 : vector<2x6x1xf32>
    %473 = vector.extract_strided_slice %365 {offsets = [0, 4, 0], sizes = [2, 1, 1], strides = [1, 1, 1]} : vector<2x6x1xf32> to vector<2x1x1xf32>
    %474 = vector.broadcast %473 : vector<2x1x1xf32> to vector<2x6x1xf32>
    %475 = arith.addf %365, %474 : vector<2x6x1xf32>
    %cst_132 = arith.constant 2.000000e+00 : f32
    %cst_133 = arith.constant 9.99999996E-13 : f32
    %476 = arith.mulf %cst_132, %cst_133 : f32
    %477 = vector.broadcast %476 : f32 to vector<2x6x1xf32>
    %478 = arith.addf %475, %477 : vector<2x6x1xf32>
    %479 = arith.divf %472, %478 : vector<2x6x1xf32>
    %480 = vector.shape_cast %479 : vector<2x6x1xf32> to vector<1x2x6x1xf32>
    %cst_134 = arith.constant dense<0.000000e+00> : vector<1xf32>
    %481 = vector.multi_reduction <add>, %480, %cst_134 [1, 2, 3] : vector<1x2x6x1xf32> to vector<1xf32>
    %482 = vector.shape_cast %481 : vector<1xf32> to vector<1x1x1x1xf32>
    %483 = vector.extract %482[0, 0, 0, 0] : f32 from vector<1x1x1x1xf32>
    %484 = arith.addf %465, %483 : f32
    %485 = vector.extract_strided_slice %479 {offsets = [0, 4, 0], sizes = [2, 1, 1], strides = [1, 1, 1]} : vector<2x6x1xf32> to vector<2x1x1xf32>
    %486 = vector.shape_cast %485 : vector<2x1x1xf32> to vector<1x2x1x1xf32>
    %cst_135 = arith.constant dense<0.000000e+00> : vector<1xf32>
    %487 = vector.multi_reduction <add>, %486, %cst_135 [1, 2, 3] : vector<1x2x1x1xf32> to vector<1xf32>
    %488 = vector.shape_cast %487 : vector<1xf32> to vector<1x1x1x1xf32>
    %489 = vector.extract %488[0, 0, 0, 0] : f32 from vector<1x1x1x1xf32>
    %490 = arith.subf %484, %489 : f32
    %491 = vector.extract_strided_slice %95 {offsets = [0, 5, 0], sizes = [2, 1, 4], strides = [1, 1, 1]} : vector<2x6x4xf32> to vector<2x1x4xf32>
    %492 = vector.broadcast %491 : vector<2x1x4xf32> to vector<2x6x4xf32>
    %493 = arith.mulf %95, %492 : vector<2x6x4xf32>
    %cst_136 = arith.constant dense<0.000000e+00> : vector<2x6xf32>
    %494 = vector.multi_reduction <add>, %493, %cst_136 [2] : vector<2x6x4xf32> to vector<2x6xf32>
    %495 = vector.shape_cast %494 : vector<2x6xf32> to vector<2x6x1xf32>
    %cst_137 = arith.constant 2.000000e+00 : f32
    %496 = vector.broadcast %cst_137 : f32 to vector<2x6x1xf32>
    %497 = arith.mulf %496, %495 : vector<2x6x1xf32>
    %498 = vector.extract_strided_slice %365 {offsets = [0, 5, 0], sizes = [2, 1, 1], strides = [1, 1, 1]} : vector<2x6x1xf32> to vector<2x1x1xf32>
    %499 = vector.broadcast %498 : vector<2x1x1xf32> to vector<2x6x1xf32>
    %500 = arith.addf %365, %499 : vector<2x6x1xf32>
    %cst_138 = arith.constant 2.000000e+00 : f32
    %cst_139 = arith.constant 9.99999996E-13 : f32
    %501 = arith.mulf %cst_138, %cst_139 : f32
    %502 = vector.broadcast %501 : f32 to vector<2x6x1xf32>
    %503 = arith.addf %500, %502 : vector<2x6x1xf32>
    %504 = arith.divf %497, %503 : vector<2x6x1xf32>
    %505 = vector.shape_cast %504 : vector<2x6x1xf32> to vector<1x2x6x1xf32>
    %cst_140 = arith.constant dense<0.000000e+00> : vector<1xf32>
    %506 = vector.multi_reduction <add>, %505, %cst_140 [1, 2, 3] : vector<1x2x6x1xf32> to vector<1xf32>
    %507 = vector.shape_cast %506 : vector<1xf32> to vector<1x1x1x1xf32>
    %508 = vector.extract %507[0, 0, 0, 0] : f32 from vector<1x1x1x1xf32>
    %509 = arith.addf %490, %508 : f32
    %510 = vector.extract_strided_slice %504 {offsets = [0, 5, 0], sizes = [2, 1, 1], strides = [1, 1, 1]} : vector<2x6x1xf32> to vector<2x1x1xf32>
    %511 = vector.shape_cast %510 : vector<2x1x1xf32> to vector<1x2x1x1xf32>
    %cst_141 = arith.constant dense<0.000000e+00> : vector<1xf32>
    %512 = vector.multi_reduction <add>, %511, %cst_141 [1, 2, 3] : vector<1x2x1x1xf32> to vector<1xf32>
    %513 = vector.shape_cast %512 : vector<1xf32> to vector<1x1x1x1xf32>
    %514 = vector.extract %513[0, 0, 0, 0] : f32 from vector<1x1x1x1xf32>
    %515 = arith.subf %509, %514 : f32
    %cst_142 = arith.constant 6.000000e+01 : f32
    %516 = arith.divf %515, %cst_142 : f32
    %517 = arith.addf %362, %516 : f32
    %518 = arith.mulf %141, %141 : vector<2x6x16xf32>
    %cst_143 = arith.constant dense<0.000000e+00> : vector<2x6xf32>
    %519 = vector.multi_reduction <add>, %518, %cst_143 [2] : vector<2x6x16xf32> to vector<2x6xf32>
    %520 = vector.shape_cast %519 : vector<2x6xf32> to vector<2x6x1xf32>
    %521 = vector.extract_strided_slice %141 {offsets = [0, 0, 0], sizes = [2, 1, 16], strides = [1, 1, 1]} : vector<2x6x16xf32> to vector<2x1x16xf32>
    %522 = vector.broadcast %521 : vector<2x1x16xf32> to vector<2x6x16xf32>
    %523 = arith.mulf %141, %522 : vector<2x6x16xf32>
    %cst_144 = arith.constant dense<0.000000e+00> : vector<2x6xf32>
    %524 = vector.multi_reduction <add>, %523, %cst_144 [2] : vector<2x6x16xf32> to vector<2x6xf32>
    %525 = vector.shape_cast %524 : vector<2x6xf32> to vector<2x6x1xf32>
    %cst_145 = arith.constant 2.000000e+00 : f32
    %526 = vector.broadcast %cst_145 : f32 to vector<2x6x1xf32>
    %527 = arith.mulf %526, %525 : vector<2x6x1xf32>
    %528 = vector.extract_strided_slice %520 {offsets = [0, 0, 0], sizes = [2, 1, 1], strides = [1, 1, 1]} : vector<2x6x1xf32> to vector<2x1x1xf32>
    %529 = vector.broadcast %528 : vector<2x1x1xf32> to vector<2x6x1xf32>
    %530 = arith.addf %520, %529 : vector<2x6x1xf32>
    %cst_146 = arith.constant 2.000000e+00 : f32
    %cst_147 = arith.constant 9.99999996E-13 : f32
    %531 = arith.mulf %cst_146, %cst_147 : f32
    %532 = vector.broadcast %531 : f32 to vector<2x6x1xf32>
    %533 = arith.addf %530, %532 : vector<2x6x1xf32>
    %534 = arith.divf %527, %533 : vector<2x6x1xf32>
    %535 = vector.shape_cast %534 : vector<2x6x1xf32> to vector<1x2x6x1xf32>
    %cst_148 = arith.constant dense<0.000000e+00> : vector<1xf32>
    %536 = vector.multi_reduction <add>, %535, %cst_148 [1, 2, 3] : vector<1x2x6x1xf32> to vector<1xf32>
    %537 = vector.shape_cast %536 : vector<1xf32> to vector<1x1x1x1xf32>
    %538 = vector.extract %537[0, 0, 0, 0] : f32 from vector<1x1x1x1xf32>
    %cst_149 = arith.constant 0.000000e+00 : f32
    %539 = arith.addf %cst_149, %538 : f32
    %540 = vector.extract_strided_slice %534 {offsets = [0, 0, 0], sizes = [2, 1, 1], strides = [1, 1, 1]} : vector<2x6x1xf32> to vector<2x1x1xf32>
    %541 = vector.shape_cast %540 : vector<2x1x1xf32> to vector<1x2x1x1xf32>
    %cst_150 = arith.constant dense<0.000000e+00> : vector<1xf32>
    %542 = vector.multi_reduction <add>, %541, %cst_150 [1, 2, 3] : vector<1x2x1x1xf32> to vector<1xf32>
    %543 = vector.shape_cast %542 : vector<1xf32> to vector<1x1x1x1xf32>
    %544 = vector.extract %543[0, 0, 0, 0] : f32 from vector<1x1x1x1xf32>
    %545 = arith.subf %539, %544 : f32
    %546 = vector.extract_strided_slice %141 {offsets = [0, 1, 0], sizes = [2, 1, 16], strides = [1, 1, 1]} : vector<2x6x16xf32> to vector<2x1x16xf32>
    %547 = vector.broadcast %546 : vector<2x1x16xf32> to vector<2x6x16xf32>
    %548 = arith.mulf %141, %547 : vector<2x6x16xf32>
    %cst_151 = arith.constant dense<0.000000e+00> : vector<2x6xf32>
    %549 = vector.multi_reduction <add>, %548, %cst_151 [2] : vector<2x6x16xf32> to vector<2x6xf32>
    %550 = vector.shape_cast %549 : vector<2x6xf32> to vector<2x6x1xf32>
    %cst_152 = arith.constant 2.000000e+00 : f32
    %551 = vector.broadcast %cst_152 : f32 to vector<2x6x1xf32>
    %552 = arith.mulf %551, %550 : vector<2x6x1xf32>
    %553 = vector.extract_strided_slice %520 {offsets = [0, 1, 0], sizes = [2, 1, 1], strides = [1, 1, 1]} : vector<2x6x1xf32> to vector<2x1x1xf32>
    %554 = vector.broadcast %553 : vector<2x1x1xf32> to vector<2x6x1xf32>
    %555 = arith.addf %520, %554 : vector<2x6x1xf32>
    %cst_153 = arith.constant 2.000000e+00 : f32
    %cst_154 = arith.constant 9.99999996E-13 : f32
    %556 = arith.mulf %cst_153, %cst_154 : f32
    %557 = vector.broadcast %556 : f32 to vector<2x6x1xf32>
    %558 = arith.addf %555, %557 : vector<2x6x1xf32>
    %559 = arith.divf %552, %558 : vector<2x6x1xf32>
    %560 = vector.shape_cast %559 : vector<2x6x1xf32> to vector<1x2x6x1xf32>
    %cst_155 = arith.constant dense<0.000000e+00> : vector<1xf32>
    %561 = vector.multi_reduction <add>, %560, %cst_155 [1, 2, 3] : vector<1x2x6x1xf32> to vector<1xf32>
    %562 = vector.shape_cast %561 : vector<1xf32> to vector<1x1x1x1xf32>
    %563 = vector.extract %562[0, 0, 0, 0] : f32 from vector<1x1x1x1xf32>
    %564 = arith.addf %545, %563 : f32
    %565 = vector.extract_strided_slice %559 {offsets = [0, 1, 0], sizes = [2, 1, 1], strides = [1, 1, 1]} : vector<2x6x1xf32> to vector<2x1x1xf32>
    %566 = vector.shape_cast %565 : vector<2x1x1xf32> to vector<1x2x1x1xf32>
    %cst_156 = arith.constant dense<0.000000e+00> : vector<1xf32>
    %567 = vector.multi_reduction <add>, %566, %cst_156 [1, 2, 3] : vector<1x2x1x1xf32> to vector<1xf32>
    %568 = vector.shape_cast %567 : vector<1xf32> to vector<1x1x1x1xf32>
    %569 = vector.extract %568[0, 0, 0, 0] : f32 from vector<1x1x1x1xf32>
    %570 = arith.subf %564, %569 : f32
    %571 = vector.extract_strided_slice %141 {offsets = [0, 2, 0], sizes = [2, 1, 16], strides = [1, 1, 1]} : vector<2x6x16xf32> to vector<2x1x16xf32>
    %572 = vector.broadcast %571 : vector<2x1x16xf32> to vector<2x6x16xf32>
    %573 = arith.mulf %141, %572 : vector<2x6x16xf32>
    %cst_157 = arith.constant dense<0.000000e+00> : vector<2x6xf32>
    %574 = vector.multi_reduction <add>, %573, %cst_157 [2] : vector<2x6x16xf32> to vector<2x6xf32>
    %575 = vector.shape_cast %574 : vector<2x6xf32> to vector<2x6x1xf32>
    %cst_158 = arith.constant 2.000000e+00 : f32
    %576 = vector.broadcast %cst_158 : f32 to vector<2x6x1xf32>
    %577 = arith.mulf %576, %575 : vector<2x6x1xf32>
    %578 = vector.extract_strided_slice %520 {offsets = [0, 2, 0], sizes = [2, 1, 1], strides = [1, 1, 1]} : vector<2x6x1xf32> to vector<2x1x1xf32>
    %579 = vector.broadcast %578 : vector<2x1x1xf32> to vector<2x6x1xf32>
    %580 = arith.addf %520, %579 : vector<2x6x1xf32>
    %cst_159 = arith.constant 2.000000e+00 : f32
    %cst_160 = arith.constant 9.99999996E-13 : f32
    %581 = arith.mulf %cst_159, %cst_160 : f32
    %582 = vector.broadcast %581 : f32 to vector<2x6x1xf32>
    %583 = arith.addf %580, %582 : vector<2x6x1xf32>
    %584 = arith.divf %577, %583 : vector<2x6x1xf32>
    %585 = vector.shape_cast %584 : vector<2x6x1xf32> to vector<1x2x6x1xf32>
    %cst_161 = arith.constant dense<0.000000e+00> : vector<1xf32>
    %586 = vector.multi_reduction <add>, %585, %cst_161 [1, 2, 3] : vector<1x2x6x1xf32> to vector<1xf32>
    %587 = vector.shape_cast %586 : vector<1xf32> to vector<1x1x1x1xf32>
    %588 = vector.extract %587[0, 0, 0, 0] : f32 from vector<1x1x1x1xf32>
    %589 = arith.addf %570, %588 : f32
    %590 = vector.extract_strided_slice %584 {offsets = [0, 2, 0], sizes = [2, 1, 1], strides = [1, 1, 1]} : vector<2x6x1xf32> to vector<2x1x1xf32>
    %591 = vector.shape_cast %590 : vector<2x1x1xf32> to vector<1x2x1x1xf32>
    %cst_162 = arith.constant dense<0.000000e+00> : vector<1xf32>
    %592 = vector.multi_reduction <add>, %591, %cst_162 [1, 2, 3] : vector<1x2x1x1xf32> to vector<1xf32>
    %593 = vector.shape_cast %592 : vector<1xf32> to vector<1x1x1x1xf32>
    %594 = vector.extract %593[0, 0, 0, 0] : f32 from vector<1x1x1x1xf32>
    %595 = arith.subf %589, %594 : f32
    %596 = vector.extract_strided_slice %141 {offsets = [0, 3, 0], sizes = [2, 1, 16], strides = [1, 1, 1]} : vector<2x6x16xf32> to vector<2x1x16xf32>
    %597 = vector.broadcast %596 : vector<2x1x16xf32> to vector<2x6x16xf32>
    %598 = arith.mulf %141, %597 : vector<2x6x16xf32>
    %cst_163 = arith.constant dense<0.000000e+00> : vector<2x6xf32>
    %599 = vector.multi_reduction <add>, %598, %cst_163 [2] : vector<2x6x16xf32> to vector<2x6xf32>
    %600 = vector.shape_cast %599 : vector<2x6xf32> to vector<2x6x1xf32>
    %cst_164 = arith.constant 2.000000e+00 : f32
    %601 = vector.broadcast %cst_164 : f32 to vector<2x6x1xf32>
    %602 = arith.mulf %601, %600 : vector<2x6x1xf32>
    %603 = vector.extract_strided_slice %520 {offsets = [0, 3, 0], sizes = [2, 1, 1], strides = [1, 1, 1]} : vector<2x6x1xf32> to vector<2x1x1xf32>
    %604 = vector.broadcast %603 : vector<2x1x1xf32> to vector<2x6x1xf32>
    %605 = arith.addf %520, %604 : vector<2x6x1xf32>
    %cst_165 = arith.constant 2.000000e+00 : f32
    %cst_166 = arith.constant 9.99999996E-13 : f32
    %606 = arith.mulf %cst_165, %cst_166 : f32
    %607 = vector.broadcast %606 : f32 to vector<2x6x1xf32>
    %608 = arith.addf %605, %607 : vector<2x6x1xf32>
    %609 = arith.divf %602, %608 : vector<2x6x1xf32>
    %610 = vector.shape_cast %609 : vector<2x6x1xf32> to vector<1x2x6x1xf32>
    %cst_167 = arith.constant dense<0.000000e+00> : vector<1xf32>
    %611 = vector.multi_reduction <add>, %610, %cst_167 [1, 2, 3] : vector<1x2x6x1xf32> to vector<1xf32>
    %612 = vector.shape_cast %611 : vector<1xf32> to vector<1x1x1x1xf32>
    %613 = vector.extract %612[0, 0, 0, 0] : f32 from vector<1x1x1x1xf32>
    %614 = arith.addf %595, %613 : f32
    %615 = vector.extract_strided_slice %609 {offsets = [0, 3, 0], sizes = [2, 1, 1], strides = [1, 1, 1]} : vector<2x6x1xf32> to vector<2x1x1xf32>
    %616 = vector.shape_cast %615 : vector<2x1x1xf32> to vector<1x2x1x1xf32>
    %cst_168 = arith.constant dense<0.000000e+00> : vector<1xf32>
    %617 = vector.multi_reduction <add>, %616, %cst_168 [1, 2, 3] : vector<1x2x1x1xf32> to vector<1xf32>
    %618 = vector.shape_cast %617 : vector<1xf32> to vector<1x1x1x1xf32>
    %619 = vector.extract %618[0, 0, 0, 0] : f32 from vector<1x1x1x1xf32>
    %620 = arith.subf %614, %619 : f32
    %621 = vector.extract_strided_slice %141 {offsets = [0, 4, 0], sizes = [2, 1, 16], strides = [1, 1, 1]} : vector<2x6x16xf32> to vector<2x1x16xf32>
    %622 = vector.broadcast %621 : vector<2x1x16xf32> to vector<2x6x16xf32>
    %623 = arith.mulf %141, %622 : vector<2x6x16xf32>
    %cst_169 = arith.constant dense<0.000000e+00> : vector<2x6xf32>
    %624 = vector.multi_reduction <add>, %623, %cst_169 [2] : vector<2x6x16xf32> to vector<2x6xf32>
    %625 = vector.shape_cast %624 : vector<2x6xf32> to vector<2x6x1xf32>
    %cst_170 = arith.constant 2.000000e+00 : f32
    %626 = vector.broadcast %cst_170 : f32 to vector<2x6x1xf32>
    %627 = arith.mulf %626, %625 : vector<2x6x1xf32>
    %628 = vector.extract_strided_slice %520 {offsets = [0, 4, 0], sizes = [2, 1, 1], strides = [1, 1, 1]} : vector<2x6x1xf32> to vector<2x1x1xf32>
    %629 = vector.broadcast %628 : vector<2x1x1xf32> to vector<2x6x1xf32>
    %630 = arith.addf %520, %629 : vector<2x6x1xf32>
    %cst_171 = arith.constant 2.000000e+00 : f32
    %cst_172 = arith.constant 9.99999996E-13 : f32
    %631 = arith.mulf %cst_171, %cst_172 : f32
    %632 = vector.broadcast %631 : f32 to vector<2x6x1xf32>
    %633 = arith.addf %630, %632 : vector<2x6x1xf32>
    %634 = arith.divf %627, %633 : vector<2x6x1xf32>
    %635 = vector.shape_cast %634 : vector<2x6x1xf32> to vector<1x2x6x1xf32>
    %cst_173 = arith.constant dense<0.000000e+00> : vector<1xf32>
    %636 = vector.multi_reduction <add>, %635, %cst_173 [1, 2, 3] : vector<1x2x6x1xf32> to vector<1xf32>
    %637 = vector.shape_cast %636 : vector<1xf32> to vector<1x1x1x1xf32>
    %638 = vector.extract %637[0, 0, 0, 0] : f32 from vector<1x1x1x1xf32>
    %639 = arith.addf %620, %638 : f32
    %640 = vector.extract_strided_slice %634 {offsets = [0, 4, 0], sizes = [2, 1, 1], strides = [1, 1, 1]} : vector<2x6x1xf32> to vector<2x1x1xf32>
    %641 = vector.shape_cast %640 : vector<2x1x1xf32> to vector<1x2x1x1xf32>
    %cst_174 = arith.constant dense<0.000000e+00> : vector<1xf32>
    %642 = vector.multi_reduction <add>, %641, %cst_174 [1, 2, 3] : vector<1x2x1x1xf32> to vector<1xf32>
    %643 = vector.shape_cast %642 : vector<1xf32> to vector<1x1x1x1xf32>
    %644 = vector.extract %643[0, 0, 0, 0] : f32 from vector<1x1x1x1xf32>
    %645 = arith.subf %639, %644 : f32
    %646 = vector.extract_strided_slice %141 {offsets = [0, 5, 0], sizes = [2, 1, 16], strides = [1, 1, 1]} : vector<2x6x16xf32> to vector<2x1x16xf32>
    %647 = vector.broadcast %646 : vector<2x1x16xf32> to vector<2x6x16xf32>
    %648 = arith.mulf %141, %647 : vector<2x6x16xf32>
    %cst_175 = arith.constant dense<0.000000e+00> : vector<2x6xf32>
    %649 = vector.multi_reduction <add>, %648, %cst_175 [2] : vector<2x6x16xf32> to vector<2x6xf32>
    %650 = vector.shape_cast %649 : vector<2x6xf32> to vector<2x6x1xf32>
    %cst_176 = arith.constant 2.000000e+00 : f32
    %651 = vector.broadcast %cst_176 : f32 to vector<2x6x1xf32>
    %652 = arith.mulf %651, %650 : vector<2x6x1xf32>
    %653 = vector.extract_strided_slice %520 {offsets = [0, 5, 0], sizes = [2, 1, 1], strides = [1, 1, 1]} : vector<2x6x1xf32> to vector<2x1x1xf32>
    %654 = vector.broadcast %653 : vector<2x1x1xf32> to vector<2x6x1xf32>
    %655 = arith.addf %520, %654 : vector<2x6x1xf32>
    %cst_177 = arith.constant 2.000000e+00 : f32
    %cst_178 = arith.constant 9.99999996E-13 : f32
    %656 = arith.mulf %cst_177, %cst_178 : f32
    %657 = vector.broadcast %656 : f32 to vector<2x6x1xf32>
    %658 = arith.addf %655, %657 : vector<2x6x1xf32>
    %659 = arith.divf %652, %658 : vector<2x6x1xf32>
    %660 = vector.shape_cast %659 : vector<2x6x1xf32> to vector<1x2x6x1xf32>
    %cst_179 = arith.constant dense<0.000000e+00> : vector<1xf32>
    %661 = vector.multi_reduction <add>, %660, %cst_179 [1, 2, 3] : vector<1x2x6x1xf32> to vector<1xf32>
    %662 = vector.shape_cast %661 : vector<1xf32> to vector<1x1x1x1xf32>
    %663 = vector.extract %662[0, 0, 0, 0] : f32 from vector<1x1x1x1xf32>
    %664 = arith.addf %645, %663 : f32
    %665 = vector.extract_strided_slice %659 {offsets = [0, 5, 0], sizes = [2, 1, 1], strides = [1, 1, 1]} : vector<2x6x1xf32> to vector<2x1x1xf32>
    %666 = vector.shape_cast %665 : vector<2x1x1xf32> to vector<1x2x1x1xf32>
    %cst_180 = arith.constant dense<0.000000e+00> : vector<1xf32>
    %667 = vector.multi_reduction <add>, %666, %cst_180 [1, 2, 3] : vector<1x2x1x1xf32> to vector<1xf32>
    %668 = vector.shape_cast %667 : vector<1xf32> to vector<1x1x1x1xf32>
    %669 = vector.extract %668[0, 0, 0, 0] : f32 from vector<1x1x1x1xf32>
    %670 = arith.subf %664, %669 : f32
    %cst_181 = arith.constant 6.000000e+01 : f32
    %671 = arith.divf %670, %cst_181 : f32
    %672 = arith.addf %517, %671 : f32
    %673 = arith.mulf %187, %187 : vector<2x6x64xf32>
    %cst_182 = arith.constant dense<0.000000e+00> : vector<2x6xf32>
    %674 = vector.multi_reduction <add>, %673, %cst_182 [2] : vector<2x6x64xf32> to vector<2x6xf32>
    %675 = vector.shape_cast %674 : vector<2x6xf32> to vector<2x6x1xf32>
    %676 = vector.extract_strided_slice %187 {offsets = [0, 0, 0], sizes = [2, 1, 64], strides = [1, 1, 1]} : vector<2x6x64xf32> to vector<2x1x64xf32>
    %677 = vector.broadcast %676 : vector<2x1x64xf32> to vector<2x6x64xf32>
    %678 = arith.mulf %187, %677 : vector<2x6x64xf32>
    %cst_183 = arith.constant dense<0.000000e+00> : vector<2x6xf32>
    %679 = vector.multi_reduction <add>, %678, %cst_183 [2] : vector<2x6x64xf32> to vector<2x6xf32>
    %680 = vector.shape_cast %679 : vector<2x6xf32> to vector<2x6x1xf32>
    %cst_184 = arith.constant 2.000000e+00 : f32
    %681 = vector.broadcast %cst_184 : f32 to vector<2x6x1xf32>
    %682 = arith.mulf %681, %680 : vector<2x6x1xf32>
    %683 = vector.extract_strided_slice %675 {offsets = [0, 0, 0], sizes = [2, 1, 1], strides = [1, 1, 1]} : vector<2x6x1xf32> to vector<2x1x1xf32>
    %684 = vector.broadcast %683 : vector<2x1x1xf32> to vector<2x6x1xf32>
    %685 = arith.addf %675, %684 : vector<2x6x1xf32>
    %cst_185 = arith.constant 2.000000e+00 : f32
    %cst_186 = arith.constant 9.99999996E-13 : f32
    %686 = arith.mulf %cst_185, %cst_186 : f32
    %687 = vector.broadcast %686 : f32 to vector<2x6x1xf32>
    %688 = arith.addf %685, %687 : vector<2x6x1xf32>
    %689 = arith.divf %682, %688 : vector<2x6x1xf32>
    %690 = vector.shape_cast %689 : vector<2x6x1xf32> to vector<1x2x6x1xf32>
    %cst_187 = arith.constant dense<0.000000e+00> : vector<1xf32>
    %691 = vector.multi_reduction <add>, %690, %cst_187 [1, 2, 3] : vector<1x2x6x1xf32> to vector<1xf32>
    %692 = vector.shape_cast %691 : vector<1xf32> to vector<1x1x1x1xf32>
    %693 = vector.extract %692[0, 0, 0, 0] : f32 from vector<1x1x1x1xf32>
    %cst_188 = arith.constant 0.000000e+00 : f32
    %694 = arith.addf %cst_188, %693 : f32
    %695 = vector.extract_strided_slice %689 {offsets = [0, 0, 0], sizes = [2, 1, 1], strides = [1, 1, 1]} : vector<2x6x1xf32> to vector<2x1x1xf32>
    %696 = vector.shape_cast %695 : vector<2x1x1xf32> to vector<1x2x1x1xf32>
    %cst_189 = arith.constant dense<0.000000e+00> : vector<1xf32>
    %697 = vector.multi_reduction <add>, %696, %cst_189 [1, 2, 3] : vector<1x2x1x1xf32> to vector<1xf32>
    %698 = vector.shape_cast %697 : vector<1xf32> to vector<1x1x1x1xf32>
    %699 = vector.extract %698[0, 0, 0, 0] : f32 from vector<1x1x1x1xf32>
    %700 = arith.subf %694, %699 : f32
    %701 = vector.extract_strided_slice %187 {offsets = [0, 1, 0], sizes = [2, 1, 64], strides = [1, 1, 1]} : vector<2x6x64xf32> to vector<2x1x64xf32>
    %702 = vector.broadcast %701 : vector<2x1x64xf32> to vector<2x6x64xf32>
    %703 = arith.mulf %187, %702 : vector<2x6x64xf32>
    %cst_190 = arith.constant dense<0.000000e+00> : vector<2x6xf32>
    %704 = vector.multi_reduction <add>, %703, %cst_190 [2] : vector<2x6x64xf32> to vector<2x6xf32>
    %705 = vector.shape_cast %704 : vector<2x6xf32> to vector<2x6x1xf32>
    %cst_191 = arith.constant 2.000000e+00 : f32
    %706 = vector.broadcast %cst_191 : f32 to vector<2x6x1xf32>
    %707 = arith.mulf %706, %705 : vector<2x6x1xf32>
    %708 = vector.extract_strided_slice %675 {offsets = [0, 1, 0], sizes = [2, 1, 1], strides = [1, 1, 1]} : vector<2x6x1xf32> to vector<2x1x1xf32>
    %709 = vector.broadcast %708 : vector<2x1x1xf32> to vector<2x6x1xf32>
    %710 = arith.addf %675, %709 : vector<2x6x1xf32>
    %cst_192 = arith.constant 2.000000e+00 : f32
    %cst_193 = arith.constant 9.99999996E-13 : f32
    %711 = arith.mulf %cst_192, %cst_193 : f32
    %712 = vector.broadcast %711 : f32 to vector<2x6x1xf32>
    %713 = arith.addf %710, %712 : vector<2x6x1xf32>
    %714 = arith.divf %707, %713 : vector<2x6x1xf32>
    %715 = vector.shape_cast %714 : vector<2x6x1xf32> to vector<1x2x6x1xf32>
    %cst_194 = arith.constant dense<0.000000e+00> : vector<1xf32>
    %716 = vector.multi_reduction <add>, %715, %cst_194 [1, 2, 3] : vector<1x2x6x1xf32> to vector<1xf32>
    %717 = vector.shape_cast %716 : vector<1xf32> to vector<1x1x1x1xf32>
    %718 = vector.extract %717[0, 0, 0, 0] : f32 from vector<1x1x1x1xf32>
    %719 = arith.addf %700, %718 : f32
    %720 = vector.extract_strided_slice %714 {offsets = [0, 1, 0], sizes = [2, 1, 1], strides = [1, 1, 1]} : vector<2x6x1xf32> to vector<2x1x1xf32>
    %721 = vector.shape_cast %720 : vector<2x1x1xf32> to vector<1x2x1x1xf32>
    %cst_195 = arith.constant dense<0.000000e+00> : vector<1xf32>
    %722 = vector.multi_reduction <add>, %721, %cst_195 [1, 2, 3] : vector<1x2x1x1xf32> to vector<1xf32>
    %723 = vector.shape_cast %722 : vector<1xf32> to vector<1x1x1x1xf32>
    %724 = vector.extract %723[0, 0, 0, 0] : f32 from vector<1x1x1x1xf32>
    %725 = arith.subf %719, %724 : f32
    %726 = vector.extract_strided_slice %187 {offsets = [0, 2, 0], sizes = [2, 1, 64], strides = [1, 1, 1]} : vector<2x6x64xf32> to vector<2x1x64xf32>
    %727 = vector.broadcast %726 : vector<2x1x64xf32> to vector<2x6x64xf32>
    %728 = arith.mulf %187, %727 : vector<2x6x64xf32>
    %cst_196 = arith.constant dense<0.000000e+00> : vector<2x6xf32>
    %729 = vector.multi_reduction <add>, %728, %cst_196 [2] : vector<2x6x64xf32> to vector<2x6xf32>
    %730 = vector.shape_cast %729 : vector<2x6xf32> to vector<2x6x1xf32>
    %cst_197 = arith.constant 2.000000e+00 : f32
    %731 = vector.broadcast %cst_197 : f32 to vector<2x6x1xf32>
    %732 = arith.mulf %731, %730 : vector<2x6x1xf32>
    %733 = vector.extract_strided_slice %675 {offsets = [0, 2, 0], sizes = [2, 1, 1], strides = [1, 1, 1]} : vector<2x6x1xf32> to vector<2x1x1xf32>
    %734 = vector.broadcast %733 : vector<2x1x1xf32> to vector<2x6x1xf32>
    %735 = arith.addf %675, %734 : vector<2x6x1xf32>
    %cst_198 = arith.constant 2.000000e+00 : f32
    %cst_199 = arith.constant 9.99999996E-13 : f32
    %736 = arith.mulf %cst_198, %cst_199 : f32
    %737 = vector.broadcast %736 : f32 to vector<2x6x1xf32>
    %738 = arith.addf %735, %737 : vector<2x6x1xf32>
    %739 = arith.divf %732, %738 : vector<2x6x1xf32>
    %740 = vector.shape_cast %739 : vector<2x6x1xf32> to vector<1x2x6x1xf32>
    %cst_200 = arith.constant dense<0.000000e+00> : vector<1xf32>
    %741 = vector.multi_reduction <add>, %740, %cst_200 [1, 2, 3] : vector<1x2x6x1xf32> to vector<1xf32>
    %742 = vector.shape_cast %741 : vector<1xf32> to vector<1x1x1x1xf32>
    %743 = vector.extract %742[0, 0, 0, 0] : f32 from vector<1x1x1x1xf32>
    %744 = arith.addf %725, %743 : f32
    %745 = vector.extract_strided_slice %739 {offsets = [0, 2, 0], sizes = [2, 1, 1], strides = [1, 1, 1]} : vector<2x6x1xf32> to vector<2x1x1xf32>
    %746 = vector.shape_cast %745 : vector<2x1x1xf32> to vector<1x2x1x1xf32>
    %cst_201 = arith.constant dense<0.000000e+00> : vector<1xf32>
    %747 = vector.multi_reduction <add>, %746, %cst_201 [1, 2, 3] : vector<1x2x1x1xf32> to vector<1xf32>
    %748 = vector.shape_cast %747 : vector<1xf32> to vector<1x1x1x1xf32>
    %749 = vector.extract %748[0, 0, 0, 0] : f32 from vector<1x1x1x1xf32>
    %750 = arith.subf %744, %749 : f32
    %751 = vector.extract_strided_slice %187 {offsets = [0, 3, 0], sizes = [2, 1, 64], strides = [1, 1, 1]} : vector<2x6x64xf32> to vector<2x1x64xf32>
    %752 = vector.broadcast %751 : vector<2x1x64xf32> to vector<2x6x64xf32>
    %753 = arith.mulf %187, %752 : vector<2x6x64xf32>
    %cst_202 = arith.constant dense<0.000000e+00> : vector<2x6xf32>
    %754 = vector.multi_reduction <add>, %753, %cst_202 [2] : vector<2x6x64xf32> to vector<2x6xf32>
    %755 = vector.shape_cast %754 : vector<2x6xf32> to vector<2x6x1xf32>
    %cst_203 = arith.constant 2.000000e+00 : f32
    %756 = vector.broadcast %cst_203 : f32 to vector<2x6x1xf32>
    %757 = arith.mulf %756, %755 : vector<2x6x1xf32>
    %758 = vector.extract_strided_slice %675 {offsets = [0, 3, 0], sizes = [2, 1, 1], strides = [1, 1, 1]} : vector<2x6x1xf32> to vector<2x1x1xf32>
    %759 = vector.broadcast %758 : vector<2x1x1xf32> to vector<2x6x1xf32>
    %760 = arith.addf %675, %759 : vector<2x6x1xf32>
    %cst_204 = arith.constant 2.000000e+00 : f32
    %cst_205 = arith.constant 9.99999996E-13 : f32
    %761 = arith.mulf %cst_204, %cst_205 : f32
    %762 = vector.broadcast %761 : f32 to vector<2x6x1xf32>
    %763 = arith.addf %760, %762 : vector<2x6x1xf32>
    %764 = arith.divf %757, %763 : vector<2x6x1xf32>
    %765 = vector.shape_cast %764 : vector<2x6x1xf32> to vector<1x2x6x1xf32>
    %cst_206 = arith.constant dense<0.000000e+00> : vector<1xf32>
    %766 = vector.multi_reduction <add>, %765, %cst_206 [1, 2, 3] : vector<1x2x6x1xf32> to vector<1xf32>
    %767 = vector.shape_cast %766 : vector<1xf32> to vector<1x1x1x1xf32>
    %768 = vector.extract %767[0, 0, 0, 0] : f32 from vector<1x1x1x1xf32>
    %769 = arith.addf %750, %768 : f32
    %770 = vector.extract_strided_slice %764 {offsets = [0, 3, 0], sizes = [2, 1, 1], strides = [1, 1, 1]} : vector<2x6x1xf32> to vector<2x1x1xf32>
    %771 = vector.shape_cast %770 : vector<2x1x1xf32> to vector<1x2x1x1xf32>
    %cst_207 = arith.constant dense<0.000000e+00> : vector<1xf32>
    %772 = vector.multi_reduction <add>, %771, %cst_207 [1, 2, 3] : vector<1x2x1x1xf32> to vector<1xf32>
    %773 = vector.shape_cast %772 : vector<1xf32> to vector<1x1x1x1xf32>
    %774 = vector.extract %773[0, 0, 0, 0] : f32 from vector<1x1x1x1xf32>
    %775 = arith.subf %769, %774 : f32
    %776 = vector.extract_strided_slice %187 {offsets = [0, 4, 0], sizes = [2, 1, 64], strides = [1, 1, 1]} : vector<2x6x64xf32> to vector<2x1x64xf32>
    %777 = vector.broadcast %776 : vector<2x1x64xf32> to vector<2x6x64xf32>
    %778 = arith.mulf %187, %777 : vector<2x6x64xf32>
    %cst_208 = arith.constant dense<0.000000e+00> : vector<2x6xf32>
    %779 = vector.multi_reduction <add>, %778, %cst_208 [2] : vector<2x6x64xf32> to vector<2x6xf32>
    %780 = vector.shape_cast %779 : vector<2x6xf32> to vector<2x6x1xf32>
    %cst_209 = arith.constant 2.000000e+00 : f32
    %781 = vector.broadcast %cst_209 : f32 to vector<2x6x1xf32>
    %782 = arith.mulf %781, %780 : vector<2x6x1xf32>
    %783 = vector.extract_strided_slice %675 {offsets = [0, 4, 0], sizes = [2, 1, 1], strides = [1, 1, 1]} : vector<2x6x1xf32> to vector<2x1x1xf32>
    %784 = vector.broadcast %783 : vector<2x1x1xf32> to vector<2x6x1xf32>
    %785 = arith.addf %675, %784 : vector<2x6x1xf32>
    %cst_210 = arith.constant 2.000000e+00 : f32
    %cst_211 = arith.constant 9.99999996E-13 : f32
    %786 = arith.mulf %cst_210, %cst_211 : f32
    %787 = vector.broadcast %786 : f32 to vector<2x6x1xf32>
    %788 = arith.addf %785, %787 : vector<2x6x1xf32>
    %789 = arith.divf %782, %788 : vector<2x6x1xf32>
    %790 = vector.shape_cast %789 : vector<2x6x1xf32> to vector<1x2x6x1xf32>
    %cst_212 = arith.constant dense<0.000000e+00> : vector<1xf32>
    %791 = vector.multi_reduction <add>, %790, %cst_212 [1, 2, 3] : vector<1x2x6x1xf32> to vector<1xf32>
    %792 = vector.shape_cast %791 : vector<1xf32> to vector<1x1x1x1xf32>
    %793 = vector.extract %792[0, 0, 0, 0] : f32 from vector<1x1x1x1xf32>
    %794 = arith.addf %775, %793 : f32
    %795 = vector.extract_strided_slice %789 {offsets = [0, 4, 0], sizes = [2, 1, 1], strides = [1, 1, 1]} : vector<2x6x1xf32> to vector<2x1x1xf32>
    %796 = vector.shape_cast %795 : vector<2x1x1xf32> to vector<1x2x1x1xf32>
    %cst_213 = arith.constant dense<0.000000e+00> : vector<1xf32>
    %797 = vector.multi_reduction <add>, %796, %cst_213 [1, 2, 3] : vector<1x2x1x1xf32> to vector<1xf32>
    %798 = vector.shape_cast %797 : vector<1xf32> to vector<1x1x1x1xf32>
    %799 = vector.extract %798[0, 0, 0, 0] : f32 from vector<1x1x1x1xf32>
    %800 = arith.subf %794, %799 : f32
    %801 = vector.extract_strided_slice %187 {offsets = [0, 5, 0], sizes = [2, 1, 64], strides = [1, 1, 1]} : vector<2x6x64xf32> to vector<2x1x64xf32>
    %802 = vector.broadcast %801 : vector<2x1x64xf32> to vector<2x6x64xf32>
    %803 = arith.mulf %187, %802 : vector<2x6x64xf32>
    %cst_214 = arith.constant dense<0.000000e+00> : vector<2x6xf32>
    %804 = vector.multi_reduction <add>, %803, %cst_214 [2] : vector<2x6x64xf32> to vector<2x6xf32>
    %805 = vector.shape_cast %804 : vector<2x6xf32> to vector<2x6x1xf32>
    %cst_215 = arith.constant 2.000000e+00 : f32
    %806 = vector.broadcast %cst_215 : f32 to vector<2x6x1xf32>
    %807 = arith.mulf %806, %805 : vector<2x6x1xf32>
    %808 = vector.extract_strided_slice %675 {offsets = [0, 5, 0], sizes = [2, 1, 1], strides = [1, 1, 1]} : vector<2x6x1xf32> to vector<2x1x1xf32>
    %809 = vector.broadcast %808 : vector<2x1x1xf32> to vector<2x6x1xf32>
    %810 = arith.addf %675, %809 : vector<2x6x1xf32>
    %cst_216 = arith.constant 2.000000e+00 : f32
    %cst_217 = arith.constant 9.99999996E-13 : f32
    %811 = arith.mulf %cst_216, %cst_217 : f32
    %812 = vector.broadcast %811 : f32 to vector<2x6x1xf32>
    %813 = arith.addf %810, %812 : vector<2x6x1xf32>
    %814 = arith.divf %807, %813 : vector<2x6x1xf32>
    %815 = vector.shape_cast %814 : vector<2x6x1xf32> to vector<1x2x6x1xf32>
    %cst_218 = arith.constant dense<0.000000e+00> : vector<1xf32>
    %816 = vector.multi_reduction <add>, %815, %cst_218 [1, 2, 3] : vector<1x2x6x1xf32> to vector<1xf32>
    %817 = vector.shape_cast %816 : vector<1xf32> to vector<1x1x1x1xf32>
    %818 = vector.extract %817[0, 0, 0, 0] : f32 from vector<1x1x1x1xf32>
    %819 = arith.addf %800, %818 : f32
    %820 = vector.extract_strided_slice %814 {offsets = [0, 5, 0], sizes = [2, 1, 1], strides = [1, 1, 1]} : vector<2x6x1xf32> to vector<2x1x1xf32>
    %821 = vector.shape_cast %820 : vector<2x1x1xf32> to vector<1x2x1x1xf32>
    %cst_219 = arith.constant dense<0.000000e+00> : vector<1xf32>
    %822 = vector.multi_reduction <add>, %821, %cst_219 [1, 2, 3] : vector<1x2x1x1xf32> to vector<1xf32>
    %823 = vector.shape_cast %822 : vector<1xf32> to vector<1x1x1x1xf32>
    %824 = vector.extract %823[0, 0, 0, 0] : f32 from vector<1x1x1x1xf32>
    %825 = arith.subf %819, %824 : f32
    %cst_220 = arith.constant 6.000000e+01 : f32
    %826 = arith.divf %825, %cst_220 : f32
    %827 = arith.addf %672, %826 : f32
    %c0_221 = arith.constant 0 : index
    %c0_222 = arith.constant 0 : index
    %828 = memref.load %arg5[%c0_221, %c0_222] : memref<1x1xf32, #tpu.memory_space<smem>>
    memref.store %827, %arg5[%c0_221, %c0_222] : memref<1x1xf32, #tpu.memory_space<smem>>
    return
  }
}

</mosaic_0001>

<bundles_post_ra>
// kernel: mask_module_forward.1
= control target key start
LH: loop header
LB: loop body
LE: loop exit
PB: predicated region body
PF: predicated region fallthrough
CT: control target
= control target key end

     0   :  { %s4638_s0 = inlined_call_operand.vmem [shape: f32[4,6,4], index: 0, kind: input, shape index: {}]   ;;  %s4639_s1 = inlined_call_operand.vmem [shape: f32[2,4,256], index: 1, kind: input, shape index: {}]   ;;  %s4640_s2 = inlined_call_operand.hbm [shape: f32[256,256], index: 2, kind: input, shape index: {}]   ;;  %s4641_s3 = inlined_call_operand.hbm [shape: f32[256,256], index: 3, kind: input, shape index: {}]   ;;  %s4642_s4 = inlined_call_operand.vmem [shape: f32[2,4,256], index: 4, kind: output, shape index: {0}]   ;;  %s4643_s5 = inlined_call_operand.hbm [shape: f32[1,1], index: 5, kind: output, shape index: {1}]  }
   0x1   :  { %4645 = sst [smem:[#allocation14_spill]] %s4643_s5 }
   0x2   :  { %11 = vsyncpa [#allocation5], 0 }
   0x3   :  { %12 = vsyncpa [#allocation8], 0 }
   0x4   :  { %13 = vsyncpa [#allocation6], 0  ;;  %s3497_s18 = smov [#allocation4]   ;;  %s3437_s22 = scalar_lea.hbm %s4640_s2, 8192 }
   0x5   :  { %s23_s19 = sshll.u32 %s3497_s18, 4  ;;  %p3438_p0 = scmp.ne.s32.totalorder %s4640_s2, %s3437_s22  ;;  %s24_s19 = int_to_ptr.vmem [resolvable:$true] %s23_s19 }
   0x6   :  { %p3441_p1 = scmp.lt.u32.totalorder %s3437_s22, %s4640_s2 }
   0x8   :  { %p3443_p2 = pnand %p3441_p1, %p3438_p0 }
   0xa   :  { %3446 = shalt.err (!%p3443_p2)
}
   0xb   :  { %s3447_s27 = scalar_lea.vmem %s24_s19, 8192  ;;  %p3452_p4 = scmp.lt.s32.totalorder %s24_s19, %s24_s19 }
   0xc   :  { %p3448_p3 = scmp.ne.s32.totalorder %s24_s19, %s3447_s27  ;;  %p3453_p5 = scmp.lt.s32.totalorder %s3447_s27, %s3447_s27 }
   0xe   :  { %p3454_p6 = por %p3453_p5, %p3452_p4 }
  0x10   :  { %p3455_p7 = pnand %p3454_p6, %p3448_p3 }
  0x12   :  { %3458 = shalt.err (!%p3455_p7)
}
  0x13   :  { %s3498_s28 = smov 256   ;;  %s3499_s29 = smov 16  }
  0x14   :  { %29 = dma.hbm_to_vmem [thread:$0]  %s4640_s2, 8192, %s24_s19, [#allocation5], %s3498_s28, %s3498_s28, %s3499_s29  }
  0x15   :  { %s3500_s7 = smov [#allocation7]   ;;  %s3459_s11 = scalar_lea.hbm %s4641_s3, 8192 }
  0x16   :  { %s35_s8 = sshll.u32 %s3500_s7, 4  ;;  %p3460_p8 = scmp.ne.s32.totalorder %s4641_s3, %s3459_s11  ;;  %s36_s8 = int_to_ptr.vmem [resolvable:$true] %s35_s8 }
  0x17   :  { %p3463_p9 = scmp.lt.u32.totalorder %s3459_s11, %s4641_s3 }
  0x19   :  { %p3465_p10 = pnand %p3463_p9, %p3460_p8 }
  0x1b   :  { %3468 = shalt.err (!%p3465_p10)
}
  0x1c   :  { %s3469_s16 = scalar_lea.vmem %s36_s8, 8192  ;;  %p3474_p12 = scmp.lt.s32.totalorder %s36_s8, %s36_s8 }
  0x1d   :  { %p3470_p11 = scmp.ne.s32.totalorder %s36_s8, %s3469_s16  ;;  %p3475_p13 = scmp.lt.s32.totalorder %s3469_s16, %s3469_s16 }
  0x1f   :  { %p3476_p0 = por %p3475_p13, %p3474_p12 }
  0x21   :  { %p3477_p1 = pnand %p3476_p0, %p3470_p11 }
  0x23   :  { %3480 = shalt.err (!%p3477_p1)
}
  0x24   :  { %41 = dma.hbm_to_vmem [thread:$0]  %s4641_s3, 8192, %s36_s8, [#allocation8], %s3498_s28, %s3498_s28, %s3499_s29  }
  0x25   :  { %3491 = dma.done.wait [#allocation5], 8192  }
  0x26   :  { %3492 = vsyncadd [#allocation5], 4294959104 }
  0x27   :  { %3493 = dma.done.wait [#allocation8], 8192  }
  0x28   :  { %3494 = vsyncadd [#allocation8], 4294959104  ;;  %v3501_v0 = vmov 1   ;;  %v3502_v1 = vmov 2   ;;  %v49_v2 = vld [vmem:[#allocation4 + $0x8] sm:$0xff]  ;;  %v51_v3 = vld [vmem:[#allocation4 + $0x18] sm:$0xff] }
  0x29   :  { %3296 = vset.pattern.permute.xlu0 %v3501_v0  ;;  %3297 = vset.pattern.permute.xlu1 %v3502_v1  ;;  %v48_v4 = vld [vmem:[#allocation4] sm:$0xff]  ;;  %v2926_v5 = vpack.c.bf16 %v51_v3, %v49_v2  ;;  %v50_v6 = vld [vmem:[#allocation4 + $0x10] sm:$0xff]  ;;  %v53_v7 = vld [vmem:[#allocation4 + $0x28] sm:$0xff]  ;;  %v3503_v57 = vmov 3   ;;  %v3504_v2 = vmov 0   ;;  %s3506_s28 = smov 120  }
  0x2a   :  { %v55_v8 = vld [vmem:[#allocation4 + $0x38] sm:$0xff]  ;;  %v2928_v9 = vpack.c.bf16 %v50_v6, %v48_v4  ;;  %v52_v11 = vld [vmem:[#allocation4 + $0x20] sm:$0xff]  ;;  %v54_v12 = vld [vmem:[#allocation4 + $0x30] sm:$0xff]  ;;  %s3507_s30 = smov 112   ;;  %s3508_s6 = smov 96   ;;  %vm357_vm0 = vcmask 29696  }
  0x2b   :  { %v2930_v10 = vpack.c.bf16 %v55_v8, %v53_v7  ;;  %v57_v13 = vld [vmem:[#allocation4 + $0x48] sm:$0xff]  ;;  %2927 = vmatprep.subr.bf16.mxu0 %v2926_v5  ;;  %2991 = vmatprep.subr.bf16.mxu1 %v2926_v5  ;;  %v59_v14 = vld [vmem:[#allocation4 + $0x58] sm:$0xff]  ;;  %v2932_v15 = vpack.c.bf16 %v54_v12, %v52_v11  ;;  %v56_v17 = vld [vmem:[#allocation4 + $0x40] sm:$0xff]  ;;  %s3509_s7 = smov 64   ;;  %vm716_vm2 = vcmask 523264   ;;  %vm473_vm3 = vcmask 62496  }
  0x2c   :  { %2929 = vmatpush1.bf16.msra.mxu0 %v2928_v9  ;;  %2993 = vmatpush1.bf16.msra.mxu1 %v2928_v9  ;;  %v2934_v16 = vpack.c.bf16 %v59_v14, %v57_v13  ;;  %v58_v18 = vld [vmem:[#allocation4 + $0x50] sm:$0xff]  ;;  %v61_v19 = vld [vmem:[#allocation4 + $0x68] sm:$0xff]  ;;  %v63_v20 = vld [vmem:[#allocation4 + $0x78] sm:$0xff]  ;;  %vm638_vm4 = vcmask 259200   ;;  %vm806_vm8 = vcmask 1046016   ;;  %s3511_s8 = smov 4  }
  0x2d   :  { %2931 = vmatprep.subr.bf16.mxu0 %v2930_v10  ;;  %2995 = vmatprep.subr.bf16.mxu1 %v2930_v10  ;;  %v2936_v21 = vpack.c.bf16 %v58_v18, %v56_v17  ;;  %v2938_v22 = vpack.c.bf16 %v63_v20, %v61_v19  ;;  %v60_v23 = vld [vmem:[#allocation4 + $0x60] sm:$0xff]  ;;  %v62_v24 = vld [vmem:[#allocation4 + $0x70] sm:$0xff]  ;;  %v65_v25 = vld [vmem:[#allocation4 + $0x88] sm:$0xff]  ;;  %s3512_s9 = smov 8   ;;  %s3513_s10 = smov 32   ;;  %vm1172_vm9 = vcmask 0  }
  0x2e   :  { %v67_v26 = vld [vmem:[#allocation4 + $0x98] sm:$0xff]  ;;  %v2940_v27 = vpack.c.bf16 %v62_v24, %v60_v23  ;;  %v64_v29 = vld [vmem:[#allocation4 + $0x80] sm:$0xff]  ;;  %v66_v30 = vld [vmem:[#allocation4 + $0x90] sm:$0xff]  ;;  %vm1158_vm10 = vcmask 5120  }
  0x2f   :  { %v2942_v28 = vpack.c.bf16 %v67_v26, %v65_v25  ;;  %v69_v31 = vld [vmem:[#allocation4 + $0xa8] sm:$0xff]  ;;  %v71_v32 = vld [vmem:[#allocation4 + $0xb8] sm:$0xff]  ;;  %v2944_v33 = vpack.c.bf16 %v66_v30, %v64_v29  ;;  %v68_v35 = vld [vmem:[#allocation4 + $0xa0] sm:$0xff] }
  0x30   :  { %2933 = vmatpush1.bf16.msra.mxu0 %v2932_v15  ;;  %2997 = vmatpush1.bf16.msra.mxu1 %v2932_v15  ;;  %v2946_v34 = vpack.c.bf16 %v71_v32, %v69_v31  ;;  %v70_v36 = vld [vmem:[#allocation4 + $0xb0] sm:$0xff]  ;;  %v73_v37 = vld [vmem:[#allocation4 + $0xc8] sm:$0xff]  ;;  %v75_v38 = vld [vmem:[#allocation4 + $0xd8] sm:$0xff] }
  0x31   :  { %2935 = vmatprep.subr.bf16.mxu0 %v2934_v16  ;;  %2999 = vmatprep.subr.bf16.mxu1 %v2934_v16  ;;  %v2948_v39 = vpack.c.bf16 %v70_v36, %v68_v35  ;;  %v72_v40 = vld [vmem:[#allocation4 + $0xc0] sm:$0xff]  ;;  %v2950_v41 = vpack.c.bf16 %v75_v38, %v73_v37  ;;  %v74_v42 = vld [vmem:[#allocation4 + $0xd0] sm:$0xff]  ;;  %v77_v45 = vld [vmem:[#allocation4 + $0xe8] sm:$0xff] }
  0x32   :  { %v3576_v43 = vld [vmem:[%s4639_s1] sm:$0xff]  ;;  %v3581_v44 = vld [vmem:[%s4639_s1 + $0x8] sm:$0xff]  ;;  %v2952_v50 = vpack.c.bf16 %v74_v42, %v72_v40  ;;  %v3593_v51 = vld [vmem:[%s4638_s0 + $0x18] sm:$0x3f] }
  0x33   :  { %v79_v46 = vld [vmem:[#allocation4 + $0xf8] sm:$0xff]  ;;  %v114_v47 = vcombine.high %v3576_v43, %v3576_v43  ;;  %v195_v48 = vcombine.high %v3581_v44, %v3581_v44  ;;  %v76_v53 = vld [vmem:[#allocation4 + $0xe0] sm:$0xff]  ;;  %v78_v54 = vld [vmem:[#allocation4 + $0xf0] sm:$0xff] }
  0x34   :  { %2937 = vmatpush1.bf16.msra.mxu0 %v2936_v21  ;;  %3001 = vmatpush1.bf16.msra.mxu1 %v2936_v21  ;;  %v276_v49 = vld [vmem:[%s4638_s0] sm:$0x3f]  ;;  %v2954_v52 = vpack.c.bf16 %v79_v46, %v77_v45  ;;  %v81_v55 = vld [vmem:[#allocation4 + $0x108] sm:$0xff]  ;;  %v2956_v58 = vpack.c.bf16 %v78_v54, %v76_v53  ;;  %v82_v61 = vld [vmem:[#allocation4 + $0x110] sm:$0xff] }
  0x35   :  { %2939 = vmatprep.subr.bf16.mxu0 %v2938_v22  ;;  %3003 = vmatprep.subr.bf16.mxu1 %v2938_v22  ;;  %v83_v56 = vld [vmem:[#allocation4 + $0x118] sm:$0xff]  ;;  %v80_v60 = vld [vmem:[#allocation4 + $0x100] sm:$0xff]  ;;  %v85_v62 = vld [vmem:[#allocation4 + $0x128] sm:$0xff] }
  0x36   :  { %298 = vperm.xlu0 %3296, %v276_v49   ;;  %314 = vperm.xlu1 %3297, %v276_v49   ;;  %v2958_v59 = vpack.c.bf16 %v83_v56, %v81_v55  ;;  %v87_v63 = vld [vmem:[#allocation4 + $0x138] sm:$0xff]  ;;  %v2960_v3 = vpack.c.bf16 %v82_v61, %v80_v60  ;;  %v84_v5 = vld [vmem:[#allocation4 + $0x120] sm:$0xff]  ;;  %v86_v6 = vld [vmem:[#allocation4 + $0x130] sm:$0xff] }
  0x37   :  { %180 = vmatprep.mubr.f32.mxu0 %v114_v47  ;;  %261 = vmatprep.mubr.f32.mxu1 %v195_v48  ;;  %v2962_v4 = vpack.c.bf16 %v87_v63, %v85_v62  ;;  %v89_v7 = vld [vmem:[#allocation4 + $0x148] sm:$0xff]  ;;  %v91_v8 = vld [vmem:[#allocation4 + $0x158] sm:$0xff]  ;;  %v2964_v10 = vpack.c.bf16 %v86_v6, %v84_v5  ;;  %v88_v12 = vld [vmem:[#allocation4 + $0x140] sm:$0xff] }
  0x38   :  { %2941 = vmatpush1.bf16.msra.mxu0 %v2940_v27  ;;  %3005 = vmatpush1.bf16.msra.mxu1 %v2940_v27  ;;  %v278_v9 = vld [vmem:[%s4638_s0 + $0x10] sm:$0x3f]  ;;  %v2966_v11 = vpack.c.bf16 %v91_v8, %v89_v7  ;;  %v95_v15 = vld [vmem:[#allocation4 + $0x178] sm:$0xff]  ;;  %v3604_v16 = vld [vmem:[%s4638_s0 + $0x8] sm:$0x3f]  ;;  %s3505_s0 = smov 124  }
  0x39   :  { %2943 = vmatprep.subr.bf16.mxu0 %v2942_v28  ;;  %3007 = vmatprep.subr.bf16.mxu1 %v2942_v28  ;;  %v90_v13 = vld [vmem:[#allocation4 + $0x150] sm:$0xff]  ;;  %v93_v14 = vld [vmem:[#allocation4 + $0x168] sm:$0xff]  ;;  %v92_v19 = vld [vmem:[#allocation4 + $0x160] sm:$0xff] }
  0x3a   :  { %414 = vperm.xlu0 %3296, %v3593_v51   ;;  %3298 = vset.pattern.permute.xlu1 %v3503_v57  ;;  %v2968_v17 = vpack.c.bf16 %v90_v13, %v88_v12  ;;  %v2970_v18 = vpack.c.bf16 %v95_v15, %v93_v14  ;;  %v94_v20 = vld [vmem:[#allocation4 + $0x170] sm:$0xff]  ;;  %v97_v21 = vld [vmem:[#allocation4 + $0x188] sm:$0xff]  ;;  %v99_v22 = vld [vmem:[#allocation4 + $0x198] sm:$0xff] }
  0x3b   :  { %330 = vperm.xlu1 %3298, %v276_v49   ;;  %v2972_v23 = vpack.c.bf16 %v94_v20, %v92_v19  ;;  %v2974_v24 = vpack.c.bf16 %v99_v22, %v97_v21  ;;  %v96_v25 = vld [vmem:[#allocation4 + $0x180] sm:$0xff]  ;;  %v98_v26 = vld [vmem:[#allocation4 + $0x190] sm:$0xff]  ;;  %v101_v27 = vld [vmem:[#allocation4 + $0x1a8] sm:$0xff] }
  0x3c   :  { %2945 = vmatpush1.bf16.msra.mxu0 %v2944_v33  ;;  %3009 = vmatpush1.bf16.msra.mxu1 %v2944_v33  ;;  %v103_v28 = vld [vmem:[#allocation4 + $0x1b8] sm:$0xff]  ;;  %v2976_v29 = vpack.c.bf16 %v98_v26, %v96_v25  ;;  %v100_v31 = vld [vmem:[#allocation4 + $0x1a0] sm:$0xff]  ;;  %v102_v32 = vld [vmem:[#allocation4 + $0x1b0] sm:$0xff] }
  0x3d   :  { %2947 = vmatprep.subr.bf16.mxu0 %v2946_v34  ;;  %3011 = vmatprep.subr.bf16.mxu1 %v2946_v34  ;;  %v2978_v30 = vpack.c.bf16 %v103_v28, %v101_v27  ;;  %v105_v33 = vld [vmem:[#allocation4 + $0x1c8] sm:$0xff]  ;;  %v107_v34 = vld [vmem:[#allocation4 + $0x1d8] sm:$0xff]  ;;  %v2980_v35 = vpack.c.bf16 %v102_v32, %v100_v31  ;;  %v104_v37 = vld [vmem:[#allocation4 + $0x1c0] sm:$0xff] }
  0x3e   :  { %3300 = vset.pattern.permute.xlu0 %v3504_v2  ;;  %v2982_v36 = vpack.c.bf16 %v107_v34, %v105_v33  ;;  %v106_v38 = vld [vmem:[#allocation4 + $0x1d0] sm:$0xff]  ;;  %v111_v40 = vld [vmem:[#allocation4 + $0x1f8] sm:$0xff]  ;;  %v108_v45 = vld [vmem:[#allocation4 + $0x1e0] sm:$0xff] }
  0x3f   :  { %282 = vperm.xlu0 %3300, %v276_v49   ;;  %3299 = vset.pattern.permute.xlu1 %v3504_v2  ;;  %v110_v46 = vld [vmem:[#allocation4 + $0x1f0] sm:$0xff]  ;;  %v285_v49 = vlaneseq }
  0x40   :  { %2949 = vmatpush1.bf16.msra.mxu0 %v2948_v39  ;;  %3013 = vmatpush1.bf16.msra.mxu1 %v2948_v39  ;;  %v109_v39 = vld [vmem:[#allocation4 + $0x1e8] sm:$0xff]  ;;  %v2988_v47 = vpack.c.bf16 %v110_v46, %v108_v45 }
  0x41   :  { %2951 = vmatprep.subr.bf16.mxu0 %v2950_v41  ;;  %3015 = vmatprep.subr.bf16.mxu1 %v2950_v41  ;;  %v2984_v41 = vpack.c.bf16 %v106_v38, %v104_v37  ;;  %v2986_v42 = vpack.c.bf16 %v111_v40, %v109_v39  ;;  %vm374_vm1 = vcmp.lt.s32.totalorder %v285_v49, 4  ;;  %vm3823_vm5 = vcmp.ge.s32.totalorder %v285_v49, 4 }
  0x42   :  { %398 = vperm.xlu1 %3299, %v3593_v51   ;;  %vm3839_vm6 = vcmp.lt.s32.totalorder %v285_v49, 8  ;;  %vm4062_vm11 = vcmp.ge.s32.totalorder %v285_v49, 8  ;;  %vm4067_vm12 = vcmp.lt.s32.totalorder %v285_v49, 12  ;;  %vm4073_vm13 = vcmp.ge.s32.totalorder %v285_v49, 12 }
  0x43   :  { %563 = vperm.xlu0 %3300, %v278_v9   ;;  %vm490_vm7 = vmand %vm3823_vm5, %vm3839_vm6  ;;  %vm4078_vm14 = vcmp.lt.s32.totalorder %v285_v49, 16  ;;  %vm4129_vm5 = vcmp.ge.s32.totalorder %v285_v49, 32  ;;  %vm4134_vm6 = vcmp.lt.s32.totalorder %v285_v49, 48 }
  0x44   :  { %2953 = vmatpush1.bf16.msra.mxu0 %v2952_v50  ;;  %3017 = vmatpush1.bf16.msra.mxu1 %v2952_v50  ;;  %vm531_vm15 = vmand %vm4062_vm11, %vm4067_vm12  ;;  %vm821_vm11 = vcmp.ge.s32.totalorder %v285_v49, 64  ;;  %vm822_vm12 = vcmp.lt.s32.totalorder %v285_v49, 128 }
  0x45   :  { %2955 = vmatprep.subr.bf16.mxu0 %v2954_v52  ;;  %3019 = vmatprep.subr.bf16.mxu1 %v2954_v52 }
  0x46   :  { %3301 = vset.pattern.permute.xlu1 %v3502_v1 }
  0x47   :  { %731 = vperm.xlu0 %3300, %v3604_v16   ;;  %430 = vperm.xlu1 %3301, %v3593_v51  }
  0x48   :  { %2957 = vmatpush1.bf16.msra.mxu0 %v2956_v58  ;;  %3021 = vmatpush1.bf16.msra.mxu1 %v2956_v58 }
  0x49   :  { %2959 = vmatprep.subr.bf16.mxu0 %v2958_v59  ;;  %3023 = vmatprep.subr.bf16.mxu1 %v2958_v59 }
  0x4b   :  { %3304 = vset.pattern.permute.xlu0 %v3503_v57  ;;  %3302 = vset.pattern.permute.xlu1 %v3501_v0 }
  0x4c   :  { %2961 = vmatpush1.bf16.msra.mxu0 %v2960_v3  ;;  %3025 = vmatpush1.bf16.msra.mxu1 %v2960_v3 }
  0x4d   :  { %2963 = vmatprep.subr.bf16.mxu0 %v2962_v4  ;;  %3027 = vmatprep.subr.bf16.mxu1 %v2962_v4 }
  0x4e   :  { %446 = vperm.xlu0 %3304, %v3593_v51   ;;  %579 = vperm.xlu1 %3302, %v278_v9  }
  0x50   :  { %2965 = vmatpush1.bf16.msra.mxu0 %v2964_v10  ;;  %3029 = vmatpush1.bf16.msra.mxu1 %v2964_v10 }
  0x51   :  { %2967 = vmatprep.subr.bf16.mxu0 %v2966_v11  ;;  %3031 = vmatprep.subr.bf16.mxu1 %v2966_v11 }
  0x52   :  { %611 = vperm.xlu0 %3304, %v278_v9   ;;  %3303 = vset.pattern.permute.xlu1 %v3502_v1 }
  0x53   :  { %595 = vperm.xlu1 %3303, %v278_v9  }
  0x54   :  { %2969 = vmatpush1.bf16.msra.mxu0 %v2968_v17  ;;  %3033 = vmatpush1.bf16.msra.mxu1 %v2968_v17 }
  0x55   :  { %2971 = vmatprep.subr.bf16.mxu0 %v2970_v18  ;;  %3035 = vmatprep.subr.bf16.mxu1 %v2970_v18 }
  0x56   :  { %779 = vperm.xlu0 %3304, %v3604_v16  }
  0x57   :  { %3305 = vset.pattern.permute.xlu1 %v3501_v0  ;;  %v3621_v0 = vshrl.u32 %v285_v49, 7 }
  0x58   :  { %2973 = vmatpush1.bf16.msra.mxu0 %v2972_v23  ;;  %3037 = vmatpush1.bf16.msra.mxu1 %v2972_v23 }
  0x59   :  { %2975 = vmatprep.subr.bf16.mxu0 %v2974_v24  ;;  %3039 = vmatprep.subr.bf16.mxu1 %v2974_v24  ;;  %v3626_v53 = vsub.s32 0, %v3621_v0  ;;  %v3629_v55 = vsub.s32 1, %v3621_v0  ;;  %v3639_v58 = vsub.s32 3, %v3621_v0 }
  0x5a   :  { %747 = vperm.xlu1 %3305, %v3604_v16  }
  0x5c   :  { %2977 = vmatpush1.bf16.msra.mxu0 %v2976_v29  ;;  %3041 = vmatpush1.bf16.msra.mxu1 %v2976_v29 }
  0x5d   :  { %2979 = vmatprep.subr.bf16.mxu0 %v2978_v30  ;;  %3043 = vmatprep.subr.bf16.mxu1 %v2978_v30 }
  0x5e   :  { %3306 = vset.pattern.permute.xlu1 %v3502_v1 }
  0x5f   :  { %763 = vperm.xlu1 %3306, %v3604_v16  }
  0x60   :  { %2981 = vmatpush1.bf16.msra.mxu0 %v2980_v35  ;;  %3045 = vmatpush1.bf16.msra.mxu1 %v2980_v35 }
  0x61   :  { %2983 = vmatprep.subr.bf16.mxu0 %v2982_v36  ;;  %3047 = vmatprep.subr.bf16.mxu1 %v2982_v36 }
  0x64   :  { %2985 = vmatpush1.bf16.msra.mxu0 %v2984_v41  ;;  %3049 = vmatpush1.bf16.msra.mxu1 %v2984_v41 }
  0x65   :  { %2987 = vmatprep.subr.bf16.mxu0 %v2986_v42  ;;  %3051 = vmatprep.subr.bf16.mxu1 %v2986_v42 }
  0x68   :  { %2989 = vmatpush1.bf16.msra.mxu0 %v2988_v47  ;;  %3053 = vmatpush1.bf16.msra.mxu1 %v2988_v47 }
  0x6b   :  { %181 = vmatmul.mubr.f32.vlgmr.msra.gmra.mrb[0].mxu0 %v3576_v43  ;;  %262 = vmatmul.mubr.f32.vlgmr.msra.gmra.mrb[0].mxu1 %v3581_v44  ;;  %v3632_v43 = vsub.s32 2, %v3621_v0 }
  0xb5   :  { %v299_v48 = vpop.permute.xlu0 %298  ;;  %v315_v44 = vpop.permute.xlu1 %314 }
  0xb9   :  { %v3623_v50 = vpop.permute.xlu0 %414 }
  0xba   :  { %v331_v10 = vpop.permute.xlu1 %330 }
  0xbe   :  { %v283_v59 = vpop.permute.xlu0 %282 }
 0x13e   :  { %v182_v51 = vpop.f32.mrb[0].mxu0  ;;  %v263_v52 = vpop.f32.mrb[0].mxu1 }
 0x13f   :  { %v184_v1 = vpop.f32.mrb[1].mxu0  ;;  %v265_v54 = vpop.f32.mrb[1].mxu1 }
 0x140   :  { %v3634_v56 = vcombine.low %v182_v51, %v184_v1  ;;  %v3636_v57 = vcombine.low %v263_v52, %v265_v54  ;;  %v3702_v1 = vsub.s32 4, %v3621_v0 }
 0x142   :  { %382 = vrot.lane.b32.xlu0 %v3636_v57, %s3505_s0  ;;  %380 = vrot.lane.b32.xlu1 %v3634_v56, %s3505_s0  ;;  %v288_v60 = vrot.slane %v3634_v56, %v3626_v53  ;;  %v292_v61 = vrot.slane %v3636_v57, %v3626_v53  ;;  %v304_v62 = vrot.slane %v3634_v56, %v3629_v55 }
 0x143   :  { %v308_v63 = vrot.slane %v3636_v57, %v3629_v55  ;;  %v320_v2 = vrot.slane %v3634_v56, %v3632_v43  ;;  %v336_v3 = vrot.slane %v3634_v56, %v3639_v58  ;;  %v324_v5 = vrot.slane %v3636_v57, %v3632_v43 }
 0x144   :  { %v293_v4 = vmul.f32 %v288_v60, %v283_v59  ;;  %v340_v6 = vrot.slane %v3636_v57, %v3639_v58  ;;  %v294_v7 = vmul.f32 %v292_v61, %v283_v59  ;;  %v309_v8 = vmul.f32 %v304_v62, %v299_v48 }
 0x145   :  { %v310_v9 = vmul.f32 %v308_v63, %v299_v48  ;;  %v325_v13 = vmul.f32 %v320_v2, %v315_v44  ;;  %v326_v14 = vmul.f32 %v324_v5, %v315_v44  ;;  %v341_v15 = vmul.f32 %v336_v3, %v331_v10 }
 0x146   :  { %390 = vrot.lane.b32.xlu0 %v3636_v57, %s3506_s28  ;;  %388 = vrot.lane.b32.xlu1 %v3634_v56, %s3506_s28  ;;  %v311_v11 = vadd.f32 %v309_v8, %v293_v4  ;;  %v342_v16 = vmul.f32 %v340_v6, %v331_v10  ;;  %v3718_v10 = vsub.s32 5, %v3621_v0 }
 0x147   :  { %v312_v12 = vadd.f32 %v310_v9, %v294_v7 }
 0x148   :  { %v327_v17 = vadd.f32 %v325_v13, %v311_v11 }
 0x149   :  { %v328_v18 = vadd.f32 %v326_v14, %v312_v12 }
 0x14a   :  { %545 = vrot.lane.b32.xlu0 %v3634_v56, %s3507_s30  ;;  %547 = vrot.lane.b32.xlu1 %v3636_v57, %s3507_s30  ;;  %v343_v19 = vadd.f32 %v341_v15, %v327_v17 }
 0x14b   :  { %v344_v20 = vadd.f32 %v342_v16, %v328_v18 }
 0x14c   :  { %v2917_v21 = vmul.f32 -1.442695, %v343_v19 }
 0x14d   :  { %v2918_v22 = vmul.f32 -1.442695, %v344_v20 }
 0x14e   :  { %553 = vrot.lane.b32.xlu0 %v3634_v56, %s3508_s6  ;;  %555 = vrot.lane.b32.xlu1 %v3636_v57, %s3508_s6  ;;  %3309 = vpow2.f32 %v2917_v21 }
 0x14f   :  { %3311 = vpow2.f32 %v2918_v22 }
 0x152   :  { %710 = vrot.lane.b32.xlu0 %v3634_v56, %s3509_s7  ;;  %712 = vrot.lane.b32.xlu1 %v3636_v57, %s3509_s7 }
 0x158   :  { %v3310_v23 = vpop.eup %3309 }
 0x159   :  { %v351_v24 = vadd.f32 1.0, %v3310_v23  ;;  %v3312_v25 = vpop.eup %3311 }
 0x15a   :  { %v352_v26 = vadd.f32 1.0, %v3312_v25 }
 0x15b   :  { %3313 = vrcp.f32 %v351_v24 }
 0x15c   :  { %3315 = vrcp.f32 %v352_v26 }
 0x165   :  { %v3673_v27 = vpop.eup %3313 }
 0x166   :  { %v1116_v28 = vmul.f32 %v3673_v27, %v3673_v27  ;;  %v1127_v29 = vrot.slane %v3673_v27, %v3626_v53  ;;  %v3679_v30 = vpop.eup %3315  ;;  %v358_v34 = vsel %vm357_vm0, %v3673_v27, 0.0  ;;  %v1189_v36 = vrot.slane %v3673_v27, %v3629_v55 }
 0x167   :  { %v1131_v33 = vrot.slane %v3679_v30, %v3626_v53  ;;  %v1117_v35 = vmul.f32 %v3679_v30, %v3679_v30  ;;  %v359_v37 = vrot.slane %v358_v34, 4  ;;  %v365_v38 = vsel %vm357_vm0, %v3679_v30, 0.0 }
 0x168   :  { %v1118_v31 = vsel %vm357_vm0, %v1116_v28, 0.0  ;;  %v1132_v32 = vmul.f32 %v3673_v27, %v1127_v29  ;;  %v366_v40 = vrot.slane %v365_v38, 4  ;;  %v1193_v45 = vrot.slane %v3679_v30, %v3629_v55 }
 0x169   :  { %v360_v39 = vadd.f32 %v359_v37, %v358_v34  ;;  %v1133_v42 = vmul.f32 %v3679_v30, %v1131_v33  ;;  %v1255_v46 = vrot.slane %v3673_v27, %v3632_v43  ;;  %v1121_v47 = vsel %vm357_vm0, %v1117_v35, 0.0  ;;  %v564_v34 = vpop.permute.xlu0 %563 }
 0x16a   :  { %v1134_v41 = vsel %vm357_vm0, %v1132_v32, 0.0  ;;  %v1194_v48 = vmul.f32 %v3673_v27, %v1189_v36  ;;  %v367_v52 = vadd.f32 %v366_v40, %v365_v38  ;;  %v1195_v60 = vmul.f32 %v3679_v30, %v1193_v45  ;;  %v399_v32 = vpop.permute.xlu1 %398 }
 0x16b   :  { %v361_v51 = vrot.slane %v360_v39, 2  ;;  %v1137_v59 = vsel %vm357_vm0, %v1133_v42, 0.0  ;;  %v1260_v61 = vmul.f32 %v3673_v27, %v1255_v46  ;;  %v1259_v62 = vrot.slane %v3679_v30, %v3632_v43 }
 0x16c   :  { %v368_v44 = vrot.slane %v367_v52, 2  ;;  %v1196_v63 = vsel %vm357_vm0, %v1194_v48, 0.0  ;;  %v1321_v2 = vrot.slane %v3673_v27, %v3639_v58  ;;  %v1199_v7 = vsel %vm357_vm0, %v1195_v60, 0.0 }
 0x16d   :  { %v362_v54 = vadd.f32 %v361_v51, %v360_v39  ;;  %v1261_v8 = vmul.f32 %v3679_v30, %v1259_v62  ;;  %v1325_v9 = vrot.slane %v3679_v30, %v3639_v58  ;;  %v1262_v11 = vsel %vm357_vm0, %v1260_v61, 0.0  ;;  %v3742_v36 = vpop.permute.xlu0 %731 }
 0x16e   :  { %v369_v4 = vadd.f32 %v368_v44, %v367_v52  ;;  %v1326_v12 = vmul.f32 %v3673_v27, %v1321_v2  ;;  %v1387_v13 = vrot.slane %v3673_v27, %v3702_v1  ;;  %v1391_v17 = vrot.slane %v3679_v30, %v3702_v1  ;;  %v431_v33 = vpop.permute.xlu1 %430 }
 0x16f   :  { %v363_v3 = vrot.slane %v362_v54, 1  ;;  %v1265_v15 = vsel %vm357_vm0, %v1261_v8, 0.0  ;;  %v1327_v16 = vmul.f32 %v3679_v30, %v1325_v9  ;;  %v1453_v20 = vrot.slane %v3673_v27, %v3718_v10 }
 0x170   :  { %v370_v6 = vrot.slane %v369_v4, 1  ;;  %v1328_v18 = vsel %vm357_vm0, %v1326_v12, 0.0  ;;  %v1392_v19 = vmul.f32 %v3673_v27, %v1387_v13  ;;  %v1393_v22 = vmul.f32 %v3679_v30, %v1391_v17 }
 0x171   :  { %1119 = vadd.xlane.f32.xlu0 %v1118_v31  ;;  %v364_v5 = vadd.f32 %v363_v3, %v362_v54  ;;  %v1331_v21 = vsel %vm357_vm0, %v1327_v16, 0.0  ;;  %v1457_v23 = vrot.slane %v3679_v30, %v3718_v10  ;;  %v1458_v25 = vmul.f32 %v3673_v27, %v1453_v20  ;;  %v447_v27 = vpop.permute.xlu0 %446 }
 0x172   :  { %v371_v14 = vadd.f32 %v370_v6, %v369_v4  ;;  %v1394_v24 = vsel %vm357_vm0, %v1392_v19, 0.0  ;;  %v1397_v26 = vsel %vm357_vm0, %v1393_v22, 0.0  ;;  %v580_v35 = vpop.permute.xlu1 %579 }
 0x173   :  { %376 = vst.msk [vmem:[#allocation3] sm:$0x1] %vm374_vm1, %v364_v5  ;;  %v1459_v28 = vmul.f32 %v3679_v30, %v1457_v23  ;;  %v1460_v29 = vsel %vm357_vm0, %v1458_v25, 0.0 }
 0x174   :  { %377 = vst.msk [vmem:[#allocation3 + $0x2] sm:$0x1] %vm374_vm1, %v371_v14  ;;  %vm1987_vm1 = vcmask 128000  }
 0x175   :  { %1135 = vadd.xlane.f32.xlu0 %v1134_v41  ;;  %v1463_v31 = vsel %vm357_vm0, %v1459_v28, 0.0  ;;  %v3748_v39 = vpop.permute.xlu0 %611 }
 0x176   :  { %1122 = vadd.xlane.f32.xlu1 %v1121_v47  ;;  %v3744_v37 = vpop.permute.xlu1 %595 }
 0x179   :  { %1138 = vadd.xlane.f32.xlu0 %v1137_v59  ;;  %v3752_v40 = vpop.permute.xlu0 %779 }
 0x17a   :  { %1197 = vadd.xlane.f32.xlu1 %v1196_v63  ;;  %v3746_v38 = vpop.permute.xlu1 %747 }
 0x17d   :  { %1200 = vadd.xlane.f32.xlu0 %v1199_v7 }
 0x17e   :  { %1263 = vadd.xlane.f32.xlu1 %v1262_v11  ;;  %v3750_v30 = vpop.permute.xlu1 %763 }
 0x181   :  { %1266 = vadd.xlane.f32.xlu0 %v1265_v15 }
 0x182   :  { %1329 = vadd.xlane.f32.xlu1 %v1328_v18 }
 0x185   :  { %1332 = vadd.xlane.f32.xlu0 %v1331_v21 }
 0x186   :  { %1395 = vadd.xlane.f32.xlu1 %v1394_v24 }
 0x189   :  { %1398 = vadd.xlane.f32.xlu0 %v1397_v26 }
 0x18a   :  { %1461 = vadd.xlane.f32.xlu1 %v1460_v29 }
 0x18d   :  { %1464 = vadd.xlane.f32.xlu0 %v1463_v31 }
 0x1b4   :  { %v383_v41 = vpop.permute.xlu0 %382  ;;  %v381_v42 = vpop.permute.xlu1 %380 }
 0x1b5   :  { %v387_v45 = vadd.f32 %v383_v41, %v3636_v57  ;;  %v386_v46 = vadd.f32 %v381_v42, %v3634_v56 }
 0x1b8   :  { %v391_v47 = vpop.permute.xlu0 %390  ;;  %v389_v48 = vpop.permute.xlu1 %388 }
 0x1b9   :  { %v395_v51 = vadd.f32 %v391_v47, %v387_v45  ;;  %v394_v52 = vadd.f32 %v389_v48, %v386_v46 }
 0x1bb   :  { %v408_v54 = vrot.slane %v395_v51, %v3626_v53  ;;  %v424_v44 = vrot.slane %v395_v51, %v3629_v55  ;;  %v440_v59 = vrot.slane %v395_v51, %v3632_v43  ;;  %v404_v60 = vrot.slane %v394_v52, %v3626_v53 }
 0x1bc   :  { %v420_v61 = vrot.slane %v394_v52, %v3629_v55  ;;  %v436_v62 = vrot.slane %v394_v52, %v3632_v43  ;;  %v546_v63 = vpop.permute.xlu0 %545  ;;  %v548_v2 = vpop.permute.xlu1 %547  ;;  %v456_v5 = vrot.slane %v395_v51, %v3639_v58  ;;  %v452_v8 = vrot.slane %v394_v52, %v3639_v58 }
 0x1bd   :  { %v410_v3 = vmul.f32 %v408_v54, %v399_v32  ;;  %v426_v4 = vmul.f32 %v424_v44, %v3623_v50  ;;  %v409_v6 = vmul.f32 %v404_v60, %v399_v32  ;;  %v442_v11 = vmul.f32 %v440_v59, %v431_v33 }
 0x1be   :  { %v425_v7 = vmul.f32 %v420_v61, %v3623_v50  ;;  %v551_v12 = vadd.f32 %v546_v63, %v3634_v56  ;;  %v552_v13 = vadd.f32 %v548_v2, %v3636_v57  ;;  %v441_v15 = vmul.f32 %v436_v62, %v431_v33 }
 0x1bf   :  { %v428_v9 = vadd.f32 %v426_v4, %v410_v3  ;;  %v458_v19 = vmul.f32 %v456_v5, %v447_v27  ;;  %v457_v23 = vmul.f32 %v452_v8, %v447_v27  ;;  %v723_v3 = vrot.slane %v3634_v56, 4 }
 0x1c0   :  { %v427_v14 = vadd.f32 %v425_v7, %v409_v6  ;;  %v554_v16 = vpop.permute.xlu0 %553  ;;  %v556_v17 = vpop.permute.xlu1 %555  ;;  %v724_v4 = vrot.slane %v3636_v57, 4 }
 0x1c1   :  { %v444_v18 = vadd.f32 %v442_v11, %v428_v9  ;;  %v559_v20 = vadd.f32 %v554_v16, %v551_v12  ;;  %v560_v21 = vadd.f32 %v556_v17, %v552_v13 }
 0x1c2   :  { %v443_v22 = vadd.f32 %v441_v15, %v427_v14 }
 0x1c3   :  { %v460_v24 = vadd.f32 %v458_v19, %v444_v18  ;;  %v569_v50 = vrot.slane %v559_v20, %v3626_v53  ;;  %v585_v25 = vrot.slane %v559_v20, %v3629_v55  ;;  %v601_v26 = vrot.slane %v559_v20, %v3632_v43 }
 0x1c4   :  { %v459_v28 = vadd.f32 %v457_v23, %v443_v22  ;;  %v573_v29 = vrot.slane %v560_v21, %v3626_v53  ;;  %v589_v31 = vrot.slane %v560_v21, %v3629_v55  ;;  %v617_v42 = vrot.slane %v559_v20, %v3639_v58  ;;  %v711_v45 = vpop.permute.xlu0 %710  ;;  %v713_v27 = vpop.permute.xlu1 %712 }
 0x1c5   :  { %v2920_v32 = vmul.f32 -1.442695, %v460_v24  ;;  %v574_v33 = vmul.f32 %v569_v50, %v564_v34  ;;  %v590_v41 = vmul.f32 %v585_v25, %v580_v35  ;;  %v606_v47 = vmul.f32 %v601_v26, %v3744_v37 }
 0x1c6   :  { %v2919_v46 = vmul.f32 -1.442695, %v459_v28  ;;  %v575_v48 = vmul.f32 %v573_v29, %v564_v34  ;;  %v591_v51 = vmul.f32 %v589_v31, %v580_v35  ;;  %v605_v54 = vrot.slane %v560_v21, %v3632_v43 }
 0x1c7   :  { %3317 = vpow2.f32 %v2920_v32  ;;  %v592_v52 = vadd.f32 %v590_v41, %v574_v33  ;;  %v621_v44 = vrot.slane %v560_v21, %v3639_v58  ;;  %v714_v60 = vrot.slane %v711_v45, 4 }
 0x1c8   :  { %3319 = vpow2.f32 %v2919_v46  ;;  %v593_v59 = vadd.f32 %v591_v51, %v575_v48  ;;  %v715_v61 = vrot.slane %v713_v27, 4  ;;  %v622_v63 = vmul.f32 %v617_v42, %v3748_v39 }
 0x1c9   :  { %v608_v62 = vadd.f32 %v606_v47, %v592_v52  ;;  %v607_v2 = vmul.f32 %v605_v54, %v3744_v37  ;;  %v623_v34 = vmul.f32 %v621_v44, %v3748_v39  ;;  %v717_v35 = vsel %vm716_vm2, %v711_v45, %v714_v60 }
 0x1ca   :  { %v718_v5 = vsel %vm716_vm2, %v713_v27, %v715_v61  ;;  %v721_v8 = vadd.f32 %v717_v35, %v3634_v56  ;;  %v894_v61 = vld [vmem:[#allocation7 + $0x8] sm:$0xff]  ;;  %vm4087_vm2 = vcmp.ge.s32.totalorder %v285_v49, 16 }
 0x1cb   :  { %v624_v6 = vadd.f32 %v622_v63, %v608_v62  ;;  %v609_v7 = vadd.f32 %v607_v2, %v593_v59  ;;  %v722_v9 = vadd.f32 %v718_v5, %v3636_v57  ;;  %v896_v62 = vld [vmem:[#allocation7 + $0x18] sm:$0xff] }
 0x1cc   :  { %v727_v13 = vadd.f32 %v723_v3, %v721_v8  ;;  %v893_v3 = vld [vmem:[#allocation7] sm:$0xff] }
 0x1cd   :  { %v2921_v11 = vmul.f32 -1.442695, %v624_v6  ;;  %v625_v12 = vadd.f32 %v623_v34, %v609_v7  ;;  %v728_v37 = vadd.f32 %v724_v4, %v722_v9  ;;  %v895_v34 = vld [vmem:[#allocation7 + $0x10] sm:$0xff]  ;;  %v3054_v6 = vpack.c.bf16 %v896_v62, %v894_v61  ;;  %v908_v61 = vld [vmem:[#allocation7 + $0x78] sm:$0xff]  ;;  %v905_v62 = vld [vmem:[#allocation7 + $0x60] sm:$0xff] }
 0x1ce   :  { %v737_v39 = vrot.slane %v727_v13, %v3626_v53  ;;  %v753_v15 = vrot.slane %v727_v13, %v3629_v55  ;;  %v769_v16 = vrot.slane %v727_v13, %v3632_v43  ;;  %v785_v17 = vrot.slane %v727_v13, %v3639_v58  ;;  %v898_v13 = vld [vmem:[#allocation7 + $0x28] sm:$0xff] }
 0x1cf   :  { %3321 = vpow2.f32 %v2921_v11  ;;  %v2922_v14 = vmul.f32 -1.442695, %v625_v12  ;;  %v741_v18 = vrot.slane %v728_v37, %v3626_v53  ;;  %v757_v19 = vrot.slane %v728_v37, %v3629_v55  ;;  %3055 = vmatprep.subr.bf16.mxu0 %v3054_v6  ;;  %3119 = vmatprep.subr.bf16.mxu1 %v3054_v6 }
 0x1d0   :  { %v742_v21 = vmul.f32 %v737_v39, %v3742_v36  ;;  %v758_v22 = vmul.f32 %v753_v15, %v3746_v38  ;;  %v773_v23 = vrot.slane %v728_v37, %v3632_v43  ;;  %v774_v29 = vmul.f32 %v769_v16, %v3750_v30  ;;  %v897_v15 = vld [vmem:[#allocation7 + $0x20] sm:$0xff]  ;;  %v899_v16 = vld [vmem:[#allocation7 + $0x30] sm:$0xff] }
 0x1d1   :  { %v3318_v20 = vpop.eup %3317  ;;  %3323 = vpow2.f32 %v2922_v14  ;;  %v743_v25 = vmul.f32 %v741_v18, %v3742_v36  ;;  %v759_v31 = vmul.f32 %v757_v19, %v3746_v38  ;;  %v790_v32 = vmul.f32 %v785_v17, %v3752_v40  ;;  %v911_v17 = vld [vmem:[#allocation7 + $0x90] sm:$0xff] }
 0x1d2   :  { %v3320_v24 = vpop.eup %3319  ;;  %v468_v50 = vadd.f32 1.0, %v3318_v20  ;;  %v760_v28 = vadd.f32 %v758_v22, %v742_v21  ;;  %v789_v33 = vrot.slane %v728_v37, %v3639_v58  ;;  %v775_v45 = vmul.f32 %v773_v23, %v3750_v30  ;;  %v900_v37 = vld [vmem:[#allocation7 + $0x38] sm:$0xff] }
 0x1d3   :  { %v467_v26 = vadd.f32 1.0, %v3320_v24  ;;  %v761_v42 = vadd.f32 %v759_v31, %v743_v25  ;;  %v3056_v12 = vpack.c.bf16 %v895_v34, %v893_v3  ;;  %v3058_v21 = vpack.c.bf16 %v900_v37, %v898_v13  ;;  %v904_v31 = vld [vmem:[#allocation7 + $0x58] sm:$0xff]  ;;  %v907_v34 = vld [vmem:[#allocation7 + $0x70] sm:$0xff]  ;;  %v910_v13 = vld [vmem:[#allocation7 + $0x88] sm:$0xff] }
 0x1d4   :  { %3325 = vrcp.f32 %v468_v50  ;;  %v776_v41 = vadd.f32 %v774_v29, %v760_v28  ;;  %v791_v36 = vmul.f32 %v789_v33, %v3752_v40  ;;  %v3060_v28 = vpack.c.bf16 %v899_v16, %v897_v15  ;;  %v902_v29 = vld [vmem:[#allocation7 + $0x48] sm:$0xff]  ;;  %v912_v37 = vld [vmem:[#allocation7 + $0x98] sm:$0xff]  ;;  %v915_v33 = vld [vmem:[#allocation7 + $0xb0] sm:$0xff] }
 0x1d5   :  { %3327 = vrcp.f32 %v467_v26  ;;  %v777_v46 = vadd.f32 %v775_v45, %v761_v42  ;;  %3057 = vmatpush1.bf16.msra.mxu0 %v3056_v12  ;;  %3121 = vmatpush1.bf16.msra.mxu1 %v3056_v12  ;;  %v3068_v6 = vpack.c.bf16 %v907_v34, %v905_v62 }
 0x1d6   :  { %v792_v27 = vadd.f32 %v790_v32, %v776_v41  ;;  %3059 = vmatprep.subr.bf16.mxu0 %v3058_v21  ;;  %v901_v32 = vld [vmem:[#allocation7 + $0x40] sm:$0xff]  ;;  %3123 = vmatprep.subr.bf16.mxu1 %v3058_v21 }
 0x1d7   :  { %v793_v52 = vadd.f32 %v791_v36, %v777_v46  ;;  %v903_v46 = vld [vmem:[#allocation7 + $0x50] sm:$0xff] }
 0x1d8   :  { %v2923_v48 = vmul.f32 -1.442695, %v792_v27  ;;  %v3062_v27 = vpack.c.bf16 %v904_v31, %v902_v29 }
 0x1d9   :  { %v3322_v47 = vpop.eup %3321  ;;  %v2924_v59 = vmul.f32 -1.442695, %v793_v52  ;;  %3061 = vmatpush1.bf16.msra.mxu0 %v3060_v28  ;;  %3125 = vmatpush1.bf16.msra.mxu1 %v3060_v28 }
 0x1da   :  { %v632_v51 = vadd.f32 1.0, %v3322_v47  ;;  %3063 = vmatprep.subr.bf16.mxu0 %v3062_v27  ;;  %3127 = vmatprep.subr.bf16.mxu1 %v3062_v27 }
 0x1db   :  { %v3324_v54 = vpop.eup %3323 }
 0x1dc   :  { %3329 = vrcp.f32 %v632_v51  ;;  %v633_v38 = vadd.f32 1.0, %v3324_v54  ;;  %v3064_v51 = vpack.c.bf16 %v903_v46, %v901_v32 }
 0x1dd   :  { %3331 = vpow2.f32 %v2923_v48 }
 0x1de   :  { %v3802_v44 = vpop.eup %3325  ;;  %3333 = vrcp.f32 %v633_v38  ;;  %3065 = vmatpush1.bf16.msra.mxu0 %v3064_v51  ;;  %3129 = vmatpush1.bf16.msra.mxu1 %v3064_v51  ;;  %v920_v51 = vld [vmem:[#allocation7 + $0xd8] sm:$0xff] }
 0x1df   :  { %v3804_v60 = vpop.eup %3327  ;;  %v1520_v30 = vmul.f32 %v3802_v44, %v3802_v44  ;;  %3335 = vpow2.f32 %v2924_v59  ;;  %v481_v2 = vsel %vm473_vm3, %v3802_v44, 0.0  ;;  %v1542_v19 = vrot.slane %v3802_v44, %v3626_v53 }
 0x1e0   :  { %v1519_v40 = vmul.f32 %v3804_v60, %v3804_v60  ;;  %v474_v63 = vsel %vm473_vm3, %v3804_v60, 0.0  ;;  %v482_v5 = vrot.slane %v481_v2, 4  ;;  %v1538_v9 = vrot.slane %v3804_v60, %v3626_v53 }
 0x1e1   :  { %1525 = vrot.lane.b32.xlu0 %v1520_v30, %s3505_s0  ;;  %v475_v35 = vrot.slane %v474_v63, 4  ;;  %v1606_v23 = vrot.slane %v3804_v60, %v3629_v55  ;;  %v1610_v42 = vrot.slane %v3802_v44, %v3629_v55  ;;  %v1544_v36 = vmul.f32 %v3802_v44, %v1542_v19 }
 0x1e2   :  { %1523 = vrot.lane.b32.xlu1 %v1519_v40, %s3505_s0  ;;  %v483_v39 = vadd.f32 %v482_v5, %v481_v2  ;;  %v1543_v25 = vmul.f32 %v3804_v60, %v1538_v9  ;;  %v1680_v59 = vrot.slane %v3804_v60, %v3632_v43  ;;  %v906_v40 = vld [vmem:[#allocation7 + $0x68] sm:$0xff]  ;;  %v1754_v9 = vrot.slane %v3804_v60, %v3639_v58 }
 0x1e3   :  { %v476_v11 = vadd.f32 %v475_v35, %v474_v63  ;;  %v1611_v38 = vmul.f32 %v3804_v60, %v1606_v23  ;;  %v1684_v63 = vrot.slane %v3802_v44, %v3632_v43  ;;  %v3066_v3 = vpack.c.bf16 %v908_v61, %v906_v40 }
 0x1e4   :  { %v484_v24 = vrot.slane %v483_v39, 2  ;;  %v1612_v35 = vmul.f32 %v3802_v44, %v1610_v42  ;;  %v1758_v16 = vrot.slane %v3802_v44, %v3639_v58  ;;  %v1828_v23 = vrot.slane %v3804_v60, %v3702_v1 }
 0x1e5   :  { %v477_v20 = vrot.slane %v476_v11, 2  ;;  %3067 = vmatprep.subr.bf16.mxu0 %v3066_v3  ;;  %3131 = vmatprep.subr.bf16.mxu1 %v3066_v3  ;;  %v1686_v15 = vmul.f32 %v3802_v44, %v1684_v63  ;;  %v1832_v31 = vrot.slane %v3802_v44, %v3702_v1  ;;  %v1902_v46 = vrot.slane %v3804_v60, %v3718_v10  ;;  %v922_v63 = vld [vmem:[#allocation7 + $0xe8] sm:$0xff]  ;;  %v924_v3 = vld [vmem:[#allocation7 + $0xf8] sm:$0xff] }
 0x1e6   :  { %v3814_v4 = vpop.eup %3329  ;;  %v485_v45 = vadd.f32 %v484_v24, %v483_v39  ;;  %v909_v39 = vld [vmem:[#allocation7 + $0x80] sm:$0xff]  ;;  %3069 = vmatpush1.bf16.msra.mxu0 %v3068_v6  ;;  %3133 = vmatpush1.bf16.msra.mxu1 %v3068_v6  ;;  %v1760_v29 = vmul.f32 %v3802_v44, %v1758_v16  ;;  %v1833_v27 = vmul.f32 %v3804_v60, %v1828_v23  ;;  %vm4092_vm3 = vcmp.lt.s32.totalorder %v285_v49, 32 }
 0x1e7   :  { %v3332_v7 = vpop.eup %3331  ;;  %v1977_v8 = vmul.f32 %v3814_v4, %v3814_v4  ;;  %v639_v50 = vsel %vm638_vm4, %v3814_v4, 0.0  ;;  %v478_v26 = vadd.f32 %v477_v20, %v476_v11  ;;  %v3510_v11 = vmov 1966171168  }
 0x1e8   :  { %v3820_v14 = vpop.eup %3333  ;;  %v800_v22 = vadd.f32 1.0, %v3332_v7  ;;  %v640_v48 = vrot.slane %v639_v50, 4  ;;  %v486_v52 = vrot.slane %v485_v45, 1  ;;  %v496_v12 = vunpack.c.l.s4 %v3510_v11  ;;  %v921_v11 = vld [vmem:[#allocation7 + $0xe0] sm:$0xff] }
 0x1e9   :  { %1981 = vrot.lane.b32.xlu1 %v1977_v8, %s3507_s30  ;;  %v1978_v18 = vmul.f32 %v3820_v14, %v3820_v14  ;;  %v3336_v41 = vpop.eup %3335  ;;  %v479_v47 = vrot.slane %v478_v26, 1  ;;  %v646_v7 = vsel %vm638_vm4, %v3820_v14, 0.0  ;;  %v1685_v8 = vmul.f32 %v3804_v60, %v1680_v59  ;;  %vm542_vm4 = vmand %vm4073_vm13, %vm4078_vm14 }
 0x1ea   :  { %3337 = vrcp.f32 %v800_v22  ;;  %v801_v54 = vadd.f32 1.0, %v3336_v41  ;;  %v3859_v2 = vadd.f32 %v486_v52, %v485_v45  ;;  %v641_v5 = vadd.f32 %v640_v48, %v639_v50  ;;  %v914_v50 = vld [vmem:[#allocation7 + $0xa8] sm:$0xff]  ;;  %v917_v52 = vld [vmem:[#allocation7 + $0xc0] sm:$0xff]  ;;  %vm4169_vm14 = vmand %vm821_vm11, %vm822_vm12 }
 0x1eb   :  { %1983 = vrot.lane.b32.xlu0 %v1978_v18, %s3507_s30  ;;  %v3855_v30 = vadd.f32 %v479_v47, %v478_v26  ;;  %v647_v19 = vrot.slane %v646_v7, 4  ;;  %v3070_v20 = vpack.c.bf16 %v912_v37, %v910_v13  ;;  %v3072_v21 = vpack.c.bf16 %v911_v17, %v909_v39  ;;  %v913_v26 = vld [vmem:[#allocation7 + $0xa0] sm:$0xff]  ;;  %v918_v48 = vld [vmem:[#allocation7 + $0xc8] sm:$0xff] }
 0x1ec   :  { %492 = vst.msk [vmem:[#allocation3 + $0x2] sm:$0x1] %vm490_vm7, %v3859_v2  ;;  %3339 = vrcp.f32 %v801_v54  ;;  %v642_v18 = vrot.slane %v641_v5, 2  ;;  %v1759_v22 = vmul.f32 %v3804_v60, %v1754_v9  ;;  %v497_v24 = vunpack.c.0.s8 %v496_v12  ;;  %v923_v12 = vld [vmem:[#allocation7 + $0xf0] sm:$0xff] }
 0x1ed   :  { %1547 = vrot.lane.b32.xlu1 %v1543_v25, %s3505_s0  ;;  %491 = vst.msk [vmem:[#allocation3] sm:$0x1] %vm490_vm7, %v3855_v30  ;;  %3071 = vmatprep.subr.bf16.mxu0 %v3070_v20  ;;  %v916_v25 = vld [vmem:[#allocation7 + $0xb8] sm:$0xff]  ;;  %v648_v42 = vadd.f32 %v647_v19, %v646_v7  ;;  %v3076_v45 = vpack.c.bf16 %v915_v33, %v913_v26  ;;  %v927_v33 = vld [vmem:[#allocation7 + $0x110] sm:$0xff]  ;;  %vm4139_vm7 = vcmp.ge.s32.totalorder %v285_v49, 48 }
 0x1ee   :  { %v3074_v32 = vpack.c.bf16 %v916_v25, %v914_v50  ;;  %3135 = vmatprep.subr.bf16.mxu1 %v3070_v20  ;;  %v643_v41 = vadd.f32 %v642_v18, %v641_v5  ;;  %3073 = vmatpush1.bf16.msra.mxu0 %v3072_v21  ;;  %v3078_v54 = vpack.c.bf16 %v920_v51, %v918_v48  ;;  %v926_v50 = vld [vmem:[#allocation7 + $0x108] sm:$0xff]  ;;  %v928_v25 = vld [vmem:[#allocation7 + $0x118] sm:$0xff]  ;;  %v929_v51 = vld [vmem:[#allocation7 + $0x120] sm:$0xff] }
 0x1ef   :  { %1549 = vrot.lane.b32.xlu0 %v1544_v36, %s3505_s0  ;;  %3137 = vmatpush1.bf16.msra.mxu1 %v3072_v21  ;;  %v3900_v36 = vsub.s32 %v497_v24, %v3621_v0  ;;  %v1834_v40 = vmul.f32 %v3802_v44, %v1832_v31  ;;  %v1906_v61 = vrot.slane %v3802_v44, %v3718_v10  ;;  %v649_v62 = vrot.slane %v648_v42, 2  ;;  %v932_v48 = vld [vmem:[#allocation7 + $0x138] sm:$0xff] }
 0x1f0   :  { %3075 = vmatprep.subr.bf16.mxu0 %v3074_v32  ;;  %3139 = vmatprep.subr.bf16.mxu1 %v3074_v32  ;;  %v644_v0 = vrot.slane %v643_v41, 1  ;;  %v1907_v5 = vmul.f32 %v3804_v60, %v1902_v46  ;;  %v3082_v7 = vpack.c.bf16 %v924_v3, %v922_v63  ;;  %v3084_v17 = vpack.c.bf16 %v923_v12, %v921_v11  ;;  %v925_v32 = vld [vmem:[#allocation7 + $0x100] sm:$0xff] }
 0x1f1   :  { %1615 = vrot.lane.b32.xlu1 %v1611_v38, %s3505_s0  ;;  %v919_v38 = vld [vmem:[#allocation7 + $0xd0] sm:$0xff]  ;;  %v501_v6 = vrot.slane %v3855_v30, %v3900_v36  ;;  %v1908_v13 = vmul.f32 %v3802_v44, %v1906_v61  ;;  %v650_v39 = vadd.f32 %v649_v62, %v648_v42  ;;  %v3086_v46 = vpack.c.bf16 %v928_v25, %v926_v50  ;;  %v936_v62 = vld [vmem:[#allocation7 + $0x158] sm:$0xff] }
 0x1f2   :  { %3077 = vmatpush1.bf16.msra.mxu0 %v3076_v45  ;;  %v3920_v37 = vadd.f32 %v644_v0, %v643_v41  ;;  %v931_v61 = vld [vmem:[#allocation7 + $0x130] sm:$0xff]  ;;  %v934_v0 = vld [vmem:[#allocation7 + $0x148] sm:$0xff] }
 0x1f3   :  { %1617 = vrot.lane.b32.xlu0 %v1612_v35, %s3505_s0  ;;  %3079 = vmatprep.subr.bf16.mxu0 %v3078_v54  ;;  %v3080_v35 = vpack.c.bf16 %v919_v38, %v917_v52  ;;  %v508_v30 = vrot.slane %v501_v6, %v3900_v36  ;;  %v651_v19 = vrot.slane %v650_v39, 1  ;;  %v3092_v11 = vpack.c.bf16 %v931_v61, %v929_v51 }
 0x1f4   :  { %v3889_v28 = vpop.eup %3337  ;;  %3141 = vmatpush1.bf16.msra.mxu1 %v3076_v45  ;;  %v666_v44 = vrot.slane %v3920_v37, %v3900_v36  ;;  %v3094_v12 = vpack.c.bf16 %v936_v62, %v934_v0 }
 0x1f5   :  { %1689 = vrot.lane.b32.xlu1 %v1685_v8, %s3505_s0  ;;  %v807_v47 = vsel %vm806_vm8, %v3889_v28, 0.0  ;;  %3143 = vmatprep.subr.bf16.mxu1 %v3078_v54  ;;  %v3941_v31 = vadd.f32 %v651_v19, %v650_v39  ;;  %v935_v39 = vld [vmem:[#allocation7 + $0x150] sm:$0xff] }
 0x1f6   :  { %v3904_v59 = vpop.eup %3339  ;;  %v808_v34 = vrot.slane %v807_v47, 4  ;;  %3081 = vmatpush1.bf16.msra.mxu0 %v3080_v35 }
 0x1f7   :  { %1691 = vrot.lane.b32.xlu0 %v1686_v15, %s3505_s0  ;;  %v814_v9 = vsel %vm806_vm8, %v3904_v59, 0.0  ;;  %v515_v15 = vrot.slane %v3859_v2, %v3900_v36  ;;  %3083 = vmatprep.subr.bf16.mxu0 %v3082_v7  ;;  %v680_v3 = vrot.slane %v3941_v31, %v3900_v36  ;;  %vm4144_vm8 = vcmp.lt.s32.totalorder %v285_v49, 64 }
 0x1f8   :  { %v809_v60 = vadd.f32 %v808_v34, %v807_v47  ;;  %v815_v16 = vrot.slane %v814_v9, 4  ;;  %3145 = vmatpush1.bf16.msra.mxu1 %v3080_v35  ;;  %v930_v47 = vld [vmem:[#allocation7 + $0x128] sm:$0xff]  ;;  %vm707_vm13 = vmand %vm4139_vm7, %vm4144_vm8 }
 0x1f9   :  { %1763 = vrot.lane.b32.xlu1 %v1759_v22, %s3505_s0  ;;  %3147 = vmatprep.subr.bf16.mxu1 %v3082_v7  ;;  %v522_v22 = vrot.slane %v515_v15, %v3900_v36  ;;  %v3090_v6 = vpack.c.bf16 %v932_v48, %v930_v47 }
 0x1fa   :  { %v810_v21 = vrot.slane %v809_v60, 2  ;;  %3085 = vmatpush1.bf16.msra.mxu0 %v3084_v17  ;;  %v816_v23 = vadd.f32 %v815_v16, %v814_v9 }
 0x1fb   :  { %1765 = vrot.lane.b32.xlu0 %v1760_v29, %s3505_s0  ;;  %v673_v29 = vrot.slane %v666_v44, %v3900_v36  ;;  %3087 = vmatprep.subr.bf16.mxu0 %v3086_v46  ;;  %v940_v44 = vld [vmem:[#allocation7 + $0x178] sm:$0xff] }
 0x1fc   :  { %3149 = vmatpush1.bf16.msra.mxu1 %v3084_v17  ;;  %v811_v42 = vadd.f32 %v810_v21, %v809_v60  ;;  %v938_v17 = vld [vmem:[#allocation7 + $0x168] sm:$0xff] }
 0x1fd   :  { %1837 = vrot.lane.b32.xlu1 %v1833_v27, %s3505_s0  ;;  %v817_v27 = vrot.slane %v816_v23, 2  ;;  %3151 = vmatprep.subr.bf16.mxu1 %v3086_v46 }
 0x1fe   :  { %v3914_v8 = vpop.xlane.xlu0 %1119 }
 0x1ff   :  { %1839 = vrot.lane.b32.xlu0 %v1834_v40, %s3505_s0  ;;  %v1145_v26 = vrot.slane %v3914_v8, %v3626_v53  ;;  %v1207_v41 = vrot.slane %v3914_v8, %v3629_v55  ;;  %v3088_v40 = vpack.c.bf16 %v927_v33, %v925_v32  ;;  %v1273_v35 = vrot.slane %v3914_v8, %v3632_v43 }
 0x200   :  { %v818_v9 = vadd.f32 %v817_v27, %v816_v23  ;;  %v1405_v27 = vrot.slane %v3914_v8, %v3702_v1 }
 0x201   :  { %1911 = vrot.lane.b32.xlu1 %v1907_v5, %s3505_s0  ;;  %v1150_v63 = vadd.f32 %v1145_v26, %v3914_v8  ;;  %v1212_v34 = vadd.f32 %v1207_v41, %v3914_v8  ;;  %v812_v5 = vrot.slane %v811_v42, 1  ;;  %3089 = vmatpush1.bf16.msra.mxu0 %v3088_v40  ;;  %v937_v26 = vld [vmem:[#allocation7 + $0x160] sm:$0xff] }
 0x202   :  { %v3930_v20 = vpop.xlane.xlu0 %1135  ;;  %3153 = vmatpush1.bf16.msra.mxu1 %v3088_v40  ;;  %3091 = vmatprep.subr.bf16.mxu0 %v3090_v6  ;;  %v819_v25 = vrot.slane %v818_v9, 1  ;;  %v1410_v61 = vadd.f32 %v1405_v27, %v3914_v8 }
 0x203   :  { %1913 = vrot.lane.b32.xlu0 %v1908_v13, %s3505_s0  ;;  %v3926_v18 = vpop.xlane.xlu1 %1122  ;;  %v933_v13 = vld [vmem:[#allocation7 + $0x140] sm:$0xff]  ;;  %3155 = vmatprep.subr.bf16.mxu1 %v3090_v6  ;;  %v1152_v16 = vadd.f32 2e-12, %v1150_v63  ;;  %v1214_v19 = vadd.f32 2e-12, %v1212_v34  ;;  %v3967_v50 = vadd.f32 %v812_v5, %v811_v42  ;;  %v1471_v5 = vrot.slane %v3914_v8, %v3718_v10 }
 0x204   :  { %v1149_v2 = vrot.slane %v3926_v18, %v3626_v53  ;;  %v1211_v24 = vrot.slane %v3926_v18, %v3629_v55  ;;  %v1277_v38 = vrot.slane %v3926_v18, %v3632_v43  ;;  %v1343_v15 = vrot.slane %v3926_v18, %v3639_v58 }
 0x205   :  { %523 = vrot.lane.b32.xlu1 %v508_v30, %s3511_s8  ;;  %3093 = vmatpush1.bf16.msra.mxu0 %v3092_v11  ;;  %v3096_v23 = vpack.c.bf16 %v935_v39, %v933_v13  ;;  %v1409_v46 = vrot.slane %v3926_v18, %v3702_v1  ;;  %v834_v48 = vrot.slane %v3967_v50, %v3900_v36  ;;  %v942_v39 = vld [vmem:[#allocation7 + $0x188] sm:$0xff] }
 0x206   :  { %v1151_v45 = vadd.f32 %v1149_v2, %v3926_v18  ;;  %v3947_v52 = vpop.xlane.xlu0 %1138  ;;  %v1213_v54 = vadd.f32 %v1211_v24, %v3926_v18  ;;  %v1278_v2 = vadd.f32 %v1273_v35, %v3914_v8  ;;  %v1339_v24 = vrot.slane %v3914_v8, %v3639_v58  ;;  %3095 = vmatprep.subr.bf16.mxu0 %v3094_v12 }
 0x207   :  { %534 = vrot.lane.b32.xlu0 %v508_v30, %s3512_s9  ;;  %v1279_v30 = vadd.f32 %v1277_v38, %v3926_v18  ;;  %3157 = vmatpush1.bf16.msra.mxu1 %v3092_v11  ;;  %v1198_v32 = vpop.xlane.xlu1 %1197  ;;  %v1345_v41 = vadd.f32 %v1343_v15, %v3926_v18  ;;  %v3977_v51 = vadd.f32 %v819_v25, %v818_v9 }
 0x208   :  { %v1153_v7 = vadd.f32 2e-12, %v1151_v45  ;;  %v1215_v60 = vadd.f32 2e-12, %v1213_v54  ;;  %v3098_v45 = vpack.c.bf16 %v940_v44, %v938_v17  ;;  %3159 = vmatprep.subr.bf16.mxu1 %v3094_v12  ;;  %v1280_v42 = vadd.f32 2e-12, %v1278_v2 }
 0x209   :  { %525 = vrot.lane.b32.xlu1 %v522_v22, %s3511_s8  ;;  %v1281_v33 = vadd.f32 2e-12, %v1279_v30  ;;  %3097 = vmatpush1.bf16.msra.mxu0 %v3096_v23  ;;  %v1344_v38 = vadd.f32 %v1339_v24, %v3914_v8  ;;  %v1347_v40 = vadd.f32 2e-12, %v1345_v41  ;;  %v1411_v62 = vadd.f32 %v1409_v46, %v3926_v18  ;;  %v941_v30 = vld [vmem:[#allocation7 + $0x180] sm:$0xff]  ;;  %v946_v2 = vld [vmem:[#allocation7 + $0x1a8] sm:$0xff] }
 0x20a   :  { %v1201_v21 = vpop.xlane.xlu0 %1200  ;;  %3341 = vrcp.f32 %v1153_v7  ;;  %3099 = vmatprep.subr.bf16.mxu0 %v3098_v45  ;;  %v1475_v63 = vrot.slane %v3926_v18, %v3718_v10  ;;  %v848_v34 = vrot.slane %v3977_v51, %v3900_v36  ;;  %v1412_v7 = vadd.f32 2e-12, %v1410_v61  ;;  %v952_v46 = vld [vmem:[#allocation7 + $0x1d8] sm:$0xff] }
 0x20b   :  { %699 = vrot.lane.b32.xlu0 %v673_v29, %s3513_s10  ;;  %3343 = vrcp.f32 %v1215_v60  ;;  %3161 = vmatpush1.bf16.msra.mxu1 %v3096_v23  ;;  %v1264_v0 = vpop.xlane.xlu1 %1263  ;;  %v1346_v35 = vadd.f32 2e-12, %v1344_v38  ;;  %v1413_v12 = vadd.f32 2e-12, %v1411_v62  ;;  %v944_v60 = vld [vmem:[#allocation7 + $0x198] sm:$0xff]  ;;  %v1203_v17 = vmul.f32 2.0, %v1201_v21 }
 0x20c   :  { %3345 = vrcp.f32 %v1152_v16  ;;  %3163 = vmatprep.subr.bf16.mxu1 %v3098_v45  ;;  %v1477_v13 = vadd.f32 %v1475_v63, %v3926_v18  ;;  %v1141_v16 = vmul.f32 2.0, %v3947_v52  ;;  %v855_v44 = vrot.slane %v848_v34, %v3900_v36  ;;  %v947_v21 = vld [vmem:[#allocation7 + $0x1b0] sm:$0xff] }
 0x20d   :  { %536 = vrot.lane.b32.xlu1 %v522_v22, %s3512_s9  ;;  %v687_v22 = vrot.slane %v680_v3, %v3900_v36  ;;  %3347 = vrcp.f32 %v1214_v19  ;;  %v841_v3 = vrot.slane %v834_v48, %v3900_v36  ;;  %v943_v19 = vld [vmem:[#allocation7 + $0x190] sm:$0xff]  ;;  %v1140_v24 = vmul.f32 2.0, %v3930_v20  ;;  %v945_v36 = vld [vmem:[#allocation7 + $0x1a0] sm:$0xff] }
 0x20e   :  { %3349 = vrcp.f32 %v1281_v33  ;;  %v1267_v54 = vpop.xlane.xlu0 %1266  ;;  %v3102_v52 = vpack.c.bf16 %v944_v60, %v942_v39  ;;  %v1479_v45 = vadd.f32 2e-12, %v1477_v13  ;;  %v3104_v27 = vpack.c.bf16 %v943_v19, %v941_v30 }
 0x20f   :  { %3351 = vrcp.f32 %v1280_v42  ;;  %v1330_v25 = vpop.xlane.xlu1 %1329  ;;  %v950_v42 = vld [vmem:[#allocation7 + $0x1c8] sm:$0xff]  ;;  %v1269_v48 = vmul.f32 2.0, %v1267_v54  ;;  %v1268_v38 = vmul.f32 2.0, %v1264_v0  ;;  %v3108_v63 = vpack.c.bf16 %v947_v21, %v945_v36 }
 0x210   :  { %3353 = vrcp.f32 %v1347_v40  ;;  %v3110_v54 = vpack.c.bf16 %v952_v46, %v950_v42  ;;  %v1334_v13 = vmul.f32 2.0, %v1330_v25 }
 0x211   :  { %688 = vrot.lane.b32.xlu1 %v673_v29, %s3499_s29  ;;  %v939_v29 = vld [vmem:[#allocation7 + $0x170] sm:$0xff]  ;;  %3355 = vrcp.f32 %v1346_v35 }
 0x212   :  { %v3100_v47 = vpack.c.bf16 %v939_v29, %v937_v26  ;;  %v1333_v11 = vpop.xlane.xlu0 %1332  ;;  %v1476_v26 = vadd.f32 %v1471_v5, %v3914_v8  ;;  %v1202_v29 = vmul.f32 2.0, %v1198_v32  ;;  %3357 = vrcp.f32 %v1413_v12  ;;  %v949_v5 = vld [vmem:[#allocation7 + $0x1c0] sm:$0xff] }
 0x213   :  { %3359 = vrcp.f32 %v1412_v7  ;;  %v1335_v40 = vmul.f32 2.0, %v1333_v11  ;;  %v1396_v0 = vpop.xlane.xlu1 %1395  ;;  %v956_v11 = vld [vmem:[#allocation7 + $0x1f8] sm:$0xff] }
 0x214   :  { %3101 = vmatpush1.bf16.msra.mxu0 %v3100_v47  ;;  %3165 = vmatpush1.bf16.msra.mxu1 %v3100_v47  ;;  %v3342_v6 = vpop.eup %3341  ;;  %v1478_v62 = vadd.f32 2e-12, %v1476_v26  ;;  %3361 = vrcp.f32 %v1479_v45 }
 0x215   :  { %690 = vrot.lane.b32.xlu1 %v687_v22, %s3499_s29  ;;  %v3344_v9 = vpop.eup %3343  ;;  %v3996_v18 = vmul.f32 %v3342_v6, %v1141_v16  ;;  %3103 = vmatprep.subr.bf16.mxu0 %v3102_v52  ;;  %v951_v6 = vld [vmem:[#allocation7 + $0x1d0] sm:$0xff] }
 0x216   :  { %v3346_v15 = vpop.eup %3345  ;;  %v3998_v33 = vmul.f32 %v3344_v9, %v1203_v17  ;;  %3167 = vmatprep.subr.bf16.mxu1 %v3102_v52  ;;  %v1399_v61 = vpop.xlane.xlu0 %1398  ;;  %v954_v9 = vld [vmem:[#allocation7 + $0x1e8] sm:$0xff]  ;;  %3363 = vrcp.f32 %v1478_v62  ;;  %v3112_v16 = vpack.c.bf16 %v951_v6, %v949_v5 }
 0x217   :  { %v3348_v23 = vpop.eup %3347  ;;  %v4001_v47 = vmul.f32 %v3346_v15, %v1140_v24  ;;  %v1174_v34 = vsel %vm1172_vm9, %v3996_v18, 0.0  ;;  %v1401_v30 = vmul.f32 2.0, %v1399_v61 }
 0x218   :  { %v3350_v41 = vpop.eup %3349  ;;  %v4003_v8 = vmul.f32 %v3348_v23, %v1202_v29  ;;  %3105 = vmatpush1.bf16.msra.mxu0 %v3104_v27  ;;  %3169 = vmatpush1.bf16.msra.mxu1 %v3104_v27  ;;  %v1236_v35 = vrot.slane %v3998_v33, 1  ;;  %v955_v23 = vld [vmem:[#allocation7 + $0x1f0] sm:$0xff]  ;;  %v1400_v29 = vmul.f32 2.0, %v1396_v0 }
 0x219   :  { %701 = vrot.lane.b32.xlu1 %v687_v22, %s3513_s10  ;;  %v948_v22 = vld [vmem:[#allocation7 + $0x1b8] sm:$0xff]  ;;  %v3352_v32 = vpop.eup %3351  ;;  %v1173_v39 = vsel %vm1172_vm9, %v4001_v47, 0.0 }
 0x21a   :  { %v3106_v20 = vpack.c.bf16 %v948_v22, %v946_v2  ;;  %v3354_v7 = vpop.eup %3353  ;;  %v4010_v12 = vmul.f32 %v3352_v32, %v1268_v38  ;;  %v1235_v60 = vrot.slane %v4003_v8, 1  ;;  %v1175_v15 = vadd.f32 %v1174_v34, %v1173_v39  ;;  %v953_v22 = vld [vmem:[#allocation7 + $0x1e0] sm:$0xff]  ;;  %v1465_v25 = vpop.xlane.xlu0 %1464 }
 0x21b   :  { %v4015_v17 = vmul.f32 %v3354_v7, %v1335_v40  ;;  %v3114_v2 = vpack.c.bf16 %v956_v11, %v954_v9  ;;  %v3356_v24 = vpop.eup %3355  ;;  %v3116_v27 = vpack.c.bf16 %v955_v23, %v953_v22  ;;  %v1467_v46 = vmul.f32 2.0, %v1465_v25 }
 0x21c   :  { %3107 = vmatprep.subr.bf16.mxu0 %v3106_v20  ;;  %3171 = vmatprep.subr.bf16.mxu1 %v3106_v20  ;;  %v1349_v26 = vmul.f32 %v3356_v24, %v1334_v13  ;;  %v1239_v52 = vsel %vm1172_vm9, %v1235_v60, 0.0  ;;  %v1301_v36 = vrot.slane %v4010_v12, 2  ;;  %v3358_v21 = vpop.eup %3357  ;;  %v1159_v22 = vsel %vm1158_vm10, %v4001_v47, 0.0 }
 0x21d   :  { %856 = vrot.lane.b32.xlu1 %v841_v3, %s3509_s7  ;;  %v4005_v3 = vmul.f32 %v3350_v41, %v1269_v48  ;;  %3109 = vmatpush1.bf16.msra.mxu0 %v3108_v63  ;;  %v1462_v41 = vpop.xlane.xlu1 %1461  ;;  %v3360_v20 = vpop.eup %3359  ;;  %v1417_v42 = vmul.f32 %v3358_v21, %v1401_v30  ;;  %v1368_v32 = vrot.slane %v4015_v17, 3  ;;  %v1221_v24 = vsel %vm1158_vm10, %v3998_v33, 0.0 }
 0x21e   :  { %3173 = vmatpush1.bf16.msra.mxu1 %v3108_v63  ;;  %3111 = vmatprep.subr.bf16.mxu0 %v3110_v54  ;;  %v1415_v38 = vmul.f32 %v3360_v20, %v1400_v29  ;;  %v1466_v40 = vmul.f32 2.0, %v1462_v41  ;;  %v1305_v61 = vsel %vm1172_vm9, %v1301_v36, 0.0  ;;  %v1367_v62 = vrot.slane %v1349_v26, 3  ;;  %v3362_v63 = vpop.eup %3361 }
 0x21f   :  { %v1302_v19 = vrot.slane %v4005_v3, 2  ;;  %3175 = vmatprep.subr.bf16.mxu1 %v3110_v54  ;;  %v1372_v54 = vsel %vm1172_vm9, %v1368_v32, 0.0  ;;  %v1434_v5 = vrot.slane %v1417_v42, 4  ;;  %v1220_v25 = vsel %vm1158_vm10, %v4003_v8, 0.0 }
 0x220   :  { %v3364_v6 = vpop.eup %3363  ;;  %v1371_v0 = vsel %vm1172_vm9, %v1367_v62, 0.0  ;;  %v1433_v9 = vrot.slane %v1415_v38, 4  ;;  %v1222_v29 = vadd.f32 %v1221_v24, %v1220_v25  ;;  %v1286_v36 = vsel %vm1158_vm10, %v4010_v12, 0.0 }
 0x221   :  { %858 = vrot.lane.b32.xlu1 %v855_v44, %s3509_s7  ;;  %v1240_v44 = vsel %vm1172_vm9, %v1236_v35, 0.0  ;;  %3113 = vmatpush1.bf16.msra.mxu0 %v3112_v16  ;;  %v1306_v48 = vsel %vm1172_vm9, %v1302_v19, 0.0  ;;  %v1483_v35 = vmul.f32 %v3362_v63, %v1467_v46  ;;  %v1481_v7 = vmul.f32 %v3364_v6, %v1466_v40 }
 0x222   :  { %v1241_v45 = vadd.f32 %v1240_v44, %v1239_v52  ;;  %3177 = vmatpush1.bf16.msra.mxu1 %v3112_v16  ;;  %3115 = vmatprep.subr.bf16.mxu0 %v3114_v2  ;;  %v1307_v34 = vadd.f32 %v1306_v48, %v1305_v61  ;;  %v1373_v11 = vadd.f32 %v1372_v54, %v1371_v0  ;;  %v1438_v13 = vsel %vm1172_vm9, %v1434_v5, 0.0 }
 0x223   :  { %3179 = vmatprep.subr.bf16.mxu1 %v3114_v2  ;;  %v1500_v39 = vrot.slane %v1483_v35, 5  ;;  %v1437_v60 = vsel %vm1172_vm9, %v1433_v9, 0.0  ;;  %v1499_v30 = vrot.slane %v1481_v7, 5  ;;  %v1160_v2 = vsel %vm1158_vm10, %v3996_v18, 0.0 }
 0x224   :  { %v1161_v23 = vadd.f32 %v1160_v2, %v1159_v22  ;;  %v1287_v52 = vsel %vm1158_vm10, %v4005_v3, 0.0  ;;  %v1353_v47 = vsel %vm1158_vm10, %v4015_v17, 0.0  ;;  %v1352_v21 = vsel %vm1158_vm10, %v1349_v26, 0.0 }
 0x225   :  { %3117 = vmatpush1.bf16.msra.mxu0 %v3116_v27  ;;  %v1504_v16 = vsel %vm1172_vm9, %v1500_v39, 0.0  ;;  %v1503_v44 = vsel %vm1172_vm9, %v1499_v30, 0.0  ;;  %v1288_v18 = vadd.f32 %v1287_v52, %v1286_v36  ;;  %v1354_v33 = vadd.f32 %v1353_v47, %v1352_v21 }
 0x226   :  { %3181 = vmatpush1.bf16.msra.mxu1 %v3116_v27  ;;  %v1505_v19 = vadd.f32 %v1504_v16, %v1503_v44  ;;  %v1419_v41 = vsel %vm1158_vm10, %v1417_v42, 0.0  ;;  %v1418_v8 = vsel %vm1158_vm10, %v1415_v38, 0.0  ;;  %v1485_v20 = vsel %vm1158_vm10, %v1483_v35, 0.0 }
 0x227   :  { %v1420_v27 = vadd.f32 %v1419_v41, %v1418_v8  ;;  %v1484_v12 = vsel %vm1158_vm10, %v1481_v7, 0.0 }
 0x228   :  { %v1486_v46 = vadd.f32 %v1485_v20, %v1484_v12  ;;  %v1997_v12 = vrot.slane %v3814_v4, %v3626_v53 }
 0x22a   :  { %1176 = vadd.xlane.f32.xlu0 %v1175_v15  ;;  %v1439_v15 = vadd.f32 %v1438_v13, %v1437_v60 }
 0x22e   :  { %1242 = vadd.xlane.f32.xlu0 %v1241_v45 }
 0x232   :  { %1308 = vadd.xlane.f32.xlu0 %v1307_v34 }
 0x236   :  { %1374 = vadd.xlane.f32.xlu0 %v1373_v11 }
 0x23a   :  { %1440 = vadd.xlane.f32.xlu0 %v1439_v15 }
 0x23e   :  { %1506 = vadd.xlane.f32.xlu0 %v1505_v19 }
 0x245   :  { %1162 = vadd.xlane.f32.xlu1 %v1161_v23 }
 0x249   :  { %1223 = vadd.xlane.f32.xlu1 %v1222_v29 }
 0x24d   :  { %1289 = vadd.xlane.f32.xlu1 %v1288_v18 }
 0x251   :  { %1355 = vadd.xlane.f32.xlu1 %v1354_v33 }
 0x253   :  { %v1526_v45 = vpop.permute.xlu0 %1525 }
 0x254   :  { %v1532_v3 = vsel %vm357_vm0, %v1526_v45, 0.0  ;;  %v1524_v17 = vpop.permute.xlu1 %1523 }
 0x255   :  { %1421 = vadd.xlane.f32.xlu1 %v1420_v27  ;;  %1533 = vadd.xlane.f32.xlu0 %v1532_v3  ;;  %v1529_v48 = vsel %vm357_vm0, %v1524_v17, 0.0  ;;  %v2002_v17 = vmul.f32 %v3814_v4, %v1997_v12 }
 0x259   :  { %1487 = vadd.xlane.f32.xlu1 %v1486_v46 }
 0x25b   :  { %v1982_v26 = vpop.permute.xlu1 %1981 }
 0x25c   :  { %v1988_v18 = vsel %vm1987_vm1, %v1982_v26, 0.0  ;;  %v2001_v26 = vrot.slane %v3820_v14, %v3626_v53 }
 0x25d   :  { %v1984_v42 = vpop.permute.xlu0 %1983  ;;  %1530 = vadd.xlane.f32.xlu1 %v1529_v48 }
 0x25e   :  { %v1991_v21 = vsel %vm1987_vm1, %v1984_v42, 0.0  ;;  %v2003_v42 = vmul.f32 %v3820_v14, %v2001_v26 }
 0x25f   :  { %v1548_v32 = vpop.permute.xlu1 %1547 }
 0x260   :  { %v1553_v38 = vsel %vm357_vm0, %v1548_v32, 0.0 }
 0x261   :  { %v1550_v40 = vpop.permute.xlu0 %1549  ;;  %1554 = vadd.xlane.f32.xlu1 %v1553_v38 }
 0x262   :  { %v1556_v61 = vsel %vm357_vm0, %v1550_v40, 0.0 }
 0x263   :  { %1557 = vadd.xlane.f32.xlu0 %v1556_v61  ;;  %v1616_v62 = vpop.permute.xlu1 %1615 }
 0x264   :  { %v1621_v63 = vsel %vm357_vm0, %v1616_v62, 0.0 }
 0x265   :  { %v1618_v34 = vpop.permute.xlu0 %1617  ;;  %1622 = vadd.xlane.f32.xlu1 %v1621_v63 }
 0x266   :  { %v1624_v35 = vsel %vm357_vm0, %v1618_v34, 0.0 }
 0x267   :  { %1625 = vadd.xlane.f32.xlu0 %v1624_v35  ;;  %v1690_v54 = vpop.permute.xlu1 %1689 }
 0x268   :  { %v1695_v5 = vsel %vm357_vm0, %v1690_v54, 0.0 }
 0x269   :  { %v1692_v6 = vpop.permute.xlu0 %1691  ;;  %1696 = vadd.xlane.f32.xlu1 %v1695_v5 }
 0x26a   :  { %v1698_v7 = vsel %vm357_vm0, %v1692_v6, 0.0 }
 0x26b   :  { %1699 = vadd.xlane.f32.xlu0 %v1698_v7  ;;  %v1764_v0 = vpop.permute.xlu1 %1763 }
 0x26c   :  { %v1769_v9 = vsel %vm357_vm0, %v1764_v0, 0.0 }
 0x26d   :  { %v1766_v11 = vpop.permute.xlu0 %1765  ;;  %1770 = vadd.xlane.f32.xlu1 %v1769_v9 }
 0x26e   :  { %v1772_v13 = vsel %vm357_vm0, %v1766_v11, 0.0 }
 0x26f   :  { %1773 = vadd.xlane.f32.xlu0 %v1772_v13  ;;  %v1838_v39 = vpop.permute.xlu1 %1837 }
 0x270   :  { %v1843_v60 = vsel %vm357_vm0, %v1838_v39, 0.0 }
 0x271   :  { %v1840_v30 = vpop.permute.xlu0 %1839  ;;  %1844 = vadd.xlane.f32.xlu1 %v1843_v60 }
 0x272   :  { %v1846_v15 = vsel %vm357_vm0, %v1840_v30, 0.0 }
 0x273   :  { %1847 = vadd.xlane.f32.xlu0 %v1846_v15  ;;  %v1912_v19 = vpop.permute.xlu1 %1911 }
 0x274   :  { %v1917_v2 = vsel %vm357_vm0, %v1912_v19, 0.0 }
 0x275   :  { %v1914_v24 = vpop.permute.xlu0 %1913  ;;  %1918 = vadd.xlane.f32.xlu1 %v1917_v2 }
 0x276   :  { %v1920_v52 = vsel %vm357_vm0, %v1914_v24, 0.0  ;;  %vm655_vm0 = vmand %vm4087_vm2, %vm4092_vm3  ;;  %vm2446_vm2 = vcmask 521216  }
 0x277   :  { %1921 = vadd.xlane.f32.xlu0 %v1920_v52  ;;  %v524_v36 = vpop.permute.xlu1 %523 }
 0x278   :  { %532 = vst.msk [vmem:[#allocation3] sm:$0x1] %vm531_vm15, %v524_v36 }
 0x279   :  { %v535_v47 = vpop.permute.xlu0 %534  ;;  %1989 = vadd.xlane.f32.xlu1 %v1988_v18 }
 0x27a   :  { %543 = vst.msk [vmem:[#allocation3] sm:$0x1] %vm542_vm4, %v535_v47 }
 0x27b   :  { %1992 = vadd.xlane.f32.xlu0 %v1991_v21  ;;  %v526_v33 = vpop.permute.xlu1 %525  ;;  %656 = vst.msk [vmem:[#allocation3] sm:$0x1] %vm655_vm0, %v3920_v37 }
 0x27c   :  { %533 = vst.msk [vmem:[#allocation3 + $0x2] sm:$0x1] %vm531_vm15, %v526_v33  ;;  %vm696_vm15 = vmand %vm4129_vm5, %vm4134_vm6 }
 0x27d   :  { %v700_v20 = vpop.permute.xlu0 %699 }
 0x27f   :  { %v537_v45 = vpop.permute.xlu1 %536 }
 0x280   :  { %544 = vst.msk [vmem:[#allocation3 + $0x2] sm:$0x1] %vm542_vm4, %v537_v45 }
 0x281   :  { %657 = vst.msk [vmem:[#allocation3 + $0x2] sm:$0x1] %vm655_vm0, %v3941_v31 }
 0x283   :  { %v689_v3 = vpop.permute.xlu1 %688 }
 0x284   :  { %697 = vst.msk [vmem:[#allocation3] sm:$0x1] %vm696_vm15, %v689_v3 }
 0x285   :  { %708 = vst.msk [vmem:[#allocation3] sm:$0x1] %vm707_vm13, %v700_v20 }
 0x286   :  { %824 = vst.msk [vmem:[#allocation3] sm:$0x1] %vm4169_vm14, %v3967_v50 }
 0x287   :  { %v691_v31 = vpop.permute.xlu1 %690 }
 0x288   :  { %698 = vst.msk [vmem:[#allocation3 + $0x2] sm:$0x1] %vm696_vm15, %v691_v31 }
 0x28a   :  { %2006 = vrot.lane.b32.xlu1 %v2002_v17, %s3507_s30 }
 0x28b   :  { %v702_v46 = vpop.permute.xlu1 %701 }
 0x28c   :  { %709 = vst.msk [vmem:[#allocation3 + $0x2] sm:$0x1] %vm707_vm13, %v702_v46 }
 0x28d   :  { %825 = vst.msk [vmem:[#allocation3 + $0x2] sm:$0x1] %vm4169_vm14, %v3977_v51 }
 0x28f   :  { %v857_v48 = vpop.permute.xlu1 %856 }
 0x290   :  { %863 = vst.msk [vmem:[#allocation3 + $0x1] sm:$0x1] %vm4144_vm8, %v857_v48 }
 0x291   :  { %865 = vst.msk [vmem:[#allocation3 + $0x1] sm:$0x1] %vm4169_vm14, %v3967_v50  ;;  %2008 = vrot.lane.b32.xlu0 %v2003_v42, %s3507_s30 }
 0x293   :  { %v859_v32 = vpop.permute.xlu1 %858 }
 0x294   :  { %864 = vst.msk [vmem:[#allocation3 + $0x3] sm:$0x1] %vm4144_vm8, %v859_v32 }
 0x295   :  { %866 = vst.msk [vmem:[#allocation3 + $0x3] sm:$0x1] %vm4169_vm14, %v3977_v51 }
 0x298   :  { %v867_v38 = vld [vmem:[#allocation3] sm:$0x3] }
 0x299   :  { %v874_v40 = vrot.slane %v867_v38, %v3626_v53  ;;  %v878_v61 = vrot.slane %v867_v38, %v3629_v55 }
 0x29b   :  { %v887_v62 = vcombine.low %v874_v40, %v878_v61 }
 0x29c   :  { %v868_v63 = vld [vmem:[#allocation3 + $0x2] sm:$0x3] }
 0x29d   :  { %v891_v34 = vmul.f32 %v887_v62, %v3634_v56  ;;  %v882_v50 = vrot.slane %v868_v63, %v3626_v53  ;;  %v886_v35 = vrot.slane %v868_v63, %v3629_v55 }
 0x29f   :  { %v958_v54 = vcombine.high %v891_v34, %v891_v34  ;;  %v888_v5 = vcombine.low %v882_v50, %v886_v35 }
 0x2a1   :  { %1024 = vmatprep.mubr.f32.mxu0 %v958_v54  ;;  %v892_v6 = vmul.f32 %v888_v5, %v3636_v57 }
 0x2a2   :  { %1025 = vmatmul.mubr.f32.vlgmr.msra.gmra.mrb[2].mxu0 %v891_v34 }
 0x2a3   :  { %v1037_v51 = vcombine.high %v892_v6, %v892_v6 }
 0x2a5   :  { %1103 = vmatprep.mubr.f32.mxu1 %v1037_v51 }
 0x2a6   :  { %1104 = vmatmul.mubr.f32.vlgmr.msra.gmra.mrb[2].mxu1 %v892_v6 }
 0x2b7   :  { %v1177_v7 = vpop.xlane.xlu0 %1176 }
 0x2b8   :  { %v1178_v9 = vrot.slane %v1177_v7, 4 }
 0x2ba   :  { %v1179_v13 = vadd.f32 %v1178_v9, %v1177_v7 }
 0x2bb   :  { %v1243_v0 = vpop.xlane.xlu0 %1242 }
 0x2bc   :  { %v1244_v39 = vrot.slane %v1243_v0, 4  ;;  %v1180_v60 = vrot.slane %v1179_v13, 2 }
 0x2be   :  { %v1245_v30 = vadd.f32 %v1244_v39, %v1243_v0  ;;  %v1181_v22 = vadd.f32 %v1180_v60, %v1179_v13 }
 0x2bf   :  { %v1309_v11 = vpop.xlane.xlu0 %1308 }
 0x2c0   :  { %v1310_v15 = vrot.slane %v1309_v11, 4  ;;  %v1246_v25 = vrot.slane %v1245_v30, 2  ;;  %v1182_v21 = vrot.slane %v1181_v22, 1 }
 0x2c2   :  { %v1311_v57 = vadd.f32 %v1310_v15, %v1309_v11  ;;  %v1247_v8 = vadd.f32 %v1246_v25, %v1245_v30  ;;  %v1183_v17 = vadd.f32 %v1182_v21, %v1181_v22 }
 0x2c3   :  { %v1375_v56 = vpop.xlane.xlu0 %1374 }
 0x2c4   :  { %v1376_v23 = vrot.slane %v1375_v56, 4  ;;  %v1312_v45 = vrot.slane %v1311_v57, 2  ;;  %v1248_v42 = vrot.slane %v1247_v8, 1 }
 0x2c6   :  { %v1377_v33 = vadd.f32 %v1376_v23, %v1375_v56  ;;  %v1313_v32 = vadd.f32 %v1312_v45, %v1311_v57  ;;  %v1249_v51 = vadd.f32 %v1248_v42, %v1247_v8 }
 0x2c7   :  { %v1441_v19 = vpop.xlane.xlu0 %1440 }
 0x2c8   :  { %v1442_v36 = vrot.slane %v1441_v19, 4  ;;  %v1378_v38 = vrot.slane %v1377_v33, 2  ;;  %v1314_v7 = vrot.slane %v1313_v32, 1 }
 0x2ca   :  { %v1443_v20 = vadd.f32 %v1442_v36, %v1441_v19  ;;  %v1379_v0 = vadd.f32 %v1378_v38, %v1377_v33 }
 0x2cb   :  { %v1507_v37 = vpop.xlane.xlu0 %1506 }
 0x2cc   :  { %v1508_v26 = vrot.slane %v1507_v37, 4  ;;  %v1444_v63 = vrot.slane %v1443_v20, 2  ;;  %v1380_v19 = vrot.slane %v1379_v0, 1 }
 0x2ce   :  { %v1509_v54 = vadd.f32 %v1508_v26, %v1507_v37  ;;  %v1445_v39 = vadd.f32 %v1444_v63, %v1443_v20  ;;  %v1381_v21 = vadd.f32 %v1380_v19, %v1379_v0 }
 0x2d0   :  { %v1446_v25 = vrot.slane %v1445_v39, 1 }
 0x2d2   :  { %v1163_v16 = vpop.xlane.xlu1 %1162  ;;  %v1447_v37 = vadd.f32 %v1446_v25, %v1445_v39 }
 0x2d3   :  { %v1164_v44 = vrot.slane %v1163_v16, 4 }
 0x2d5   :  { %v1165_v2 = vadd.f32 %v1164_v44, %v1163_v16  ;;  %v1315_v44 = vadd.f32 %v1314_v7, %v1313_v32 }
 0x2d6   :  { %v1224_v24 = vpop.xlane.xlu1 %1223 }
 0x2d7   :  { %v1225_v29 = vrot.slane %v1224_v24, 4  ;;  %v1166_v52 = vrot.slane %v1165_v2, 2 }
 0x2d9   :  { %v1226_v18 = vadd.f32 %v1225_v29, %v1224_v24  ;;  %v1167_v47 = vadd.f32 %v1166_v52, %v1165_v2  ;;  %v1510_v2 = vrot.slane %v1509_v54, 2 }
 0x2da   :  { %v1290_v41 = vpop.xlane.xlu1 %1289 }
 0x2db   :  { %v1291_v27 = vrot.slane %v1290_v41, 4  ;;  %v1168_v3 = vrot.slane %v1167_v47, 1  ;;  %v1227_v49 = vrot.slane %v1226_v18, 2  ;;  %v1511_v33 = vadd.f32 %v1510_v2, %v1509_v54 }
 0x2dd   :  { %v1292_v12 = vadd.f32 %v1291_v27, %v1290_v41  ;;  %v1169_v31 = vadd.f32 %v1168_v3, %v1167_v47  ;;  %v1228_v46 = vadd.f32 %v1227_v49, %v1226_v18  ;;  %v1512_v26 = vrot.slane %v1511_v33, 1 }
 0x2de   :  { %v1356_v48 = vpop.xlane.xlu1 %1355 }
 0x2df   :  { %v1357_v40 = vrot.slane %v1356_v48, 4  ;;  %3182 = vpush %v1169_v31  ;;  %v1229_v61 = vrot.slane %v1228_v46, 1  ;;  %v1293_v62 = vrot.slane %v1292_v12, 2 }
 0x2e0   :  { %3184 = vpush %v1183_v17 }
 0x2e1   :  { %v1358_v34 = vadd.f32 %v1357_v40, %v1356_v48  ;;  %v1230_v50 = vadd.f32 %v1229_v61, %v1228_v46  ;;  %v1294_v35 = vadd.f32 %v1293_v62, %v1292_v12 }
 0x2e2   :  { %v1422_v5 = vpop.xlane.xlu1 %1421  ;;  %v4203_v6 = vpop.xlane.xlu0 %1533 }
 0x2e3   :  { %v1423_v9 = vrot.slane %v1422_v5, 4  ;;  %3186 = vpush %v1230_v50  ;;  %v1295_v11 = vrot.slane %v1294_v35, 1  ;;  %v1359_v13 = vrot.slane %v1358_v34, 2  ;;  %v1710_v15 = vrot.slane %v4203_v6, %v3632_v43 }
 0x2e4   :  { %3188 = vpush %v1249_v51  ;;  %v1784_v22 = vrot.slane %v4203_v6, %v3639_v58  ;;  %v1858_v17 = vrot.slane %v4203_v6, %v3702_v1  ;;  %v1513_v51 = vadd.f32 %v1512_v26, %v1511_v33 }
 0x2e5   :  { %v1424_v56 = vadd.f32 %v1423_v9, %v1422_v5  ;;  %v1296_v60 = vadd.f32 %v1295_v11, %v1294_v35  ;;  %v1360_v30 = vadd.f32 %v1359_v13, %v1358_v34  ;;  %v1712_v18 = vadd.f32 %v1710_v15, %v4203_v6 }
 0x2e6   :  { %v1488_v16 = vpop.xlane.xlu1 %1487  ;;  %v1786_v41 = vadd.f32 %v1784_v22, %v4203_v6  ;;  %v1932_v34 = vrot.slane %v4203_v6, %v3718_v10  ;;  %v1860_v35 = vadd.f32 %v1858_v17, %v4203_v6 }
 0x2e7   :  { %v1489_v57 = vrot.slane %v1488_v16, 4  ;;  %3190 = vpush %v1296_v60  ;;  %v1361_v23 = vrot.slane %v1360_v30, 1  ;;  %v1425_v24 = vrot.slane %v1424_v56, 2  ;;  %v1714_v31 = vadd.f32 2e-12, %v1712_v18 }
 0x2e8   :  { %3192 = vpush %v1315_v44  ;;  %v1788_v32 = vadd.f32 2e-12, %v1786_v41  ;;  %v1934_v11 = vadd.f32 %v1932_v34, %v4203_v6  ;;  %v1862_v13 = vadd.f32 2e-12, %v1860_v35 }
 0x2e9   :  { %v1490_v29 = vadd.f32 %v1489_v57, %v1488_v16  ;;  %v1362_v52 = vadd.f32 %v1361_v23, %v1360_v30  ;;  %v1426_v36 = vadd.f32 %v1425_v24, %v1424_v56  ;;  %3365 = vrcp.f32 %v1714_v31 }
 0x2ea   :  { %v4210_v47 = vpop.xlane.xlu1 %1530  ;;  %3367 = vrcp.f32 %v1788_v32  ;;  %v1936_v30 = vadd.f32 2e-12, %v1934_v11 }
 0x2eb   :  { %3194 = vpush %v1362_v52  ;;  %v1427_v8 = vrot.slane %v1426_v36, 1  ;;  %v1491_v45 = vrot.slane %v1490_v29, 2  ;;  %v1706_v27 = vrot.slane %v4210_v47, %v3632_v43  ;;  %v1780_v3 = vrot.slane %v4210_v47, %v3639_v58 }
 0x2ec   :  { %3196 = vpush %v1381_v21  ;;  %v1854_v49 = vrot.slane %v4210_v47, %v3702_v1  ;;  %v1928_v54 = vrot.slane %v4210_v47, %v3718_v10 }
 0x2ed   :  { %v1428_v20 = vadd.f32 %v1427_v8, %v1426_v36  ;;  %v1492_v12 = vadd.f32 %v1491_v45, %v1490_v29  ;;  %v1711_v48 = vadd.f32 %v1706_v27, %v4210_v47  ;;  %v1785_v42 = vadd.f32 %v1780_v3, %v4210_v47 }
 0x2ee   :  { %v4221_v46 = vpop.xlane.xlu1 %1554  ;;  %v1859_v40 = vadd.f32 %v1854_v49, %v4210_v47  ;;  %v1933_v0 = vadd.f32 %v1928_v54, %v4210_v47 }
 0x2ef   :  { %3198 = vpush %v1428_v20  ;;  %v1493_v38 = vrot.slane %v1492_v12, 1  ;;  %v1713_v62 = vadd.f32 2e-12, %v1711_v48  ;;  %v1787_v63 = vadd.f32 2e-12, %v1785_v42 }
 0x2f0   :  { %v4226_v61 = vpop.xlane.xlu0 %1557  ;;  %3200 = vpush %v1447_v37  ;;  %v1861_v7 = vadd.f32 2e-12, %v1859_v40  ;;  %v1935_v56 = vadd.f32 2e-12, %v1933_v0 }
 0x2f1   :  { %v1494_v50 = vadd.f32 %v1493_v38, %v1492_v12  ;;  %3369 = vrcp.f32 %v1713_v62 }
 0x2f2   :  { %v4233_v5 = vpop.xlane.xlu1 %1622  ;;  %3371 = vrcp.f32 %v1787_v63 }
 0x2f3   :  { %3202 = vpush %v1494_v50  ;;  %3373 = vrcp.f32 %v1861_v7  ;;  %v3366_v44 = vpop.eup %3365 }
 0x2f4   :  { %v4236_v9 = vpop.xlane.xlu0 %1625  ;;  %3204 = vpush %v1513_v51  ;;  %3375 = vrcp.f32 %v1862_v13  ;;  %v3368_v2 = vpop.eup %3367 }
 0x2f5   :  { %3377 = vrcp.f32 %v1935_v56 }
 0x2f6   :  { %v1697_v39 = vpop.xlane.xlu1 %1696  ;;  %3379 = vrcp.f32 %v1936_v30 }
 0x2f7   :  { %v1701_v22 = vmul.f32 2.0, %v1697_v39 }
 0x2f8   :  { %v1700_v60 = vpop.xlane.xlu0 %1699 }
 0x2f9   :  { %v1702_v15 = vmul.f32 2.0, %v1700_v60 }
 0x2fa   :  { %v1771_v16 = vpop.xlane.xlu1 %1770 }
 0x2fb   :  { %v1775_v19 = vmul.f32 2.0, %v1771_v16  ;;  %v1718_v57 = vmul.f32 %v3366_v44, %v1702_v15  ;;  %v3370_v24 = vpop.eup %3369 }
 0x2fc   :  { %v1774_v23 = vpop.xlane.xlu0 %1773  ;;  %v3372_v29 = vpop.eup %3371  ;;  %v1716_v52 = vmul.f32 %v3370_v24, %v1701_v22 }
 0x2fd   :  { %v1776_v25 = vmul.f32 2.0, %v1774_v23  ;;  %v1790_v18 = vmul.f32 %v3372_v29, %v1775_v19  ;;  %v1720_v8 = vsel %vm1158_vm10, %v1718_v57, 0.0  ;;  %v3374_v37 = vpop.eup %3373  ;;  %v1735_v3 = vrot.slane %v1718_v57, 2 }
 0x2fe   :  { %v1845_v36 = vpop.xlane.xlu1 %1844  ;;  %v1719_v41 = vsel %vm1158_vm10, %v1716_v52, 0.0  ;;  %v1734_v27 = vrot.slane %v1716_v52, 2  ;;  %v3376_v48 = vpop.eup %3375 }
 0x2ff   :  { %v1792_v21 = vmul.f32 %v3368_v2, %v1776_v25  ;;  %v1849_v33 = vmul.f32 2.0, %v1845_v36  ;;  %v1793_v49 = vsel %vm1158_vm10, %v1790_v18, 0.0  ;;  %v4243_v26 = vadd.f32 %v1720_v8, %v1719_v41  ;;  %v3378_v40 = vpop.eup %3377 }
 0x300   :  { %v1848_v45 = vpop.xlane.xlu0 %1847  ;;  %v1808_v42 = vrot.slane %v1790_v18, 3  ;;  %v1738_v7 = vsel %vm1172_vm9, %v1734_v27, 0.0  ;;  %v1739_v0 = vsel %vm1172_vm9, %v1735_v3, 0.0  ;;  %v3380_v11 = vpop.eup %3379  ;;  %v2065_v27 = vrot.slane %v3814_v4, %v3629_v55 }
 0x301   :  { %v1794_v20 = vsel %vm1158_vm10, %v1792_v21, 0.0  ;;  %v1864_v12 = vmul.f32 %v3374_v37, %v1849_v33  ;;  %v1850_v31 = vmul.f32 2.0, %v1848_v45  ;;  %v1809_v62 = vrot.slane %v1792_v21, 3 }
 0x302   :  { %v1919_v17 = vpop.xlane.xlu1 %1918  ;;  %v4245_v38 = vadd.f32 %v1794_v20, %v1793_v49  ;;  %v4253_v60 = vadd.f32 %v1739_v0, %v1738_v7  ;;  %v1812_v44 = vsel %vm1172_vm9, %v1808_v42, 0.0  ;;  %v2070_v3 = vmul.f32 %v3814_v4, %v2065_v27 }
 0x303   :  { %v1923_v32 = vmul.f32 2.0, %v1919_v17  ;;  %v1867_v63 = vsel %vm1158_vm10, %v1864_v12, 0.0  ;;  %v1882_v34 = vrot.slane %v1864_v12, 4  ;;  %v1866_v50 = vmul.f32 %v3376_v48, %v1850_v31 }
 0x304   :  { %v1922_v35 = vpop.xlane.xlu0 %1921  ;;  %v1813_v22 = vsel %vm1172_vm9, %v1809_v62, 0.0  ;;  %v2069_v49 = vrot.slane %v3820_v14, %v3629_v55  ;;  %v1568_v62 = vrot.slane %v4203_v6, %v3626_v53 }
 0x305   :  { %v1938_v54 = vmul.f32 %v3378_v40, %v1923_v32  ;;  %v1924_v51 = vmul.f32 2.0, %v1922_v35  ;;  %v1868_v13 = vsel %vm1158_vm10, %v1866_v50, 0.0  ;;  %v1883_v39 = vrot.slane %v1866_v50, 4 }
 0x306   :  { %v4251_v56 = vpop.xlane.xlu1 %1989  ;;  %v4259_v2 = vadd.f32 %v1868_v13, %v1867_v63  ;;  %v1886_v57 = vsel %vm1172_vm9, %v1882_v34, 0.0  ;;  %v4265_v52 = vadd.f32 %v1813_v22, %v1812_v44  ;;  %v2071_v20 = vmul.f32 %v3820_v14, %v2069_v49 }
 0x307   :  { %v1941_v30 = vsel %vm1158_vm10, %v1938_v54, 0.0  ;;  %v1956_v15 = vrot.slane %v1938_v54, 5  ;;  %v1940_v16 = vmul.f32 %v3380_v11, %v1924_v51  ;;  %v1887_v23 = vsel %vm1172_vm9, %v1883_v39, 0.0 }
 0x308   :  { %v4257_v19 = vpop.xlane.xlu0 %1992  ;;  %v4269_v18 = vadd.f32 %v1887_v23, %v1886_v57  ;;  %v1564_v40 = vrot.slane %v4210_v47, %v3626_v53  ;;  %v1632_v34 = vrot.slane %v4210_v47, %v3629_v55  ;;  %v2023_v50 = vrot.slane %v4251_v56, %v3626_v53 }
 0x309   :  { %v1942_v24 = vsel %vm1158_vm10, %v1940_v16, 0.0  ;;  %v1957_v25 = vrot.slane %v1940_v16, 5  ;;  %v1960_v21 = vsel %vm1172_vm9, %v1956_v15, 0.0  ;;  %v1570_v35 = vadd.f32 %v1568_v62, %v4203_v6 }
 0x30a   :  { %v2007_v29 = vpop.permute.xlu1 %2006  ;;  %v4267_v36 = vadd.f32 %v1942_v24, %v1941_v30  ;;  %v1569_v63 = vadd.f32 %v1564_v40, %v4210_v47  ;;  %v1636_v54 = vrot.slane %v4203_v6, %v3629_v55  ;;  %v2027_v51 = vrot.slane %v4257_v19, %v3626_v53 }
 0x30b   :  { %v2012_v33 = vsel %vm1987_vm1, %v2007_v29, 0.0  ;;  %v1961_v41 = vsel %vm1172_vm9, %v1957_v25, 0.0  ;;  %v1637_v0 = vadd.f32 %v1632_v34, %v4210_v47  ;;  %v2028_v11 = vadd.f32 %v2023_v50, %v4251_v56 }
 0x30c   :  { %v2009_v8 = vpop.permute.xlu0 %2008  ;;  %2013 = vadd.xlane.f32.xlu1 %v2012_v33  ;;  %v4274_v45 = vadd.f32 %v1961_v41, %v1960_v21  ;;  %v1571_v7 = vadd.f32 2e-12, %v1569_v63  ;;  %v1572_v13 = vadd.f32 2e-12, %v1570_v35  ;;  %v1638_v39 = vadd.f32 %v1636_v54, %v4203_v6 }
 0x30d   :  { %v2015_v37 = vsel %vm1987_vm1, %v2009_v8, 0.0  ;;  %v2029_v30 = vadd.f32 %v2027_v51, %v4257_v19  ;;  %v1639_v15 = vadd.f32 2e-12, %v1637_v0  ;;  %v2030_v16 = vadd.f32 2e-12, %v2028_v11 }
 0x30e   :  { %2016 = vadd.xlane.f32.xlu0 %v2015_v37  ;;  %3381 = vrcp.f32 %v1571_v7  ;;  %v1640_v44 = vadd.f32 2e-12, %v1638_v39  ;;  %v1559_v47 = vmul.f32 2.0, %v4221_v46  ;;  %v1560_v25 = vmul.f32 2.0, %v4226_v61 }
 0x30f   :  { %3383 = vrcp.f32 %v1572_v13  ;;  %v2031_v22 = vadd.f32 2e-12, %v2029_v30  ;;  %v1627_v8 = vmul.f32 2.0, %v4233_v5  ;;  %v1628_v37 = vmul.f32 2.0, %v4236_v9 }
 0x310   :  { %3385 = vrcp.f32 %v1639_v15 }
 0x311   :  { %3387 = vrcp.f32 %v2030_v16 }
 0x312   :  { %3389 = vrcp.f32 %v1640_v44 }
 0x313   :  { %3391 = vrcp.f32 %v2031_v22 }
 0x318   :  { %v3382_v57 = vpop.eup %3381 }
 0x319   :  { %v3384_v23 = vpop.eup %3383  ;;  %v1574_v24 = vmul.f32 %v3382_v57, %v1559_v47  ;;  %v2095_v57 = vrot.slane %v4257_v19, %v3629_v55 }
 0x31a   :  { %v3386_v29 = vpop.eup %3385  ;;  %v1576_v41 = vmul.f32 %v3384_v23, %v1560_v25 }
 0x31b   :  { %v3388_v33 = vpop.eup %3387  ;;  %v1590_v50 = vsel %vm1172_vm9, %v1574_v24, 0.0 }
 0x31c   :  { %v1578_v9 = vsel %vm1158_vm10, %v1576_v41, 0.0  ;;  %v1591_v7 = vsel %vm1172_vm9, %v1576_v41, 0.0 }
 0x31d   :  { %2074 = vrot.lane.b32.xlu1 %v2070_v3, %s3507_s30  ;;  %v3390_v3 = vpop.eup %3389  ;;  %v1592_v11 = vadd.f32 %v1591_v7, %v1590_v50 }
 0x31e   :  { %v1644_v40 = vmul.f32 %v3390_v3, %v1628_v37 }
 0x320   :  { %v1646_v39 = vsel %vm1158_vm10, %v1644_v40, 0.0  ;;  %v1661_v15 = vrot.slane %v1644_v40, 1 }
 0x322   :  { %v1665_v44 = vsel %vm1172_vm9, %v1661_v15, 0.0 }
 0x324   :  { %2076 = vrot.lane.b32.xlu0 %v2071_v20, %s3507_s30 }
 0x375   :  { %v1026_v12 = vpop.f32.mrb[2].mxu0 }
 0x376   :  { %v1028_v31 = vpop.f32.mrb[3].mxu0 }
 0x377   :  { %v1033_v17 = vcombine.low %v1026_v12, %v1028_v31  ;;  %v3392_v12 = vpop.eup %3391  ;;  %v1642_v31 = vmul.f32 %v3386_v29, %v1627_v8 }
 0x379   :  { %1035 = vst [vmem:[%s4642_s4] sm:$0xff] %v1033_v17  ;;  %v1105_v48 = vpop.f32.mrb[2].mxu1  ;;  %v1577_v17 = vsel %vm1158_vm10, %v1574_v24, 0.0  ;;  %v1645_v0 = vsel %vm1158_vm10, %v1642_v31, 0.0  ;;  %v1660_v13 = vrot.slane %v1642_v31, 1 }
 0x37a   :  { %v1107_v42 = vpop.f32.mrb[3].mxu1  ;;  %v1579_v35 = vadd.f32 %v1578_v9, %v1577_v17  ;;  %v1647_v30 = vadd.f32 %v1646_v39, %v1645_v0 }
 0x37b   :  { %v1112_v32 = vcombine.low %v1105_v48, %v1107_v42  ;;  %v1664_v16 = vsel %vm1172_vm9, %v1660_v13, 0.0 }
 0x37c   :  { %v1666_v22 = vadd.f32 %v1665_v44, %v1664_v16 }
 0x37d   :  { %2925 = vst [vmem:[%s4642_s4 + $0x8] sm:$0xff] %v1112_v32  ;;  %s4572_s4 = spop %3182 }
 0x37e   :  { %s4574_s14 = spop %3184 }
 0x37f   :  { %s4576_s15 = spop %3186  ;;  %s1185_s21 = ssub.f32 %s4572_s4, %s4574_s14 }
 0x380   :  { %s4578_s16 = spop %3188 }
 0x381   :  { %s4580_s2 = spop %3190  ;;  %s1232_s23 = sadd.f32 %s4576_s15, %s1185_s21 }
 0x382   :  { %s4582_s17 = spop %3192 }
 0x383   :  { %s4584_s3 = spop %3194  ;;  %s1251_s26 = ssub.f32 %s1232_s23, %s4578_s16 }
 0x384   :  { %s4586_s18 = spop %3196 }
 0x385   :  { %s4588_s19 = spop %3198 }
 0x386   :  { %s4590_s20 = spop %3200 }
 0x387   :  { %s4594_s22 = spop %3202 }
 0x388   :  { %s4597_s1 = spop %3204 }
 0x399   :  { %v2014_v6 = vpop.xlane.xlu1 %2013 }
 0x39a   :  { %v2018_v21 = vmul.f32 2.0, %v2014_v6 }
 0x39b   :  { %v2017_v27 = vpop.xlane.xlu0 %2016 }
 0x39c   :  { %v2033_v49 = vmul.f32 %v3388_v33, %v2018_v21  ;;  %v2019_v20 = vmul.f32 2.0, %v2017_v27 }
 0x39d   :  { %v2075_v46 = vpop.permute.xlu1 %2074 }
 0x39e   :  { %v2036_v61 = vsel %vm1158_vm10, %v2033_v49, 0.0  ;;  %v2049_v48 = vsel %vm1172_vm9, %v2033_v49, 0.0  ;;  %v2035_v42 = vmul.f32 %v3392_v12, %v2019_v20  ;;  %v2080_v32 = vsel %vm1987_vm1, %v2075_v46, 0.0 }
 0x39f   :  { %v2077_v5 = vpop.permute.xlu0 %2076  ;;  %2081 = vadd.xlane.f32.xlu1 %v2080_v32 }
 0x3a0   :  { %v2037_v62 = vsel %vm1158_vm10, %v2035_v42, 0.0  ;;  %v2050_v63 = vsel %vm1172_vm9, %v2035_v42, 0.0  ;;  %v2083_v34 = vsel %vm1987_vm1, %v2077_v5, 0.0 }
 0x3a1   :  { %2084 = vadd.xlane.f32.xlu0 %v2083_v34  ;;  %v2051_v54 = vadd.f32 %v2050_v63, %v2049_v48  ;;  %v2038_v51 = vadd.f32 %v2037_v62, %v2036_v61 }
 0x3a3   :  { %1580 = vadd.xlane.f32.xlu1 %v1579_v35 }
 0x3a5   :  { %1593 = vadd.xlane.f32.xlu0 %v1592_v11 }
 0x3a7   :  { %1648 = vadd.xlane.f32.xlu1 %v1647_v30 }
 0x3a9   :  { %2052 = vadd.xlane.f32.xlu0 %v2051_v54 }
 0x3ab   :  { %1722 = vadd.xlane.f32.xlu1 %v4243_v26  ;;  %v2091_v26 = vrot.slane %v4251_v56, %v3629_v55 }
 0x3ad   :  { %1667 = vadd.xlane.f32.xlu0 %v1666_v22 }
 0x3af   :  { %1796 = vadd.xlane.f32.xlu1 %v4245_v38  ;;  %v2096_v38 = vadd.f32 %v2091_v26, %v4251_v56 }
 0x3b1   :  { %1741 = vadd.xlane.f32.xlu0 %v4253_v60  ;;  %v2097_v60 = vadd.f32 %v2095_v57, %v4257_v19 }
 0x3b3   :  { %1870 = vadd.xlane.f32.xlu1 %v4259_v2  ;;  %v2098_v2 = vadd.f32 2e-12, %v2096_v38  ;;  %v2099_v47 = vadd.f32 2e-12, %v2097_v60 }
 0x3b5   :  { %1815 = vadd.xlane.f32.xlu0 %v4265_v52  ;;  %3393 = vrcp.f32 %v2098_v2 }
 0x3b6   :  { %3395 = vrcp.f32 %v2099_v47 }
 0x3b7   :  { %1944 = vadd.xlane.f32.xlu1 %v4267_v36 }
 0x3b9   :  { %1889 = vadd.xlane.f32.xlu0 %v4269_v18 }
 0x3bb   :  { %2039 = vadd.xlane.f32.xlu1 %v2038_v51 }
 0x3bd   :  { %1963 = vadd.xlane.f32.xlu0 %v4274_v45 }
 0x3bf   :  { %v3394_v18 = vpop.eup %3393 }
 0x3c0   :  { %v3396_v25 = vpop.eup %3395 }
 0x42c   :  { %v2082_v52 = vpop.xlane.xlu1 %2081 }
 0x42d   :  { %v2086_v36 = vmul.f32 2.0, %v2082_v52 }
 0x42e   :  { %v2085_v23 = vpop.xlane.xlu0 %2084 }
 0x42f   :  { %v2101_v24 = vmul.f32 %v3394_v18, %v2086_v36  ;;  %v2087_v45 = vmul.f32 2.0, %v2085_v23  ;;  %v2139_v36 = vrot.slane %v3814_v4, %v3632_v43 }
 0x430   :  { %v1581_v6 = vpop.xlane.xlu1 %1580 }
 0x431   :  { %v2104_v29 = vsel %vm1158_vm10, %v2101_v24, 0.0  ;;  %v2119_v21 = vrot.slane %v2101_v24, 1  ;;  %v2103_v33 = vmul.f32 %v3396_v25, %v2087_v45  ;;  %v1582_v41 = vrot.slane %v1581_v6, 4 }
 0x432   :  { %v1594_v8 = vpop.xlane.xlu0 %1593 }
 0x433   :  { %v2105_v37 = vsel %vm1158_vm10, %v2103_v33, 0.0  ;;  %v2120_v27 = vrot.slane %v2103_v33, 1  ;;  %v1583_v3 = vadd.f32 %v1582_v41, %v1581_v6  ;;  %v1595_v49 = vrot.slane %v1594_v8, 4 }
 0x434   :  { %v1649_v20 = vpop.xlane.xlu1 %1648  ;;  %v2106_v12 = vadd.f32 %v2105_v37, %v2104_v29  ;;  %v2123_v31 = vsel %vm1172_vm9, %v2119_v21, 0.0 }
 0x435   :  { %v1584_v46 = vrot.slane %v1583_v3, 2  ;;  %v1596_v17 = vadd.f32 %v1595_v49, %v1594_v8  ;;  %v1650_v61 = vrot.slane %v1649_v20, 4  ;;  %v2124_v48 = vsel %vm1172_vm9, %v2120_v27, 0.0 }
 0x436   :  { %2107 = vadd.xlane.f32.xlu1 %v2106_v12  ;;  %v2053_v42 = vpop.xlane.xlu0 %2052  ;;  %v2125_v32 = vadd.f32 %v2124_v48, %v2123_v31  ;;  %v2144_v27 = vmul.f32 %v3814_v4, %v2139_v36 }
 0x437   :  { %v1597_v40 = vrot.slane %v1596_v17, 2  ;;  %v1651_v5 = vadd.f32 %v1650_v61, %v1649_v20  ;;  %v1585_v9 = vadd.f32 %v1584_v46, %v1583_v3  ;;  %v2054_v25 = vrot.slane %v2053_v42, 4 }
 0x438   :  { %2126 = vadd.xlane.f32.xlu0 %v2125_v32  ;;  %v1723_v62 = vpop.xlane.xlu1 %1722 }
 0x439   :  { %v1652_v63 = vrot.slane %v1651_v5, 2  ;;  %v1724_v34 = vrot.slane %v1723_v62, 4  ;;  %v1586_v50 = vrot.slane %v1585_v9, 1  ;;  %v1598_v54 = vadd.f32 %v1597_v40, %v1596_v17 }
 0x43a   :  { %v1668_v35 = vpop.xlane.xlu0 %1667  ;;  %v2055_v17 = vadd.f32 %v2054_v25, %v2053_v42 }
 0x43b   :  { %v1725_v51 = vadd.f32 %v1724_v34, %v1723_v62  ;;  %v1669_v7 = vrot.slane %v1668_v35, 4  ;;  %v1587_v0 = vadd.f32 %v1586_v50, %v1585_v9  ;;  %v1599_v13 = vrot.slane %v1598_v54, 1 }
 0x43c   :  { %v1797_v11 = vpop.xlane.xlu1 %1796  ;;  %v1653_v39 = vadd.f32 %v1652_v63, %v1651_v5 }
 0x43d   :  { %v1726_v30 = vrot.slane %v1725_v51, 2  ;;  %v1670_v15 = vadd.f32 %v1669_v7, %v1668_v35  ;;  %v1798_v16 = vrot.slane %v1797_v11, 4  ;;  %3206 = vpush %v1587_v0  ;;  %v1600_v22 = vadd.f32 %v1599_v13, %v1598_v54 }
 0x43e   :  { %v1742_v44 = vpop.xlane.xlu0 %1741  ;;  %v1654_v26 = vrot.slane %v1653_v39, 1  ;;  %v2143_v35 = vrot.slane %v3820_v14, %v3632_v43  ;;  %v2056_v0 = vrot.slane %v2055_v17, 2 }
 0x43f   :  { %v1671_v57 = vrot.slane %v1670_v15, 2  ;;  %v1799_v38 = vadd.f32 %v1798_v16, %v1797_v11  ;;  %v1743_v60 = vrot.slane %v1742_v44, 4  ;;  %v1727_v2 = vadd.f32 %v1726_v30, %v1725_v51  ;;  %3208 = vpush %v1600_v22 }
 0x440   :  { %v1871_v47 = vpop.xlane.xlu1 %1870  ;;  %v1655_v52 = vadd.f32 %v1654_v26, %v1653_v39  ;;  %v2145_v22 = vmul.f32 %v3820_v14, %v2143_v35  ;;  %v2165_v35 = vrot.slane %v4251_v56, %v3632_v43 }
 0x441   :  { %v1800_v18 = vrot.slane %v1799_v38, 2  ;;  %v1744_v23 = vadd.f32 %v1743_v60, %v1742_v44  ;;  %v1872_v24 = vrot.slane %v1871_v47, 4  ;;  %v1672_v45 = vadd.f32 %v1671_v57, %v1670_v15 }
 0x442   :  { %v1816_v6 = vpop.xlane.xlu0 %1815  ;;  %3210 = vpush %v1655_v52  ;;  %v1728_v29 = vrot.slane %v1727_v2, 1 }
 0x443   :  { %v1745_v21 = vrot.slane %v1744_v23, 2  ;;  %v1873_v33 = vadd.f32 %v1872_v24, %v1871_v47  ;;  %v1817_v41 = vrot.slane %v1816_v6, 4  ;;  %v1673_v8 = vrot.slane %v1672_v45, 1 }
 0x444   :  { %v1945_v37 = vpop.xlane.xlu1 %1944  ;;  %v1729_v3 = vadd.f32 %v1728_v29, %v1727_v2  ;;  %v1801_v49 = vadd.f32 %v1800_v18, %v1799_v38  ;;  %v2057_v24 = vadd.f32 %v2056_v0, %v2055_v17 }
 0x445   :  { %v1874_v20 = vrot.slane %v1873_v33, 2  ;;  %v1818_v12 = vadd.f32 %v1817_v41, %v1816_v6  ;;  %v1946_v31 = vrot.slane %v1945_v37, 4  ;;  %v1674_v46 = vadd.f32 %v1673_v8, %v1672_v45 }
 0x446   :  { %v1890_v61 = vpop.xlane.xlu0 %1889  ;;  %v1746_v48 = vadd.f32 %v1745_v21, %v1744_v23  ;;  %v1802_v32 = vrot.slane %v1801_v49, 1 }
 0x447   :  { %v1819_v40 = vrot.slane %v1818_v12, 2  ;;  %v1947_v5 = vadd.f32 %v1946_v31, %v1945_v37  ;;  %v1891_v9 = vrot.slane %v1890_v61, 4  ;;  %2148 = vrot.lane.b32.xlu1 %v2144_v27, %s3507_s30  ;;  %3212 = vpush %v1674_v46  ;;  %v1875_v62 = vadd.f32 %v1874_v20, %v1873_v33 }
 0x448   :  { %3214 = vpush %v1729_v3  ;;  %v2040_v63 = vpop.xlane.xlu1 %2039  ;;  %v1747_v34 = vrot.slane %v1746_v48, 1  ;;  %v1803_v50 = vadd.f32 %v1802_v32, %v1801_v49  ;;  %v2058_v33 = vrot.slane %v2057_v24, 1 }
 0x449   :  { %v1948_v54 = vrot.slane %v1947_v5, 2  ;;  %v1892_v51 = vadd.f32 %v1891_v9, %v1890_v61  ;;  %v2041_v42 = vrot.slane %v2040_v63, 4  ;;  %v1820_v7 = vadd.f32 %v1819_v40, %v1818_v12 }
 0x44a   :  { %v1964_v11 = vpop.xlane.xlu0 %1963  ;;  %v1748_v13 = vadd.f32 %v1747_v34, %v1746_v48  ;;  %v1876_v39 = vrot.slane %v1875_v62, 1  ;;  %v2059_v37 = vadd.f32 %v2058_v33, %v2057_v24  ;;  %v2217_v24 = vrot.slane %v3820_v14, %v3639_v58 }
 0x44b   :  { %v1893_v30 = vrot.slane %v1892_v51, 2  ;;  %v2042_v15 = vadd.f32 %v2041_v42, %v2040_v63  ;;  %v1965_v16 = vrot.slane %v1964_v11, 4  ;;  %v1821_v44 = vrot.slane %v1820_v7, 1 }
 0x44c   :  { %3216 = vpush %v1748_v13  ;;  %v1877_v26 = vadd.f32 %v1876_v39, %v1875_v62  ;;  %v1949_v57 = vadd.f32 %v1948_v54, %v1947_v5  ;;  %v2169_v54 = vrot.slane %v4257_v19, %v3632_v43 }
 0x44d   :  { %v2043_v38 = vrot.slane %v2042_v15, 2  ;;  %v1966_v60 = vadd.f32 %v1965_v16, %v1964_v11  ;;  %3218 = vpush %v1803_v50  ;;  %v1822_v2 = vadd.f32 %v1821_v44, %v1820_v7  ;;  %v1894_v47 = vadd.f32 %v1893_v30, %v1892_v51 }
 0x44e   :  { %2150 = vrot.lane.b32.xlu0 %v2145_v22, %s3507_s30  ;;  %v1950_v52 = vrot.slane %v1949_v57, 1  ;;  %v2170_v51 = vadd.f32 %v2165_v35, %v4251_v56  ;;  %v2171_v42 = vadd.f32 %v2169_v54, %v4257_v19  ;;  %v2602_v54 = vrot.slane %v3904_v59, %v3632_v43 }
 0x44f   :  { %v1967_v36 = vrot.slane %v1966_v60, 2  ;;  %3220 = vpush %v1822_v2  ;;  %v1895_v18 = vrot.slane %v1894_v47, 1  ;;  %v2044_v23 = vadd.f32 %v2043_v38, %v2042_v15 }
 0x450   :  { %3222 = vpush %v1877_v26  ;;  %v1951_v45 = vadd.f32 %v1950_v52, %v1949_v57  ;;  %v2172_v7 = vadd.f32 2e-12, %v2170_v51  ;;  %v2173_v0 = vadd.f32 2e-12, %v2171_v42  ;;  %v2676_v51 = vrot.slane %v3904_v59, %v3639_v58 }
 0x451   :  { %v1896_v25 = vadd.f32 %v1895_v18, %v1894_v47  ;;  %v1968_v6 = vadd.f32 %v1967_v36, %v1966_v60  ;;  %v2045_v29 = vrot.slane %v2044_v23, 1  ;;  %v2213_v18 = vrot.slane %v3814_v4, %v3639_v58 }
 0x452   :  { %3397 = vrcp.f32 %v2172_v7  ;;  %v2678_v42 = vmul.f32 %v3904_v59, %v2676_v51  ;;  %v2750_v7 = vrot.slane %v3904_v59, %v3702_v1 }
 0x453   :  { %3224 = vpush %v1896_v25  ;;  %v1969_v21 = vrot.slane %v1968_v6, 1  ;;  %v2046_v41 = vadd.f32 %v2045_v29, %v2044_v23  ;;  %3399 = vrcp.f32 %v2173_v0  ;;  %v2218_v23 = vmul.f32 %v3814_v4, %v2213_v18 }
 0x454   :  { %3226 = vpush %v1951_v45  ;;  %v2219_v45 = vmul.f32 %v3820_v14, %v2217_v24  ;;  %v2752_v0 = vmul.f32 %v3904_v59, %v2750_v7 }
 0x455   :  { %v1970_v8 = vadd.f32 %v1969_v21, %v1968_v6 }
 0x457   :  { %3228 = vpush %v1970_v8 }
 0x458   :  { %3230 = vpush %v2046_v41 }
 0x459   :  { %3232 = vpush %v2059_v37 }
 0x45c   :  { %v3398_v39 = vpop.eup %3397 }
 0x45d   :  { %v3400_v44 = vpop.eup %3399 }
 0x46e   :  { %s3207_s24 = spop %3206 }
 0x470   :  { %s3209_s25 = spop %3208 }
 0x471   :  { %s1602_s8 = ssub.f32 %s3207_s24, %s3209_s25 }
 0x473   :  { %s3211_s27 = spop %3210 }
 0x474   :  { %s1657_s29 = sadd.f32 %s3211_s27, %s1602_s8 }
 0x478   :  { %s3213_s0 = spop %3212 }
 0x479   :  { %s3215_s28 = spop %3214  ;;  %s1676_s13 = ssub.f32 %s1657_s29, %s3213_s0 }
 0x47b   :  { %s1731_s16 = sadd.f32 %s3215_s28, %s1676_s13 }
 0x47d   :  { %s3217_s6 = spop %3216 }
 0x47e   :  { %s1750_s24 = ssub.f32 %s1731_s16, %s3217_s6 }
 0x4c3   :  { %v2108_v27 = vpop.xlane.xlu1 %2107 }
 0x4c4   :  { %v2109_v3 = vrot.slane %v2108_v27, 4 }
 0x4c5   :  { %v2127_v49 = vpop.xlane.xlu0 %2126 }
 0x4c6   :  { %v2110_v20 = vadd.f32 %v2109_v3, %v2108_v27  ;;  %v2128_v12 = vrot.slane %v2127_v49, 4 }
 0x4c7   :  { %v2149_v31 = vpop.permute.xlu1 %2148 }
 0x4c8   :  { %v2111_v46 = vrot.slane %v2110_v20, 2  ;;  %v2129_v17 = vadd.f32 %v2128_v12, %v2127_v49  ;;  %v2154_v61 = vsel %vm1987_vm1, %v2149_v31, 0.0 }
 0x4c9   :  { %2155 = vadd.xlane.f32.xlu1 %v2154_v61  ;;  %v2151_v48 = vpop.permute.xlu0 %2150 }
 0x4ca   :  { %v2130_v32 = vrot.slane %v2129_v17, 2  ;;  %v2157_v40 = vsel %vm1987_vm1, %v2151_v48, 0.0  ;;  %v2112_v5 = vadd.f32 %v2111_v46, %v2110_v20 }
 0x4cb   :  { %2158 = vadd.xlane.f32.xlu0 %v2157_v40  ;;  %v2291_v40 = vrot.slane %v3820_v14, %v3702_v1 }
 0x4cc   :  { %v2113_v9 = vrot.slane %v2112_v5, 1  ;;  %v2131_v62 = vadd.f32 %v2130_v32, %v2129_v17  ;;  %v2436_v32 = vmul.f32 %v3889_v28, %v3889_v28 }
 0x4ce   :  { %v2114_v63 = vadd.f32 %v2113_v9, %v2112_v5  ;;  %v2132_v34 = vrot.slane %v2131_v62, 1  ;;  %v2293_v5 = vmul.f32 %v3820_v14, %v2291_v40  ;;  %v2365_v9 = vrot.slane %v3820_v14, %v3718_v10 }
 0x4cf   :  { %v2820_v40 = vrot.slane %v3889_v28, %v3718_v10 }
 0x4d0   :  { %3234 = vpush %v2114_v63  ;;  %v2133_v50 = vadd.f32 %v2132_v34, %v2131_v62  ;;  %v2367_v62 = vmul.f32 %v3820_v14, %v2365_v9  ;;  %v2460_v63 = vrot.slane %v3904_v59, %v3626_v53  ;;  %v2604_v14 = vmul.f32 %v3904_v59, %v2602_v54 }
 0x4d2   :  { %3236 = vpush %v2133_v50  ;;  %v2462_v34 = vmul.f32 %v3904_v59, %v2460_v63  ;;  %v2528_v50 = vrot.slane %v3904_v59, %v3629_v55 }
 0x4d4   :  { %v2530_v35 = vmul.f32 %v3904_v59, %v2528_v50 }
 0x556   :  { %v2156_v11 = vpop.xlane.xlu1 %2155 }
 0x557   :  { %v2160_v13 = vmul.f32 2.0, %v2156_v11  ;;  %v2824_v11 = vrot.slane %v3904_v59, %v3718_v10 }
 0x558   :  { %v2159_v30 = vpop.xlane.xlu0 %2158 }
 0x559   :  { %v2175_v15 = vmul.f32 %v3398_v39, %v2160_v13  ;;  %v2161_v16 = vmul.f32 2.0, %v2159_v30  ;;  %v2826_v13 = vmul.f32 %v3904_v59, %v2824_v11  ;;  %v2239_v39 = vrot.slane %v4251_v56, %v3639_v58 }
 0x55a   :  { %v2243_v30 = vrot.slane %v4257_v19, %v3639_v58 }
 0x55b   :  { %v2193_v22 = vrot.slane %v2175_v15, 2  ;;  %v2177_v26 = vmul.f32 %v3400_v44, %v2161_v16  ;;  %v2178_v57 = vsel %vm1158_vm10, %v2175_v15, 0.0  ;;  %v2244_v15 = vadd.f32 %v2239_v39, %v4251_v56 }
 0x55c   :  { %v2245_v16 = vadd.f32 %v2243_v30, %v4257_v19 }
 0x55d   :  { %v2179_v38 = vsel %vm1158_vm10, %v2177_v26, 0.0  ;;  %v2194_v60 = vrot.slane %v2177_v26, 2  ;;  %v2197_v47 = vsel %vm1172_vm9, %v2193_v22, 0.0  ;;  %v2246_v44 = vadd.f32 2e-12, %v2244_v15 }
 0x55e   :  { %v2180_v2 = vadd.f32 %v2179_v38, %v2178_v57  ;;  %v2247_v22 = vadd.f32 2e-12, %v2245_v16 }
 0x55f   :  { %v2198_v52 = vsel %vm1172_vm9, %v2194_v60, 0.0  ;;  %3401 = vrcp.f32 %v2246_v44 }
 0x560   :  { %2181 = vadd.xlane.f32.xlu1 %v2180_v2  ;;  %v2199_v36 = vadd.f32 %v2198_v52, %v2197_v47  ;;  %3403 = vrcp.f32 %v2247_v22 }
 0x562   :  { %2200 = vadd.xlane.f32.xlu0 %v2199_v36 }
 0x569   :  { %v3402_v38 = vpop.eup %3401 }
 0x56a   :  { %v3404_v52 = vpop.eup %3403 }
 0x571   :  { %2222 = vrot.lane.b32.xlu1 %v2218_v23, %s3507_s30 }
 0x578   :  { %2224 = vrot.lane.b32.xlu0 %v2219_v45, %s3507_s30 }
 0x5ed   :  { %v2182_v25 = vpop.xlane.xlu1 %2181 }
 0x5ee   :  { %v2183_v6 = vrot.slane %v2182_v25, 4 }
 0x5ef   :  { %v2201_v29 = vpop.xlane.xlu0 %2200 }
 0x5f0   :  { %v2184_v21 = vadd.f32 %v2183_v6, %v2182_v25  ;;  %v2202_v33 = vrot.slane %v2201_v29, 4 }
 0x5f1   :  { %v2223_v41 = vpop.permute.xlu1 %2222 }
 0x5f2   :  { %v2185_v8 = vrot.slane %v2184_v21, 2  ;;  %v2203_v37 = vadd.f32 %v2202_v33, %v2201_v29  ;;  %v2228_v27 = vsel %vm1987_vm1, %v2223_v41, 0.0 }
 0x5f3   :  { %v2225_v3 = vpop.permute.xlu0 %2224  ;;  %2229 = vadd.xlane.f32.xlu1 %v2228_v27 }
 0x5f4   :  { %v2204_v49 = vrot.slane %v2203_v37, 2  ;;  %v2231_v20 = vsel %vm1987_vm1, %v2225_v3, 0.0  ;;  %v2186_v12 = vadd.f32 %v2185_v8, %v2184_v21  ;;  %v2437_v8 = vmul.f32 %v3904_v59, %v3904_v59 }
 0x5f5   :  { %2232 = vadd.xlane.f32.xlu0 %v2231_v20  ;;  %v2361_v3 = vrot.slane %v3814_v4, %v3718_v10  ;;  %v2456_v20 = vrot.slane %v3889_v28, %v3626_v53 }
 0x5f6   :  { %v2187_v31 = vrot.slane %v2186_v12, 1  ;;  %v2205_v46 = vadd.f32 %v2204_v49, %v2203_v37  ;;  %v2287_v37 = vrot.slane %v3814_v4, %v3702_v1 }
 0x5f7   :  { %v2366_v49 = vmul.f32 %v3814_v4, %v2361_v3  ;;  %v2461_v59 = vmul.f32 %v3889_v28, %v2456_v20 }
 0x5f8   :  { %v2188_v17 = vadd.f32 %v2187_v31, %v2186_v12  ;;  %v2206_v61 = vrot.slane %v2205_v46, 1  ;;  %v2292_v27 = vmul.f32 %v3814_v4, %v2287_v37  ;;  %v2524_v12 = vrot.slane %v3889_v28, %v3629_v55 }
 0x5f9   :  { %v2313_v37 = vrot.slane %v4251_v56, %v3702_v1 }
 0x5fa   :  { %3238 = vpush %v2188_v17  ;;  %v2207_v48 = vadd.f32 %v2206_v61, %v2205_v46  ;;  %v2529_v31 = vmul.f32 %v3889_v28, %v2524_v12  ;;  %v2598_v46 = vrot.slane %v3889_v28, %v3632_v43  ;;  %v2672_v17 = vrot.slane %v3889_v28, %v3639_v58 }
 0x5fc   :  { %3240 = vpush %v2207_v48  ;;  %v2603_v4 = vmul.f32 %v3889_v28, %v2598_v46  ;;  %v2677_v61 = vmul.f32 %v3889_v28, %v2672_v17  ;;  %v2746_v48 = vrot.slane %v3889_v28, %v3702_v1 }
 0x60b   :  { %2440 = vrot.lane.b32.xlu0 %v2436_v32, %s3509_s7  ;;  %v2751_v32 = vmul.f32 %v3889_v28, %v2746_v48 }
 0x60f   :  { %2298 = vrot.lane.b32.xlu0 %v2293_v5, %s3507_s30  ;;  %v2825_v5 = vmul.f32 %v3889_v28, %v2820_v40 }
 0x613   :  { %2372 = vrot.lane.b32.xlu0 %v2367_v62, %s3507_s30 }
 0x617   :  { %2467 = vrot.lane.b32.xlu0 %v2462_v34, %s3509_s7 }
 0x61b   :  { %2535 = vrot.lane.b32.xlu0 %v2530_v35, %s3509_s7 }
 0x61f   :  { %2609 = vrot.lane.b32.xlu0 %v2604_v14, %s3509_s7 }
 0x623   :  { %2683 = vrot.lane.b32.xlu0 %v2678_v42, %s3509_s7 }
 0x627   :  { %2757 = vrot.lane.b32.xlu0 %v2752_v0, %s3509_s7 }
 0x62b   :  { %2831 = vrot.lane.b32.xlu0 %v2826_v13, %s3509_s7 }
 0x680   :  { %v2230_v26 = vpop.xlane.xlu1 %2229 }
 0x681   :  { %v2234_v57 = vmul.f32 2.0, %v2230_v26 }
 0x682   :  { %v2233_v60 = vpop.xlane.xlu0 %2232 }
 0x683   :  { %v2249_v2 = vmul.f32 %v3402_v38, %v2234_v57  ;;  %v2235_v47 = vmul.f32 2.0, %v2233_v60 }
 0x685   :  { %v2267_v36 = vrot.slane %v2249_v2, 3  ;;  %v2251_v18 = vmul.f32 %v3404_v52, %v2235_v47  ;;  %v2252_v24 = vsel %vm1158_vm10, %v2249_v2, 0.0 }
 0x686   :  { %v2441_v23 = vpop.permute.xlu0 %2440 }
 0x687   :  { %v2253_v45 = vsel %vm1158_vm10, %v2251_v18, 0.0  ;;  %v2268_v25 = vrot.slane %v2251_v18, 3  ;;  %v2447_v6 = vsel %vm2446_vm2, %v2441_v23, 0.0  ;;  %v2271_v21 = vsel %vm1172_vm9, %v2267_v36, 0.0 }
 0x688   :  { %2448 = vadd.xlane.f32.xlu0 %v2447_v6  ;;  %v2254_v29 = vadd.f32 %v2253_v45, %v2252_v24 }
 0x689   :  { %v2272_v33 = vsel %vm1172_vm9, %v2268_v25, 0.0 }
 0x68a   :  { %2255 = vadd.xlane.f32.xlu1 %v2254_v29  ;;  %v2273_v41 = vadd.f32 %v2272_v33, %v2271_v21  ;;  %v2299_v54 = vpop.permute.xlu0 %2298 }
 0x68b   :  { %v2305_v42 = vsel %vm1987_vm1, %v2299_v54, 0.0 }
 0x68e   :  { %v2373_v6 = vpop.permute.xlu0 %2372 }
 0x692   :  { %v2468_v29 = vpop.permute.xlu0 %2467 }
 0x696   :  { %v2536_v21 = vpop.permute.xlu0 %2535 }
 0x69a   :  { %v2610_v33 = vpop.permute.xlu0 %2609 }
 0x69b   :  { %2442 = vrot.lane.b32.xlu1 %v2437_v8, %s3509_s7  ;;  %v2317_v8 = vrot.slane %v4257_v19, %v3702_v1 }
 0x69d   :  { %v2319_v3 = vadd.f32 %v2317_v8, %v4257_v19 }
 0x69f   :  { %2296 = vrot.lane.b32.xlu1 %v2292_v27, %s3507_s30  ;;  %v2321_v20 = vadd.f32 2e-12, %v2319_v3 }
 0x6a1   :  { %3405 = vrcp.f32 %v2321_v20 }
 0x6a3   :  { %2370 = vrot.lane.b32.xlu1 %v2366_v49, %s3507_s30  ;;  %v2318_v49 = vadd.f32 %v2313_v37, %v4251_v56  ;;  %s1298_s30 = sadd.f32 %s4580_s2, %s1251_s26 }
 0x6a5   :  { %v2320_v12 = vadd.f32 2e-12, %v2318_v49  ;;  %s1317_s10 = ssub.f32 %s1298_s30, %s4582_s17 }
 0x6a7   :  { %2465 = vrot.lane.b32.xlu1 %v2461_v59, %s3509_s7  ;;  %3407 = vrcp.f32 %v2320_v12  ;;  %s1364_s14 = sadd.f32 %s4584_s3, %s1317_s10 }
 0x6a9   :  { %s1383_s21 = ssub.f32 %s1364_s14, %s4586_s18 }
 0x6ab   :  { %2533 = vrot.lane.b32.xlu1 %v2529_v31, %s3509_s7  ;;  %s1430_s26 = sadd.f32 %s4588_s19, %s1383_s21 }
 0x6ad   :  { %s1449_s0 = ssub.f32 %s1430_s26, %s4590_s20 }
 0x6af   :  { %2607 = vrot.lane.b32.xlu1 %v2603_v4, %s3509_s7  ;;  %s4616_s18 = sadd.f32 %s4594_s22, %s1449_s0 }
 0x6b1   :  { %s1515_s20 = ssub.f32 %s4616_s18, %s4597_s1 }
 0x6b3   :  { %2681 = vrot.lane.b32.xlu1 %v2677_v61, %s3509_s7  ;;  %v3406_v61 = vpop.eup %3405 }
 0x6b4   :  { %v3408_v40 = vpop.eup %3407 }
 0x6b7   :  { %2755 = vrot.lane.b32.xlu1 %v2751_v32, %s3509_s7 }
 0x6bb   :  { %2829 = vrot.lane.b32.xlu1 %v2825_v5, %s3509_s7  ;;  %s3219_s7 = spop %3218 }
 0x6bc   :  { %s4601_s9 = spop %3220  ;;  %s1805_s30 = sadd.f32 %s3219_s7, %s1750_s24 }
 0x6bd   :  { %s3223_s11 = spop %3222 }
 0x6be   :  { %s4604_s12 = spop %3224  ;;  %s1824_s10 = ssub.f32 %s1805_s30, %s4601_s9 }
 0x6bf   :  { %s4606_s4 = spop %3226 }
 0x6c0   :  { %s4609_s15 = spop %3228  ;;  %s1879_s16 = sadd.f32 %s3223_s11, %s1824_s10 }
 0x6c1   :  { %4672 = sst [smem:[#allocation13_spill]] %s4609_s15  ;;  %s3231_s2 = spop %3230 }
 0x6c2   :  { %s3233_s23 = spop %3232 }
 0x6c3   :  { %s3235_s25 = spop %3234  ;;  %s2061_s17 = ssub.f32 %s3231_s2, %s3233_s23 }
 0x6c4   :  { %s3237_s8 = spop %3236 }
 0x6c5   :  { %s2116_s27 = sadd.f32 %s3235_s25, %s2061_s17  ;;  %s3239_s29 = spop %3238 }
 0x6c6   :  { %s3241_s3 = spop %3240  ;;  %s1898_s25 = ssub.f32 %s1879_s16, %s4604_s12 }
 0x6c7   :  { %s2135_s5 = ssub.f32 %s2116_s27, %s3237_s8  ;;  %s1518_s12 = smul.f32 0.016666668, %s1515_s20 }
 0x6c8   :  { %s1953_s0 = sadd.f32 %s4606_s4, %s1898_s25  ;;  %s4674_s20 = sld [smem:[#allocation14_spill]] }
 0x6c9   :  { %s2190_s28 = sadd.f32 %s3239_s29, %s2135_s5  ;;  %s4673_s5 = sld [smem:[#allocation13_spill]] }
 0x6cb   :  { %s2209_s7 = ssub.f32 %s2190_s28, %s3241_s3 }
 0x6df   :  { %2274 = vadd.xlane.f32.xlu1 %v2273_v41  ;;  %v2684_v41 = vpop.permute.xlu0 %2683 }
 0x6e3   :  { %v2758_v27 = vpop.permute.xlu0 %2757 }
 0x6e7   :  { %v2832_v59 = vpop.permute.xlu0 %2831 }
 0x715   :  { %v4472_v31 = vpop.xlane.xlu0 %2448 }
 0x717   :  { %v2256_v9 = vpop.xlane.xlu1 %2255 }
 0x718   :  { %v2257_v62 = vrot.slane %v2256_v9, 4 }
 0x71a   :  { %v2258_v63 = vadd.f32 %v2257_v62, %v2256_v9 }
 0x71b   :  { %v2443_v34 = vpop.permute.xlu1 %2442 }
 0x71c   :  { %v2259_v50 = vrot.slane %v2258_v63, 2  ;;  %v2450_v35 = vsel %vm2446_vm2, %v2443_v34, 0.0 }
 0x71d   :  { %2451 = vadd.xlane.f32.xlu0 %v2450_v35 }
 0x71e   :  { %v2260_v14 = vadd.f32 %v2259_v50, %v2258_v63 }
 0x71f   :  { %v2297_v51 = vpop.permute.xlu1 %2296 }
 0x720   :  { %v2302_v7 = vsel %vm1987_vm1, %v2297_v51, 0.0  ;;  %v2261_v0 = vrot.slane %v2260_v14, 1 }
 0x721   :  { %2306 = vadd.xlane.f32.xlu0 %v2305_v42  ;;  %2303 = vadd.xlane.f32.xlu1 %v2302_v7  ;;  %v2379_v42 = vsel %vm1987_vm1, %v2373_v6, 0.0  ;;  %v2474_v7 = vsel %vm2446_vm2, %v2468_v29, 0.0  ;;  %v2772_v29 = vrot.slane %v4472_v31, %v3702_v1 }
 0x722   :  { %v2262_v28 = vadd.f32 %v2261_v0, %v2260_v14  ;;  %v2542_v0 = vsel %vm2446_vm2, %v2536_v21, 0.0 }
 0x723   :  { %v2371_v11 = vpop.permute.xlu1 %2370  ;;  %v2777_v49 = vadd.f32 %v2772_v29, %v4472_v31 }
 0x724   :  { %v2376_v13 = vsel %vm1987_vm1, %v2371_v11, 0.0  ;;  %3242 = vpush %v2262_v28  ;;  %v2616_v28 = vsel %vm2446_vm2, %v2610_v33, 0.0  ;;  %v2690_v11 = vsel %vm2446_vm2, %v2684_v41, 0.0  ;;  %v2846_v41 = vrot.slane %v4472_v31, %v3718_v10 }
 0x725   :  { %2377 = vadd.xlane.f32.xlu0 %v2376_v13  ;;  %v2764_v13 = vsel %vm2446_vm2, %v2758_v27, 0.0 }
 0x726   :  { %v2851_v12 = vadd.f32 %v2846_v41, %v4472_v31 }
 0x727   :  { %v2466_v39 = vpop.permute.xlu1 %2465 }
 0x728   :  { %v2471_v30 = vsel %vm2446_vm2, %v2466_v39, 0.0  ;;  %v2838_v39 = vsel %vm2446_vm2, %v2832_v59, 0.0 }
 0x729   :  { %2472 = vadd.xlane.f32.xlu0 %v2471_v30 }
 0x72b   :  { %v2534_v15 = vpop.permute.xlu1 %2533 }
 0x72c   :  { %v2539_v16 = vsel %vm2446_vm2, %v2534_v15, 0.0 }
 0x72d   :  { %2540 = vadd.xlane.f32.xlu0 %v2539_v16 }
 0x72f   :  { %v2608_v44 = vpop.permute.xlu1 %2607 }
 0x730   :  { %v2613_v22 = vsel %vm2446_vm2, %v2608_v44, 0.0  ;;  %v2387_v44 = vrot.slane %v4251_v56, %v3718_v10 }
 0x731   :  { %2614 = vadd.xlane.f32.xlu0 %v2613_v22 }
 0x733   :  { %v2682_v26 = vpop.permute.xlu1 %2681 }
 0x734   :  { %v2687_v57 = vsel %vm2446_vm2, %v2682_v26, 0.0  ;;  %v2392_v26 = vadd.f32 %v2387_v44, %v4251_v56 }
 0x735   :  { %2688 = vadd.xlane.f32.xlu0 %v2687_v57  ;;  %v2391_v57 = vrot.slane %v4257_v19, %v3718_v10 }
 0x737   :  { %v2756_v38 = vpop.permute.xlu1 %2755 }
 0x738   :  { %v2761_v60 = vsel %vm2446_vm2, %v2756_v38, 0.0  ;;  %v2482_v38 = vrot.slane %v4472_v31, %v3626_v53 }
 0x739   :  { %2762 = vadd.xlane.f32.xlu0 %v2761_v60 }
 0x73b   :  { %v2830_v2 = vpop.permute.xlu1 %2829 }
 0x73c   :  { %v2835_v47 = vsel %vm2446_vm2, %v2830_v2, 0.0  ;;  %v2394_v2 = vadd.f32 2e-12, %v2392_v26 }
 0x73d   :  { %2836 = vadd.xlane.f32.xlu0 %v2835_v47  ;;  %v2550_v47 = vrot.slane %v4472_v31, %v3629_v55 }
 0x73e   :  { %3409 = vrcp.f32 %v2394_v2 }
 0x73f   :  { %v2555_v56 = vadd.f32 %v2550_v47, %v4472_v31 }
 0x741   :  { %v2557_v21 = vadd.f32 2e-12, %v2555_v56 }
 0x755   :  { %s3243_s15 = spop %3242 }
 0x756   :  { %s2264_s23 = sadd.f32 %s3243_s15, %s2209_s7 }
 0x76c   :  { %v2275_v52 = vpop.xlane.xlu1 %2274 }
 0x76d   :  { %v2276_v36 = vrot.slane %v2275_v52, 4 }
 0x76f   :  { %v2277_v18 = vadd.f32 %v2276_v36, %v2275_v52  ;;  %v2393_v52 = vadd.f32 %v2391_v57, %v4257_v19 }
 0x771   :  { %v2278_v23 = vrot.slane %v2277_v18, 2 }
 0x773   :  { %v2279_v24 = vadd.f32 %v2278_v23, %v2277_v18  ;;  %v2487_v18 = vadd.f32 %v2482_v38, %v4472_v31  ;;  %v2624_v23 = vrot.slane %v4472_v31, %v3632_v43 }
 0x775   :  { %v2280_v45 = vrot.slane %v2279_v24, 1  ;;  %v2489_v19 = vadd.f32 2e-12, %v2487_v18  ;;  %v2629_v33 = vadd.f32 %v2624_v23, %v4472_v31 }
 0x777   :  { %v2281_v25 = vadd.f32 %v2280_v45, %v2279_v24  ;;  %v2395_v45 = vadd.f32 2e-12, %v2393_v52  ;;  %v2631_v59 = vadd.f32 2e-12, %v2629_v33 }
 0x779   :  { %3244 = vpush %v2281_v25  ;;  %3411 = vrcp.f32 %v2395_v45 }
 0x77a   :  { %3413 = vrcp.f32 %v2489_v19 }
 0x77b   :  { %3415 = vrcp.f32 %v2557_v21 }
 0x7aa   :  { %v4474_v46 = vpop.xlane.xlu0 %2451  ;;  %s3245_s13 = spop %3244 }
 0x7ab   :  { %v2486_v36 = vrot.slane %v4474_v46, %v3626_v53  ;;  %v2554_v6 = vrot.slane %v4474_v46, %v3629_v55  ;;  %v2698_v53 = vrot.slane %v4472_v31, %v3639_v58  ;;  %v2628_v55 = vrot.slane %v4474_v46, %v3632_v43  ;;  %s2283_s17 = ssub.f32 %s2264_s23, %s3245_s13 }
 0x7ac   :  { %v2702_v43 = vrot.slane %v4474_v46, %v3639_v58 }
 0x7ad   :  { %v2488_v25 = vadd.f32 %v2486_v36, %v4474_v46  ;;  %v2556_v37 = vadd.f32 %v2554_v6, %v4474_v46  ;;  %v2703_v27 = vadd.f32 %v2698_v53, %v4472_v31  ;;  %v2850_v31 = vrot.slane %v4474_v46, %v3718_v10 }
 0x7ae   :  { %v2307_v4 = vpop.xlane.xlu0 %2306  ;;  %v2304_v17 = vpop.xlane.xlu1 %2303 }
 0x7af   :  { %v2309_v48 = vmul.f32 2.0, %v2307_v4  ;;  %v2308_v32 = vmul.f32 2.0, %v2304_v17  ;;  %v2490_v8 = vadd.f32 2e-12, %v2488_v25  ;;  %v2558_v17 = vadd.f32 2e-12, %v2556_v37 }
 0x7b0   :  { %v2852_v10 = vadd.f32 %v2850_v31, %v4474_v46 }
 0x7b1   :  { %v2325_v5 = vmul.f32 %v3406_v61, %v2309_v48  ;;  %v2323_v9 = vmul.f32 %v3408_v40, %v2308_v32  ;;  %3417 = vrcp.f32 %v2490_v8  ;;  %v2630_v61 = vadd.f32 %v2628_v55, %v4474_v46  ;;  %v3410_v48 = vpop.eup %3409 }
 0x7b2   :  { %v2378_v30 = vpop.xlane.xlu0 %2377  ;;  %v2705_v32 = vadd.f32 2e-12, %v2703_v27  ;;  %3419 = vrcp.f32 %v2631_v59 }
 0x7b3   :  { %v2327_v62 = vsel %vm1158_vm10, %v2325_v5, 0.0  ;;  %v2342_v63 = vrot.slane %v2325_v5, 4  ;;  %v2326_v34 = vsel %vm1158_vm10, %v2323_v9, 0.0  ;;  %v2341_v50 = vrot.slane %v2323_v9, 4 }
 0x7b4   :  { %v2328_v35 = vadd.f32 %v2327_v62, %v2326_v34  ;;  %v2382_v3 = vmul.f32 2.0, %v2378_v30  ;;  %v2779_v9 = vadd.f32 2e-12, %v2777_v49  ;;  %v2853_v34 = vadd.f32 2e-12, %v2851_v12 }
 0x7b5   :  { %v2345_v54 = vsel %vm1172_vm9, %v2341_v50, 0.0  ;;  %v2346_v14 = vsel %vm1172_vm9, %v2342_v63, 0.0  ;;  %v2776_v63 = vrot.slane %v4474_v46, %v3702_v1  ;;  %3421 = vrcp.f32 %v2558_v17 }
 0x7b6   :  { %2329 = vadd.xlane.f32.xlu1 %v2328_v35  ;;  %v2347_v51 = vadd.f32 %v2346_v14, %v2345_v54  ;;  %v2473_v15 = vpop.xlane.xlu0 %2472  ;;  %v2397_v5 = vmul.f32 %v3410_v48, %v2382_v3  ;;  %v2632_v58 = vadd.f32 2e-12, %v2630_v61  ;;  %3423 = vrcp.f32 %v2705_v32 }
 0x7b7   :  { %v2477_v54 = vmul.f32 2.0, %v2473_v15  ;;  %3425 = vrcp.f32 %v2779_v9  ;;  %v2778_v1 = vadd.f32 %v2776_v63, %v4474_v46 }
 0x7b8   :  { %2348 = vadd.xlane.f32.xlu0 %v2347_v51  ;;  %v2704_v51 = vadd.f32 %v2702_v43, %v4474_v46  ;;  %v2400_v26 = vsel %vm1158_vm10, %v2397_v5, 0.0  ;;  %3427 = vrcp.f32 %v2632_v58 }
 0x7b9   :  { %v2780_v8 = vadd.f32 2e-12, %v2778_v1 }
 0x7ba   :  { %2380 = vadd.xlane.f32.xlu1 %v2379_v42  ;;  %v4487_v16 = vpop.xlane.xlu0 %2540  ;;  %v2706_v2 = vadd.f32 2e-12, %v2704_v51 }
 0x7bc   :  { %3429 = vrcp.f32 %v2706_v2 }
 0x7bd   :  { %3431 = vrcp.f32 %v2853_v34 }
 0x7be   :  { %2475 = vadd.xlane.f32.xlu1 %v2474_v7  ;;  %v4491_v22 = vpop.xlane.xlu0 %2614  ;;  %3433 = vrcp.f32 %v2780_v8 }
 0x7bf   :  { %v2619_v46 = vmul.f32 2.0, %v4491_v22 }
 0x7c2   :  { %2543 = vadd.xlane.f32.xlu1 %v2542_v0  ;;  %v4498_v60 = vpop.xlane.xlu0 %2688 }
 0x7c3   :  { %v2693_v12 = vmul.f32 2.0, %v4498_v60 }
 0x7c6   :  { %2617 = vadd.xlane.f32.xlu1 %v2616_v28  ;;  %v4509_v24 = vpop.xlane.xlu0 %2762  ;;  %v3412_v28 = vpop.eup %3411 }
 0x7c7   :  { %v2767_v34 = vmul.f32 2.0, %v4509_v24 }
 0x7ca   :  { %2691 = vadd.xlane.f32.xlu1 %v2690_v11  ;;  %v4526_v20 = vpop.xlane.xlu0 %2836  ;;  %v2415_v11 = vrot.slane %v2397_v5, 5 }
 0x7ce   :  { %2765 = vadd.xlane.f32.xlu1 %v2764_v13  ;;  %v3414_v13 = vpop.eup %3413 }
 0x7cf   :  { %v2492_v57 = vmul.f32 %v3414_v13, %v2477_v54  ;;  %v3416_v47 = vpop.eup %3415 }
 0x7d0   :  { %v3418_v23 = vpop.eup %3417 }
 0x7d1   :  { %v3420_v37 = vpop.eup %3419  ;;  %v2495_v55 = vsel %vm1158_vm10, %v2492_v57, 0.0  ;;  %v2508_v43 = vsel %vm1172_vm9, %v2492_v57, 0.0 }
 0x7d2   :  { %2839 = vadd.xlane.f32.xlu1 %v2838_v39  ;;  %v2545_v39 = vmul.f32 2.0, %v4487_v16  ;;  %v2419_v16 = vsel %vm1172_vm9, %v2415_v11, 0.0  ;;  %v3422_v49 = vpop.eup %3421  ;;  %v2634_v59 = vmul.f32 %v3420_v37, %v2619_v46 }
 0x7d3   :  { %v3424_v61 = vpop.eup %3423 }
 0x7d4   :  { %v2560_v6 = vmul.f32 %v3416_v47, %v2545_v39  ;;  %v2652_v54 = vrot.slane %v2634_v59, 2  ;;  %v2637_v11 = vsel %vm1158_vm10, %v2634_v59, 0.0 }
 0x7d6   :  { %v2578_v48 = vrot.slane %v2560_v6, 1  ;;  %v2563_v63 = vsel %vm1158_vm10, %v2560_v6, 0.0  ;;  %v2656_v24 = vsel %vm1172_vm9, %v2652_v54, 0.0 }
 0x843   :  { %v2330_v4 = vpop.xlane.xlu1 %2329 }
 0x844   :  { %v2331_v40 = vrot.slane %v2330_v4, 4 }
 0x845   :  { %v2349_v62 = vpop.xlane.xlu0 %2348 }
 0x846   :  { %v2332_v50 = vadd.f32 %v2331_v40, %v2330_v4  ;;  %v2350_v35 = vrot.slane %v2349_v62, 4  ;;  %v3426_v40 = vpop.eup %3425 }
 0x847   :  { %v2381_v14 = vpop.xlane.xlu1 %2380 }
 0x848   :  { %v2333_v42 = vrot.slane %v2332_v50, 2  ;;  %v2351_v7 = vadd.f32 %v2350_v35, %v2349_v62  ;;  %v2383_v0 = vmul.f32 2.0, %v2381_v14  ;;  %v2854_v62 = vadd.f32 2e-12, %v2852_v10  ;;  %v3428_v35 = vpop.eup %3427 }
 0x849   :  { %v2708_v14 = vmul.f32 %v3424_v61, %v2693_v12  ;;  %v3430_v39 = vpop.eup %3429 }
 0x84a   :  { %v2352_v30 = vrot.slane %v2351_v7, 2  ;;  %v2399_v15 = vmul.f32 %v3412_v28, %v2383_v0  ;;  %v2334_v44 = vadd.f32 %v2333_v42, %v2332_v50  ;;  %v2582_v42 = vsel %vm1172_vm9, %v2578_v48, 0.0 }
 0x84b   :  { %v2476_v38 = vpop.xlane.xlu1 %2475  ;;  %3435 = vrcp.f32 %v2854_v62 }
 0x84c   :  { %v2401_v52 = vsel %vm1158_vm10, %v2399_v15, 0.0  ;;  %v2416_v36 = vrot.slane %v2399_v15, 5  ;;  %v2478_v18 = vmul.f32 2.0, %v2476_v38  ;;  %v2335_v56 = vrot.slane %v2334_v44, 1 }
 0x84d   :  { %v2402_v45 = vadd.f32 %v2401_v52, %v2400_v26  ;;  %v2353_v25 = vadd.f32 %v2352_v30, %v2351_v7  ;;  %v2726_v30 = vrot.slane %v2708_v14, 3  ;;  %v2841_v26 = vmul.f32 2.0, %v4526_v20  ;;  %v3432_v52 = vpop.eup %3431 }
 0x84e   :  { %v2494_v19 = vmul.f32 %v3418_v23, %v2478_v18  ;;  %v2336_v53 = vadd.f32 %v2335_v56, %v2334_v44  ;;  %v2420_v29 = vsel %vm1172_vm9, %v2416_v36, 0.0  ;;  %v2782_v44 = vmul.f32 %v3426_v40, %v2767_v34  ;;  %v3434_v46 = vpop.eup %3433 }
 0x84f   :  { %2403 = vadd.xlane.f32.xlu1 %v2402_v45  ;;  %v2544_v21 = vpop.xlane.xlu1 %2543  ;;  %v2421_v33 = vadd.f32 %v2420_v29, %v2419_v16  ;;  %v2354_v41 = vrot.slane %v2353_v25, 1  ;;  %v2711_v36 = vsel %vm1158_vm10, %v2708_v14, 0.0  ;;  %v2730_v16 = vsel %vm1172_vm9, %v2726_v30, 0.0 }
 0x850   :  { %v2496_v22 = vsel %vm1158_vm10, %v2494_v19, 0.0  ;;  %v2509_v27 = vsel %vm1172_vm9, %v2494_v19, 0.0  ;;  %v2546_v3 = vmul.f32 2.0, %v2544_v21  ;;  %3246 = vpush %v2336_v53  ;;  %v2856_v20 = vmul.f32 %v3432_v52, %v2841_v26 }
 0x851   :  { %2422 = vadd.xlane.f32.xlu0 %v2421_v33  ;;  %v2355_v4 = vadd.f32 %v2354_v41, %v2353_v25  ;;  %v2497_v17 = vadd.f32 %v2496_v22, %v2495_v55  ;;  %v2510_v9 = vadd.f32 %v2509_v27, %v2508_v43  ;;  %v2800_v25 = vrot.slane %v2782_v44, 4 }
 0x852   :  { %v2562_v32 = vmul.f32 %v3422_v49, %v2546_v3  ;;  %v2785_v21 = vsel %vm1158_vm10, %v2782_v44, 0.0  ;;  %v2874_v22 = vrot.slane %v2856_v20, 5  ;;  %v2859_v12 = vsel %vm1158_vm10, %v2856_v20, 0.0 }
 0x853   :  { %3248 = vpush %v2355_v4  ;;  %2498 = vadd.xlane.f32.xlu1 %v2497_v17  ;;  %v2618_v5 = vpop.xlane.xlu1 %2617  ;;  %v2804_v3 = vsel %vm1172_vm9, %v2800_v25, 0.0 }
 0x854   :  { %v2564_v60 = vsel %vm1158_vm10, %v2562_v32, 0.0  ;;  %v2579_v31 = vrot.slane %v2562_v32, 1  ;;  %v2620_v50 = vmul.f32 2.0, %v2618_v5  ;;  %v2878_v43 = vsel %vm1172_vm9, %v2874_v22, 0.0 }
 0x855   :  { %2511 = vadd.xlane.f32.xlu0 %v2510_v9  ;;  %v2565_v58 = vadd.f32 %v2564_v60, %v2563_v63  ;;  %v3436_v37 = vpop.eup %3435 }
 0x856   :  { %v2636_v51 = vmul.f32 %v3428_v35, %v2620_v50  ;;  %v2583_v7 = vsel %vm1172_vm9, %v2579_v31, 0.0 }
 0x857   :  { %2566 = vadd.xlane.f32.xlu1 %v2565_v58  ;;  %v2692_v0 = vpop.xlane.xlu1 %2691  ;;  %v2584_v28 = vadd.f32 %v2583_v7, %v2582_v42 }
 0x858   :  { %v2638_v1 = vsel %vm1158_vm10, %v2636_v51, 0.0  ;;  %v2653_v10 = vrot.slane %v2636_v51, 2  ;;  %v2694_v13 = vmul.f32 2.0, %v2692_v0 }
 0x859   :  { %2585 = vadd.xlane.f32.xlu0 %v2584_v28  ;;  %v2639_v15 = vadd.f32 %v2638_v1, %v2637_v11 }
 0x85a   :  { %v2710_v57 = vmul.f32 %v3430_v39, %v2694_v13  ;;  %v2657_v38 = vsel %vm1172_vm9, %v2653_v10, 0.0 }
 0x85b   :  { %2640 = vadd.xlane.f32.xlu1 %v2639_v15  ;;  %v2766_v2 = vpop.xlane.xlu1 %2765  ;;  %v2658_v47 = vadd.f32 %v2657_v38, %v2656_v24 }
 0x85c   :  { %v2712_v18 = vsel %vm1158_vm10, %v2710_v57, 0.0  ;;  %v2727_v56 = vrot.slane %v2710_v57, 3  ;;  %v2768_v23 = vmul.f32 2.0, %v2766_v2 }
 0x85d   :  { %2659 = vadd.xlane.f32.xlu0 %v2658_v47  ;;  %v2713_v45 = vadd.f32 %v2712_v18, %v2711_v36 }
 0x85e   :  { %v2784_v6 = vmul.f32 %v3434_v46, %v2768_v23  ;;  %v2731_v19 = vsel %vm1172_vm9, %v2727_v56, 0.0 }
 0x85f   :  { %2714 = vadd.xlane.f32.xlu1 %v2713_v45  ;;  %v2840_v53 = vpop.xlane.xlu1 %2839  ;;  %v2732_v29 = vadd.f32 %v2731_v19, %v2730_v16 }
 0x860   :  { %v2786_v33 = vsel %vm1158_vm10, %v2784_v6, 0.0  ;;  %v2801_v41 = vrot.slane %v2784_v6, 4  ;;  %v2842_v8 = vmul.f32 2.0, %v2840_v53 }
 0x861   :  { %2733 = vadd.xlane.f32.xlu0 %v2732_v29  ;;  %v2787_v55 = vadd.f32 %v2786_v33, %v2785_v21 }
 0x862   :  { %v2858_v27 = vmul.f32 %v3436_v37, %v2842_v8  ;;  %v2805_v49 = vsel %vm1172_vm9, %v2801_v41, 0.0 }
 0x863   :  { %2788 = vadd.xlane.f32.xlu1 %v2787_v55  ;;  %v2806_v59 = vadd.f32 %v2805_v49, %v2804_v3 }
 0x864   :  { %v2860_v4 = vsel %vm1158_vm10, %v2858_v27, 0.0  ;;  %v2875_v17 = vrot.slane %v2858_v27, 5 }
 0x865   :  { %2807 = vadd.xlane.f32.xlu0 %v2806_v59  ;;  %v2861_v61 = vadd.f32 %v2860_v4, %v2859_v12 }
 0x866   :  { %v2879_v48 = vsel %vm1172_vm9, %v2875_v17, 0.0 }
 0x867   :  { %2862 = vadd.xlane.f32.xlu1 %v2861_v61  ;;  %v2880_v32 = vadd.f32 %v2879_v48, %v2878_v43 }
 0x869   :  { %2881 = vadd.xlane.f32.xlu0 %v2880_v32 }
 0x881   :  { %s3247_s6 = spop %3246 }
 0x882   :  { %s2338_s27 = sadd.f32 %s3247_s6, %s2283_s17 }
 0x884   :  { %s3249_s14 = spop %3248 }
 0x885   :  { %s2357_s3 = ssub.f32 %s2338_s27, %s3249_s14 }
 0x8dc   :  { %v2404_v40 = vpop.xlane.xlu1 %2403 }
 0x8dd   :  { %v2405_v5 = vrot.slane %v2404_v40, 4 }
 0x8de   :  { %v2423_v9 = vpop.xlane.xlu0 %2422 }
 0x8df   :  { %v2406_v62 = vadd.f32 %v2405_v5, %v2404_v40  ;;  %v2424_v63 = vrot.slane %v2423_v9, 4 }
 0x8e0   :  { %v2499_v60 = vpop.xlane.xlu1 %2498 }
 0x8e1   :  { %v2407_v31 = vrot.slane %v2406_v62, 2  ;;  %v2425_v50 = vadd.f32 %v2424_v63, %v2423_v9  ;;  %v2500_v35 = vrot.slane %v2499_v60, 4 }
 0x8e2   :  { %v2512_v54 = vpop.xlane.xlu0 %2511 }
 0x8e3   :  { %v2426_v14 = vrot.slane %v2425_v50, 2  ;;  %v2501_v58 = vadd.f32 %v2500_v35, %v2499_v60  ;;  %v2513_v34 = vrot.slane %v2512_v54, 4  ;;  %v2408_v51 = vadd.f32 %v2407_v31, %v2406_v62 }
 0x8e4   :  { %v2567_v42 = vpop.xlane.xlu1 %2566 }
 0x8e5   :  { %v2502_v7 = vrot.slane %v2501_v58, 2  ;;  %v2514_v0 = vadd.f32 %v2513_v34, %v2512_v54  ;;  %v2568_v28 = vrot.slane %v2567_v42, 4  ;;  %v2409_v11 = vrot.slane %v2408_v51, 1 }
 0x8e6   :  { %v2586_v1 = vpop.xlane.xlu0 %2585  ;;  %v2427_v10 = vadd.f32 %v2426_v14, %v2425_v50 }
 0x8e7   :  { %v2515_v13 = vrot.slane %v2514_v0, 2  ;;  %v2569_v39 = vadd.f32 %v2568_v28, %v2567_v42  ;;  %v2587_v30 = vrot.slane %v2586_v1, 4  ;;  %v2410_v15 = vadd.f32 %v2409_v11, %v2408_v51 }
 0x8e8   :  { %v2641_v24 = vpop.xlane.xlu1 %2640  ;;  %v2428_v44 = vrot.slane %v2427_v10, 1  ;;  %v2503_v26 = vadd.f32 %v2502_v7, %v2501_v58 }
 0x8e9   :  { %v2570_v57 = vrot.slane %v2569_v39, 2  ;;  %v2588_v38 = vadd.f32 %v2587_v30, %v2586_v1  ;;  %v2642_v2 = vrot.slane %v2641_v24, 4  ;;  %3250 = vpush %v2410_v15  ;;  %v2516_v47 = vadd.f32 %v2515_v13, %v2514_v0 }
 0x8ea   :  { %v2660_v52 = vpop.xlane.xlu0 %2659  ;;  %v2429_v36 = vadd.f32 %v2428_v44, %v2427_v10  ;;  %v2504_v18 = vrot.slane %v2503_v26, 1 }
 0x8eb   :  { %v2589_v56 = vrot.slane %v2588_v38, 2  ;;  %v2643_v23 = vadd.f32 %v2642_v2, %v2641_v24  ;;  %v2661_v46 = vrot.slane %v2660_v52, 4  ;;  %v2517_v45 = vrot.slane %v2516_v47, 1 }
 0x8ec   :  { %3252 = vpush %v2429_v36  ;;  %v2715_v16 = vpop.xlane.xlu1 %2714  ;;  %v2505_v25 = vadd.f32 %v2504_v18, %v2503_v26  ;;  %v2571_v20 = vadd.f32 %v2570_v57, %v2569_v39 }
 0x8ed   :  { %v2644_v6 = vrot.slane %v2643_v23, 2  ;;  %v2662_v19 = vadd.f32 %v2661_v46, %v2660_v52  ;;  %v2716_v53 = vrot.slane %v2715_v16, 4  ;;  %v2518_v29 = vadd.f32 %v2517_v45, %v2516_v47 }
 0x8ee   :  { %3254 = vpush %v2505_v25  ;;  %v2734_v21 = vpop.xlane.xlu0 %2733  ;;  %v2572_v33 = vrot.slane %v2571_v20, 1  ;;  %v2590_v41 = vadd.f32 %v2589_v56, %v2588_v38 }
 0x8ef   :  { %v2663_v8 = vrot.slane %v2662_v19, 2  ;;  %v2717_v37 = vadd.f32 %v2716_v53, %v2715_v16  ;;  %v2735_v55 = vrot.slane %v2734_v21, 4  ;;  %3256 = vpush %v2518_v29  ;;  %v2645_v22 = vadd.f32 %v2644_v6, %v2643_v23 }
 0x8f0   :  { %v2789_v27 = vpop.xlane.xlu1 %2788  ;;  %v2573_v3 = vadd.f32 %v2572_v33, %v2571_v20  ;;  %v2591_v49 = vrot.slane %v2590_v41, 1 }
 0x8f1   :  { %v2718_v59 = vrot.slane %v2717_v37, 2  ;;  %v2736_v12 = vadd.f32 %v2735_v55, %v2734_v21  ;;  %v2790_v4 = vrot.slane %v2789_v27, 4  ;;  %v2646_v17 = vrot.slane %v2645_v22, 1 }
 0x8f2   :  { %3258 = vpush %v2573_v3  ;;  %v2808_v61 = vpop.xlane.xlu0 %2807  ;;  %v2592_v43 = vadd.f32 %v2591_v49, %v2590_v41  ;;  %v2664_v48 = vadd.f32 %v2663_v8, %v2662_v19 }
 0x8f3   :  { %v2737_v32 = vrot.slane %v2736_v12, 2  ;;  %v2791_v40 = vadd.f32 %v2790_v4, %v2789_v27  ;;  %v2809_v5 = vrot.slane %v2808_v61, 4  ;;  %v2647_v9 = vadd.f32 %v2646_v17, %v2645_v22 }
 0x8f4   :  { %3260 = vpush %v2592_v43  ;;  %v2863_v62 = vpop.xlane.xlu1 %2862  ;;  %v2665_v63 = vrot.slane %v2664_v48, 1  ;;  %v2719_v60 = vadd.f32 %v2718_v59, %v2717_v37 }
 0x8f5   :  { %v2792_v31 = vrot.slane %v2791_v40, 2  ;;  %v2810_v50 = vadd.f32 %v2809_v5, %v2808_v61  ;;  %v2864_v35 = vrot.slane %v2863_v62, 4  ;;  %3262 = vpush %v2647_v9  ;;  %v2738_v54 = vadd.f32 %v2737_v32, %v2736_v12 }
 0x8f6   :  { %v2882_v14 = vpop.xlane.xlu0 %2881  ;;  %v2666_v58 = vadd.f32 %v2665_v63, %v2664_v48  ;;  %v2720_v34 = vrot.slane %v2719_v60, 1 }
 0x8f7   :  { %v2811_v51 = vrot.slane %v2810_v50, 2  ;;  %v2865_v42 = vadd.f32 %v2864_v35, %v2863_v62  ;;  %v2883_v7 = vrot.slane %v2882_v14, 4  ;;  %v2739_v0 = vrot.slane %v2738_v54, 1 }
 0x8f8   :  { %3264 = vpush %v2666_v58  ;;  %v2721_v28 = vadd.f32 %v2720_v34, %v2719_v60  ;;  %v2793_v11 = vadd.f32 %v2792_v31, %v2791_v40 }
 0x8f9   :  { %v2866_v1 = vrot.slane %v2865_v42, 2  ;;  %v2884_v10 = vadd.f32 %v2883_v7, %v2882_v14  ;;  %v2740_v13 = vadd.f32 %v2739_v0, %v2738_v54  ;;  %v2812_v39 = vadd.f32 %v2811_v51, %v2810_v50 }
 0x8fa   :  { %3266 = vpush %v2721_v28  ;;  %v2794_v30 = vrot.slane %v2793_v11, 1 }
 0x8fb   :  { %v2867_v15 = vadd.f32 %v2866_v1, %v2865_v42  ;;  %v2885_v24 = vrot.slane %v2884_v10, 2  ;;  %3268 = vpush %v2740_v13  ;;  %v2813_v44 = vrot.slane %v2812_v39, 1 }
 0x8fc   :  { %v2795_v26 = vadd.f32 %v2794_v30, %v2793_v11 }
 0x8fd   :  { %v2886_v57 = vadd.f32 %v2885_v24, %v2884_v10  ;;  %v2814_v38 = vadd.f32 %v2813_v44, %v2812_v39  ;;  %v2868_v2 = vrot.slane %v2867_v15, 1 }
 0x8fe   :  { %3270 = vpush %v2795_v26 }
 0x8ff   :  { %3272 = vpush %v2814_v38  ;;  %v2869_v47 = vadd.f32 %v2868_v2, %v2867_v15  ;;  %v2887_v52 = vrot.slane %v2886_v57, 1 }
 0x901   :  { %3274 = vpush %v2869_v47  ;;  %v2888_v36 = vadd.f32 %v2887_v52, %v2886_v57 }
 0x903   :  { %3276 = vpush %v2888_v36 }
 0x91a   :  { %s3251_s19 = spop %3250 }
 0x91b   :  { %s2412_s1 = sadd.f32 %s3251_s19, %s2357_s3 }
 0x91d   :  { %s4618_s2 = spop %3252 }
 0x91e   :  { %s2431_s16 = ssub.f32 %s2412_s1, %s4618_s2 }
 0x91f   :  { %s3255_s21 = spop %3254 }
 0x920   :  { %s3257_s24 = spop %3256 }
 0x921   :  { %s2520_s9 = ssub.f32 %s3255_s21, %s3257_s24 }
 0x922   :  { %s1972_s21 = ssub.f32 %s1953_s0, %s4673_s5  ;;  %s3481_s0 = scalar_lea.hbm %s4674_s20, 16 }
 0x923   :  { %s3259_s26 = spop %3258  ;;  %p3482_p2 = scmp.ne.s32.totalorder %s4674_s20, %s3481_s0 }
 0x924   :  { %s2575_s22 = sadd.f32 %s3259_s26, %s2520_s9  ;;  %s1975_s9 = smul.f32 0.016666668, %s1972_s21 }
 0x925   :  { %s3261_s30 = spop %3260  ;;  %p3485_p3 = scmp.lt.u32.totalorder %s3481_s0, %s4674_s20 }
 0x926   :  { %s2594_s8 = ssub.f32 %s2575_s22, %s3261_s30  ;;  %s3263_s11 = spop %3262 }
 0x927   :  { %s2434_s22 = smul.f32 0.016666668, %s2431_s16  ;;  %s1976_s14 = sadd.f32 %s1975_s9, %s1518_s12 }
 0x928   :  { %s2649_s29 = sadd.f32 %s3263_s11, %s2594_s8  ;;  %p3487_p4 = pnand %p3485_p3, %p3482_p2 }
 0x929   :  { %s3265_s10 = spop %3264  ;;  %s2435_s30 = sadd.f32 %s2434_s22, %s1976_s14 }
 0x92a   :  { %s2668_s28 = ssub.f32 %s2649_s29, %s3265_s10 }
 0x92b   :  { %s3267_s18 = spop %3266 }
 0x92c   :  { %s2723_s15 = sadd.f32 %s3267_s18, %s2668_s28  ;;  %s3269_s7 = spop %3268 }
 0x92e   :  { %s2742_s13 = ssub.f32 %s2723_s15, %s3269_s7 }
 0x92f   :  { %s3271_s23 = spop %3270 }
 0x930   :  { %s2797_s24 = sadd.f32 %s3271_s23, %s2742_s13  ;;  %s3273_s6 = spop %3272 }
 0x932   :  { %s2816_s17 = ssub.f32 %s2797_s24, %s3273_s6  ;;  %s3275_s26 = spop %3274 }
 0x934   :  { %s2871_s4 = sadd.f32 %s3275_s26, %s2816_s17  ;;  %s3277_s25 = spop %3276 }
 0x936   :  { %s2890_s27 = ssub.f32 %s2871_s4, %s3277_s25 }
 0x938   :  { %s2893_s19 = smul.f32 0.016666668, %s2890_s27 }
 0x93a   :  { %s2894_s8 = sadd.f32 %s2893_s19, %s2435_s30 }
 0x93c   :  { %2896 = sst [smem:[#allocation9]] %s2894_s8 }
 0x93d   :  { %3490 = shalt.err (!%p3487_p4)
}
 0x93e   :  { %s3514_s28 = smov [#allocation9]  }
 0x93f   :  { %2906 = dma.smem_to_hbm %s3514_s28, 16, %s4674_s20, [#allocation6]  }
 0x940   :  { %3495 = dma.done.wait [#allocation6], 16  }
 0x941   :  { %3496 = vsyncadd [#allocation6], 4294967280 }
 0x942   :  { %2912 = sfence }
 0x943   :  { %2913 = vsyncpa [#allocation5], 1 }
 0x944   :  { %2914 = vsyncpa [#allocation8], 1 }
 0x945   :  { %2915 = vsyncpa [#allocation6], 1 }

</bundles_post_ra>
